<compile_context>
chip_gen: v5e
topology: v5e:2x2
jax: 0.10.0
libtpu: 0.0.40
codegen_flags: <defaults>
</compile_context>

<pallas_src>
import functools
import math

import jax
import jax.numpy as jnp
from jax import lax
from jax.experimental import pallas as pl
from jax.experimental.pallas import tpu as pltpu


# ----------------------------- packed-vector layout ---------------------------


def _vec_layout(input_dim, num_stocks, num_layers):
    """Row indices inside the packed (Nvec, 4E) bias/vector stack."""
    idx, i = {}, 0
    idx["emb_w"] = i; i += input_dim           # embedding weight rows (F, E)
    idx["emb_b"] = i; i += 1
    idx["pos"] = i; i += num_stocks            # positional encoding rows (S, E)
    idx["s1_b"] = i; i += 4                    # stage-1 attn bq, bk, bv, bo
    idx["layer_b"] = []
    for _ in range(num_layers):                # per layer: bq,bk,bv,bo, ln1g,
        idx["layer_b"].append(i); i += 10      #   ln1b, b1(4E), b2, ln2g, ln2b
    idx["fc_w"] = i; i += 1
    idx["fc_b"] = i; i += 1
    idx["total"] = i
    return idx


# ------------------------------ in-kernel helpers ------------------------------


def _layer_norm(x, g, b, eps=1e-5):
    # x: (L, E); g/b: (1, E).  eps matches PyTorch LayerNorm default.
    mu = jnp.mean(x, axis=-1, keepdims=True)
    var = jnp.mean(jnp.square(x - mu), axis=-1, keepdims=True)
    return (x - mu) * lax.rsqrt(var + eps) * g + b


def _mha(x, attn_mask, head_masks, wq, bq, wk, bk, wv, bv, wo, bo):
    """Multi-head self-attention on x: (L, E) with an (L, L) validity mask.

    The softmax scale is pre-folded into wq/bq.  Heads use head-blocked
    masking of the E embedding lanes, so there are never (L, head_dim)
    tensors and no head split/merge transposes.
    """
    q = jnp.dot(x, wq, preferred_element_type=jnp.float32) + bq
    k = jnp.dot(x, wk, preferred_element_type=jnp.float32) + bk
    v = jnp.dot(x, wv, preferred_element_type=jnp.float32) + bv
    o = jnp.zeros_like(q)
    for m in head_masks:                                   # static unroll over H
        # (q*m) . k over E == q_h @ k_h^T
        s = lax.dot_general(q * m, k, (((1,), (1,)), ((), ())),
                            preferred_element_type=jnp.float32)      # (L, L)
        s = jnp.where(attn_mask, s, jnp.float32(-1e30))
        p = jnp.exp(s - jnp.max(s, axis=-1, keepdims=True))
        p = p * pl.reciprocal(jnp.sum(p, axis=-1, keepdims=True), approx=True)
        # p @ (v*m) lands only in head h's columns; summing over heads
        # reconstructs the concatenated-head output.
        o = o + jnp.dot(p, v * m, preferred_element_type=jnp.float32)
    return jnp.dot(o, wo, preferred_element_type=jnp.float32) + bo


# ------------------------------- fused kernel ---------------------------------


def _market_kernel(x_ref, vecs_ref, aw_ref, w1_ref, w2_ref, out_ref, *,
                   num_heads, num_layers, num_stocks, seq_len, input_dim,
                   embed_dim):
    H, NL = num_heads, num_layers
    S, T, F, E = num_stocks, seq_len, input_dim, embed_dim
    Dh = E // H
    L = T * S
    lay = _vec_layout(F, S, NL)

    vecs = vecs_ref[...]                                   # (Nvec, 4E)

    def vec(i, width=E):
        return vecs[i:i + 1, :width]                       # (1, width)

    # Per-head 0/1 masks over the E embedding lanes (iota + compares, no refs).
    cols = lax.broadcasted_iota(jnp.int32, (1, E), 1)
    head_masks = [((cols >= h * Dh) & (cols < (h + 1) * Dh)).astype(jnp.float32)
                  for h in range(H)]

    # Attention validity masks over the flat (t, s) row ordering.
    r = lax.broadcasted_iota(jnp.int32, (L, L), 0)
    c = lax.broadcasted_iota(jnp.int32, (L, L), 1)
    same_t = (r < S) & (c < S)                             # stage 1: same time
    for t in range(1, T):
        same_t = same_t | ((r >= t * S) & (r < (t + 1) * S) &
                           (c >= t * S) & (c < (t + 1) * S))
    d = r - c
    same_s = d == 0                                        # stage 2: same stock
    for k in range(1, T):
        same_s = same_s | (d == k * S) | (d == -k * S)

    # ---- stage 1: embedding + positional encoding + cross-stock MHA ----------
    emb_w = vecs[lay["emb_w"]:lay["emb_w"] + F, :E]        # (F, E)
    pos = vecs[lay["pos"]:lay["pos"] + S, :E]              # (S, E)
    h = (jnp.dot(x_ref[...], emb_w, preferred_element_type=jnp.float32)
         + vec(lay["emb_b"]))                              # (L, E)
    h = h + jnp.concatenate([pos] * T, axis=0)             # broadcast over time
    b0 = lay["s1_b"]
    h = _mha(h, same_t, head_masks,
             aw_ref[0], vec(b0 + 0), aw_ref[1], vec(b0 + 1),
             aw_ref[2], vec(b0 + 2), aw_ref[3], vec(b0 + 3))

    # ---- stage 2: TransformerEncoder (post-norm, relu FFN) over time ---------
    for li in range(NL):
        wb = 4 * (li + 1)
        bb = lay["layer_b"][li]
        a = _mha(h, same_s, head_masks,
                 aw_ref[wb + 0], vec(bb + 0), aw_ref[wb + 1], vec(bb + 1),
                 aw_ref[wb + 2], vec(bb + 2), aw_ref[wb + 3], vec(bb + 3))
        h = _layer_norm(h + a, vec(bb + 4), vec(bb + 5))
        f = jnp.maximum(
            jnp.dot(h, w1_ref[li], preferred_element_type=jnp.float32)
            + vec(bb + 6, 4 * E), 0.0)
        f = (jnp.dot(f, w2_ref[li], preferred_element_type=jnp.float32)
             + vec(bb + 7))
        h = _layer_norm(h + f, vec(bb + 8), vec(bb + 9))

    # ---- mean pool over time (rows are (t, s) ordered) + final fc ------------
    pooled = h[0:S, :]
    for t in range(1, T):
        pooled = pooled + h[t * S:(t + 1) * S, :]
    pooled = pooled * jnp.float32(1.0 / T)                 # (S, E)
    out = lax.dot_general(vec(lay["fc_w"]), pooled, (((1,), (1,)), ((), ())),
                          preferred_element_type=jnp.float32)        # (1, S)
    out_ref[...] = out + vec(lay["fc_b"], 1)


# ------------------------------ forward wrapper --------------------------------


def market_transformer_forward(x, packed_params, *, num_heads, num_layers):
    B, T, S, F = x.shape
    vecs, attn_w, w1s, w2s = packed_params
    E = attn_w.shape[-1]
    L = T * S
    x = x.astype(jnp.float32).reshape(B, L, F)    # contiguous -> free reshape

    kernel = functools.partial(
        _market_kernel, num_heads=num_heads, num_layers=num_layers,
        num_stocks=S, seq_len=T, input_dim=F, embed_dim=E)

    out = pl.pallas_call(
        kernel,
        grid=(B,),
        in_specs=[
            pl.BlockSpec((None, L, F), lambda b: (b, 0, 0)),
            pl.BlockSpec(vecs.shape, lambda b: (0, 0)),
            pl.BlockSpec(attn_w.shape, lambda b: (0, 0, 0)),
            pl.BlockSpec(w1s.shape, lambda b: (0, 0, 0)),
            pl.BlockSpec(w2s.shape, lambda b: (0, 0, 0)),
        ],
        out_specs=pl.BlockSpec((None, 1, S), lambda b: (b, 0, 0)),
        out_shape=jax.ShapeDtypeStruct((B, 1, S), jnp.float32),
        compiler_params=pltpu.CompilerParams(
            dimension_semantics=("parallel",)),
    )(x, vecs, attn_w, w1s, w2s)
    return out.reshape(B, S)


# --------------------------------- parameters ----------------------------------


def init_params(key, input_dim, embed_dim, num_stocks, num_layers):
    """Random parameters in PyTorch layout (Linear weights are (out, in))."""
    keys = jax.random.split(key, 6 + num_layers)

    def dense(k, shape):
        return 0.05 * jax.random.normal(k, shape, dtype=jnp.float32)

    def attn_params(k):
        k1, k2, k3, k4 = jax.random.split(k, 4)
        return {"in_w": dense(k1, (3 * embed_dim, embed_dim)),
                "in_b": dense(k2, (3 * embed_dim,)),
                "out_w": dense(k3, (embed_dim, embed_dim)),
                "out_b": dense(k4, (embed_dim,))}

    params = {
        "embed_w": dense(keys[0], (embed_dim, input_dim)),
        "embed_b": dense(keys[1], (embed_dim,)),
        # PyTorch init is zeros; small random values so the add is exercised
        "pos_enc": dense(keys[2], (1, num_stocks, embed_dim)),
        "ts_attn": attn_params(keys[3]),
        "fc_w": dense(keys[4], (1, embed_dim)),
        "fc_b": dense(keys[5], (1,)),
        "layers": [],
    }
    for i in range(num_layers):
        k1, k2, k3, k4, k5 = jax.random.split(keys[6 + i], 5)
        params["layers"].append({
            "attn": attn_params(k1),
            "w1": dense(k2, (4 * embed_dim, embed_dim)),
            "b1": dense(k3, (4 * embed_dim,)),
            "w2": dense(k4, (embed_dim, 4 * embed_dim)),
            "b2": dense(k5, (embed_dim,)),
            "ln1_g": jnp.ones((embed_dim,), jnp.float32),
            "ln1_b": jnp.zeros((embed_dim,), jnp.float32),
            "ln2_g": jnp.ones((embed_dim,), jnp.float32),
            "ln2_b": jnp.zeros((embed_dim,), jnp.float32),
        })
    return params


def prepare_params(params, num_heads):
    """One-time repack into 4 kernel arrays.

    * Linear weights transposed to (in, out); softmax scale folded into Wq/bq.
    * Every (E,)/(4E,) vector (biases, LN params, pos-enc rows, embedding rows,
      fc) packed into ONE (Nvec, 4E) stack -> one ref / one DMA per grid step.
    * Attention q/k/v/o weights stacked into one (4*(NL+1), E, E) array;
      FFN w1 / w2 stacked into (NL, E, 4E) / (NL, 4E, E).
    """
    E, F = params["embed_w"].shape
    S = params["pos_enc"].shape[1]
    NL = len(params["layers"])
    Dh = E // num_heads
    scale = 1.0 / math.sqrt(Dh)
    W = 4 * E
    lay = _vec_layout(F, S, NL)

    def pad_row(v):
        v = jnp.asarray(v, jnp.float32).reshape(-1)
        return jnp.pad(v, (0, W - v.shape[0]))

    def attn_parts(p):
        in_w, in_b = p["in_w"], p["in_b"]
        mats = (in_w[:E].T * scale, in_w[E:2 * E].T, in_w[2 * E:].T,
                p["out_w"].T)
        biases = (in_b[:E] * scale, in_b[E:2 * E], in_b[2 * E:], p["out_b"])
        return mats, biases

    rows, attn_mats, w1s, w2s = [], [], [], []
    emb_wT = params["embed_w"].T                           # (F, E)
    rows += [pad_row(emb_wT[i]) for i in range(F)]
    rows.append(pad_row(params["embed_b"]))
    pos = params["pos_enc"][0]                             # (S, E)
    rows += [pad_row(pos[i]) for i in range(S)]
    mats, biases = attn_parts(params["ts_attn"])
    attn_mats += list(mats)
    rows += [pad_row(b) for b in biases]
    for lp in params["layers"]:
        mats, biases = attn_parts(lp["attn"])
        attn_mats += list(mats)
        rows += [pad_row(b) for b in biases]
        rows += [pad_row(lp["ln1_g"]), pad_row(lp["ln1_b"]),
                 pad_row(lp["b1"]), pad_row(lp["b2"]),
                 pad_row(lp["ln2_g"]), pad_row(lp["ln2_b"])]
        w1s.append(lp["w1"].T)                             # (E, 4E)
        w2s.append(lp["w2"].T)                             # (4E, E)
    rows.append(pad_row(params["fc_w"]))
    rows.append(pad_row(params["fc_b"]))
    assert len(rows) == lay["total"]

    return (jnp.stack(rows), jnp.stack(attn_mats),
            jnp.stack(w1s), jnp.stack(w2s))


# ------------------------------------ main -------------------------------------

if __name__ == "__main__":
    # MarketTransformer(input_dim=4, embed_dim=32, num_stocks=8, num_heads=4,
    #                   num_layers=2, dropout=0.1)  -- dropout inactive (eval)
    B, T, S, F = 2, 4, 8, 4
    E, H, NL = 32, 4, 2

    key = jax.random.PRNGKey(0)
    kx, kp = jax.random.split(key)
    x = jax.random.normal(kx, (B, T, S, F), dtype=jnp.float32)

    params = init_params(kp, F, E, S, NL)
    packed = prepare_params(params, H)

    fwd = jax.jit(functools.partial(market_transformer_forward,
                                    num_heads=H, num_layers=NL))
    out = fwd(x, packed)
    out = jax.block_until_ready(out)
    assert out.shape == (B, S) and out.dtype == jnp.float32
    print("KERNEL_OK")
</pallas_src>

<mosaic_0001>
module attributes {stable_mosaic.version = 11 : i64} {
  func.func @_market_kernel(%arg0: i32, %arg1: memref<1x32x4xf32, #tpu.memory_space<vmem>>, %arg2: memref<39x128xf32, #tpu.memory_space<vmem>>, %arg3: memref<12x32x32xf32, #tpu.memory_space<vmem>>, %arg4: memref<2x32x128xf32, #tpu.memory_space<vmem>>, %arg5: memref<2x128x32xf32, #tpu.memory_space<vmem>>, %arg6: memref<1x1x8xf32, #tpu.memory_space<vmem>>) attributes {dimension_semantics = [#tpu.dimension_semantics<parallel>], iteration_bounds = array<i64: 2>, scalar_prefetch = 0 : i64, scratch_operands = 0 : i64, tpu.core_type = #tpu.core_type<tc>, window_params = [{transform_indices = @transform_0, window_bounds = array<i64: 1, 32, 4>}, {pipeline_mode = #tpu.pipeline_mode<synchronous>, transform_indices = @transform_1, window_bounds = array<i64: 39, 128>}, {pipeline_mode = #tpu.pipeline_mode<synchronous>, transform_indices = @transform_2, window_bounds = array<i64: 12, 32, 32>}, {pipeline_mode = #tpu.pipeline_mode<synchronous>, transform_indices = @transform_3, window_bounds = array<i64: 2, 32, 128>}, {pipeline_mode = #tpu.pipeline_mode<synchronous>, transform_indices = @transform_4, window_bounds = array<i64: 2, 128, 32>}, {transform_indices = @transform_5, window_bounds = array<i64: 1, 1, 8>}]} {
    %c0 = arith.constant 0 : index
    %c0_0 = arith.constant 0 : index
    %0 = vector.load %arg2[%c0, %c0_0] : memref<39x128xf32, #tpu.memory_space<vmem>>, vector<39x128xf32>
    %1 = tpu.iota {dimensions = array<i32: 1>} : vector<1x32xi32>
    %c0_i32 = arith.constant 0 : i32
    %2 = vector.broadcast %c0_i32 : i32 to vector<1x32xi32>
    %3 = arith.cmpi sge, %1, %2 : vector<1x32xi32>
    %c8_i32 = arith.constant 8 : i32
    %4 = vector.broadcast %c8_i32 : i32 to vector<1x32xi32>
    %5 = arith.cmpi slt, %1, %4 : vector<1x32xi32>
    %6 = arith.andi %3, %5 : vector<1x32xi1>
    %7 = arith.extui %6 : vector<1x32xi1> to vector<1x32xi32>
    %8 = arith.sitofp %7 : vector<1x32xi32> to vector<1x32xf32>
    %c8_i32_1 = arith.constant 8 : i32
    %9 = vector.broadcast %c8_i32_1 : i32 to vector<1x32xi32>
    %10 = arith.cmpi sge, %1, %9 : vector<1x32xi32>
    %c16_i32 = arith.constant 16 : i32
    %11 = vector.broadcast %c16_i32 : i32 to vector<1x32xi32>
    %12 = arith.cmpi slt, %1, %11 : vector<1x32xi32>
    %13 = arith.andi %10, %12 : vector<1x32xi1>
    %14 = arith.extui %13 : vector<1x32xi1> to vector<1x32xi32>
    %15 = arith.sitofp %14 : vector<1x32xi32> to vector<1x32xf32>
    %c16_i32_2 = arith.constant 16 : i32
    %16 = vector.broadcast %c16_i32_2 : i32 to vector<1x32xi32>
    %17 = arith.cmpi sge, %1, %16 : vector<1x32xi32>
    %c24_i32 = arith.constant 24 : i32
    %18 = vector.broadcast %c24_i32 : i32 to vector<1x32xi32>
    %19 = arith.cmpi slt, %1, %18 : vector<1x32xi32>
    %20 = arith.andi %17, %19 : vector<1x32xi1>
    %21 = arith.extui %20 : vector<1x32xi1> to vector<1x32xi32>
    %22 = arith.sitofp %21 : vector<1x32xi32> to vector<1x32xf32>
    %c24_i32_3 = arith.constant 24 : i32
    %23 = vector.broadcast %c24_i32_3 : i32 to vector<1x32xi32>
    %24 = arith.cmpi sge, %1, %23 : vector<1x32xi32>
    %c32_i32 = arith.constant 32 : i32
    %25 = vector.broadcast %c32_i32 : i32 to vector<1x32xi32>
    %26 = arith.cmpi slt, %1, %25 : vector<1x32xi32>
    %27 = arith.andi %24, %26 : vector<1x32xi1>
    %28 = arith.extui %27 : vector<1x32xi1> to vector<1x32xi32>
    %29 = arith.sitofp %28 : vector<1x32xi32> to vector<1x32xf32>
    %30 = tpu.iota {dimensions = array<i32: 0>} : vector<32x32xi32>
    %31 = tpu.iota {dimensions = array<i32: 1>} : vector<32x32xi32>
    %c8_i32_4 = arith.constant 8 : i32
    %32 = vector.broadcast %c8_i32_4 : i32 to vector<32x32xi32>
    %33 = arith.cmpi slt, %30, %32 : vector<32x32xi32>
    %c8_i32_5 = arith.constant 8 : i32
    %34 = vector.broadcast %c8_i32_5 : i32 to vector<32x32xi32>
    %35 = arith.cmpi slt, %31, %34 : vector<32x32xi32>
    %36 = arith.andi %33, %35 : vector<32x32xi1>
    %c8_i32_6 = arith.constant 8 : i32
    %37 = vector.broadcast %c8_i32_6 : i32 to vector<32x32xi32>
    %38 = arith.cmpi sge, %30, %37 : vector<32x32xi32>
    %c16_i32_7 = arith.constant 16 : i32
    %39 = vector.broadcast %c16_i32_7 : i32 to vector<32x32xi32>
    %40 = arith.cmpi slt, %30, %39 : vector<32x32xi32>
    %41 = arith.andi %38, %40 : vector<32x32xi1>
    %c8_i32_8 = arith.constant 8 : i32
    %42 = vector.broadcast %c8_i32_8 : i32 to vector<32x32xi32>
    %43 = arith.cmpi sge, %31, %42 : vector<32x32xi32>
    %44 = arith.andi %41, %43 : vector<32x32xi1>
    %c16_i32_9 = arith.constant 16 : i32
    %45 = vector.broadcast %c16_i32_9 : i32 to vector<32x32xi32>
    %46 = arith.cmpi slt, %31, %45 : vector<32x32xi32>
    %47 = arith.andi %44, %46 : vector<32x32xi1>
    %48 = arith.ori %36, %47 : vector<32x32xi1>
    %c16_i32_10 = arith.constant 16 : i32
    %49 = vector.broadcast %c16_i32_10 : i32 to vector<32x32xi32>
    %50 = arith.cmpi sge, %30, %49 : vector<32x32xi32>
    %c24_i32_11 = arith.constant 24 : i32
    %51 = vector.broadcast %c24_i32_11 : i32 to vector<32x32xi32>
    %52 = arith.cmpi slt, %30, %51 : vector<32x32xi32>
    %53 = arith.andi %50, %52 : vector<32x32xi1>
    %c16_i32_12 = arith.constant 16 : i32
    %54 = vector.broadcast %c16_i32_12 : i32 to vector<32x32xi32>
    %55 = arith.cmpi sge, %31, %54 : vector<32x32xi32>
    %56 = arith.andi %53, %55 : vector<32x32xi1>
    %c24_i32_13 = arith.constant 24 : i32
    %57 = vector.broadcast %c24_i32_13 : i32 to vector<32x32xi32>
    %58 = arith.cmpi slt, %31, %57 : vector<32x32xi32>
    %59 = arith.andi %56, %58 : vector<32x32xi1>
    %60 = arith.ori %48, %59 : vector<32x32xi1>
    %c24_i32_14 = arith.constant 24 : i32
    %61 = vector.broadcast %c24_i32_14 : i32 to vector<32x32xi32>
    %62 = arith.cmpi sge, %30, %61 : vector<32x32xi32>
    %c32_i32_15 = arith.constant 32 : i32
    %63 = vector.broadcast %c32_i32_15 : i32 to vector<32x32xi32>
    %64 = arith.cmpi slt, %30, %63 : vector<32x32xi32>
    %65 = arith.andi %62, %64 : vector<32x32xi1>
    %c24_i32_16 = arith.constant 24 : i32
    %66 = vector.broadcast %c24_i32_16 : i32 to vector<32x32xi32>
    %67 = arith.cmpi sge, %31, %66 : vector<32x32xi32>
    %68 = arith.andi %65, %67 : vector<32x32xi1>
    %c32_i32_17 = arith.constant 32 : i32
    %69 = vector.broadcast %c32_i32_17 : i32 to vector<32x32xi32>
    %70 = arith.cmpi slt, %31, %69 : vector<32x32xi32>
    %71 = arith.andi %68, %70 : vector<32x32xi1>
    %72 = arith.ori %60, %71 : vector<32x32xi1>
    %73 = arith.subi %30, %31 : vector<32x32xi32>
    %c0_i32_18 = arith.constant 0 : i32
    %74 = vector.broadcast %c0_i32_18 : i32 to vector<32x32xi32>
    %75 = arith.cmpi eq, %73, %74 : vector<32x32xi32>
    %c8_i32_19 = arith.constant 8 : i32
    %76 = vector.broadcast %c8_i32_19 : i32 to vector<32x32xi32>
    %77 = arith.cmpi eq, %73, %76 : vector<32x32xi32>
    %78 = arith.ori %75, %77 : vector<32x32xi1>
    %c-8_i32 = arith.constant -8 : i32
    %79 = vector.broadcast %c-8_i32 : i32 to vector<32x32xi32>
    %80 = arith.cmpi eq, %73, %79 : vector<32x32xi32>
    %81 = arith.ori %78, %80 : vector<32x32xi1>
    %c16_i32_20 = arith.constant 16 : i32
    %82 = vector.broadcast %c16_i32_20 : i32 to vector<32x32xi32>
    %83 = arith.cmpi eq, %73, %82 : vector<32x32xi32>
    %84 = arith.ori %81, %83 : vector<32x32xi1>
    %c-16_i32 = arith.constant -16 : i32
    %85 = vector.broadcast %c-16_i32 : i32 to vector<32x32xi32>
    %86 = arith.cmpi eq, %73, %85 : vector<32x32xi32>
    %87 = arith.ori %84, %86 : vector<32x32xi1>
    %c24_i32_21 = arith.constant 24 : i32
    %88 = vector.broadcast %c24_i32_21 : i32 to vector<32x32xi32>
    %89 = arith.cmpi eq, %73, %88 : vector<32x32xi32>
    %90 = arith.ori %87, %89 : vector<32x32xi1>
    %c-24_i32 = arith.constant -24 : i32
    %91 = vector.broadcast %c-24_i32 : i32 to vector<32x32xi32>
    %92 = arith.cmpi eq, %73, %91 : vector<32x32xi32>
    %93 = arith.ori %90, %92 : vector<32x32xi1>
    %94 = vector.extract_strided_slice %0 {offsets = [0, 0], sizes = [4, 32], strides = [1, 1]} : vector<39x128xf32> to vector<4x32xf32>
    %95 = vector.extract_strided_slice %0 {offsets = [5, 0], sizes = [8, 32], strides = [1, 1]} : vector<39x128xf32> to vector<8x32xf32>
    %c0_22 = arith.constant 0 : index
    %c0_23 = arith.constant 0 : index
    %c0_24 = arith.constant 0 : index
    %96 = vector.load %arg1[%c0_22, %c0_23, %c0_24] : memref<1x32x4xf32, #tpu.memory_space<vmem>>, vector<1x32x4xf32>
    %97 = vector.shape_cast %96 : vector<1x32x4xf32> to vector<32x4xf32>
    %cst = arith.constant dense<0.000000e+00> : vector<32x32xf32>
    %98 = tpu.matmul %97, %94, %cst {dimension_numbers = #tpu.dot_dimension_numbers<[1], [0], [0], [1], [0, 0, 1, 1], [], []>} : vector<32x4xf32>, vector<4x32xf32>, vector<32x32xf32> -> vector<32x32xf32>
    %99 = vector.extract_strided_slice %0 {offsets = [4, 0], sizes = [1, 32], strides = [1, 1]} : vector<39x128xf32> to vector<1x32xf32>
    %100 = vector.broadcast %99 : vector<1x32xf32> to vector<32x32xf32>
    %101 = arith.addf %98, %100 : vector<32x32xf32>
    %102 = tpu.concatenate %95, %95, %95, %95 in 0 : vector<8x32xf32>, vector<8x32xf32>, vector<8x32xf32>, vector<8x32xf32> -> vector<32x32xf32>
    %103 = arith.addf %101, %102 : vector<32x32xf32>
    %c0_25 = arith.constant 0 : index
    %c0_26 = arith.constant 0 : index
    %c0_27 = arith.constant 0 : index
    %104 = vector.load %arg3[%c0_25, %c0_26, %c0_27] : memref<12x32x32xf32, #tpu.memory_space<vmem>>, vector<1x32x32xf32>
    %105 = vector.shape_cast %104 : vector<1x32x32xf32> to vector<32x32xf32>
    %106 = vector.extract_strided_slice %0 {offsets = [13, 0], sizes = [1, 32], strides = [1, 1]} : vector<39x128xf32> to vector<1x32xf32>
    %c1 = arith.constant 1 : index
    %c0_28 = arith.constant 0 : index
    %c0_29 = arith.constant 0 : index
    %107 = vector.load %arg3[%c1, %c0_28, %c0_29] : memref<12x32x32xf32, #tpu.memory_space<vmem>>, vector<1x32x32xf32>
    %108 = vector.shape_cast %107 : vector<1x32x32xf32> to vector<32x32xf32>
    %109 = vector.extract_strided_slice %0 {offsets = [14, 0], sizes = [1, 32], strides = [1, 1]} : vector<39x128xf32> to vector<1x32xf32>
    %c2 = arith.constant 2 : index
    %c0_30 = arith.constant 0 : index
    %c0_31 = arith.constant 0 : index
    %110 = vector.load %arg3[%c2, %c0_30, %c0_31] : memref<12x32x32xf32, #tpu.memory_space<vmem>>, vector<1x32x32xf32>
    %111 = vector.shape_cast %110 : vector<1x32x32xf32> to vector<32x32xf32>
    %112 = vector.extract_strided_slice %0 {offsets = [15, 0], sizes = [1, 32], strides = [1, 1]} : vector<39x128xf32> to vector<1x32xf32>
    %c3 = arith.constant 3 : index
    %c0_32 = arith.constant 0 : index
    %c0_33 = arith.constant 0 : index
    %113 = vector.load %arg3[%c3, %c0_32, %c0_33] : memref<12x32x32xf32, #tpu.memory_space<vmem>>, vector<1x32x32xf32>
    %114 = vector.shape_cast %113 : vector<1x32x32xf32> to vector<32x32xf32>
    %115 = vector.extract_strided_slice %0 {offsets = [16, 0], sizes = [1, 32], strides = [1, 1]} : vector<39x128xf32> to vector<1x32xf32>
    %cst_34 = arith.constant dense<0.000000e+00> : vector<32x32xf32>
    %116 = tpu.matmul %103, %105, %cst_34 {dimension_numbers = #tpu.dot_dimension_numbers<[1], [0], [0], [1], [0, 0, 1, 1], [], []>} : vector<32x32xf32>, vector<32x32xf32>, vector<32x32xf32> -> vector<32x32xf32>
    %117 = vector.broadcast %106 : vector<1x32xf32> to vector<32x32xf32>
    %118 = arith.addf %116, %117 : vector<32x32xf32>
    %cst_35 = arith.constant dense<0.000000e+00> : vector<32x32xf32>
    %119 = tpu.matmul %103, %108, %cst_35 {dimension_numbers = #tpu.dot_dimension_numbers<[1], [0], [0], [1], [0, 0, 1, 1], [], []>} : vector<32x32xf32>, vector<32x32xf32>, vector<32x32xf32> -> vector<32x32xf32>
    %120 = vector.broadcast %109 : vector<1x32xf32> to vector<32x32xf32>
    %121 = arith.addf %119, %120 : vector<32x32xf32>
    %cst_36 = arith.constant dense<0.000000e+00> : vector<32x32xf32>
    %122 = tpu.matmul %103, %111, %cst_36 {dimension_numbers = #tpu.dot_dimension_numbers<[1], [0], [0], [1], [0, 0, 1, 1], [], []>} : vector<32x32xf32>, vector<32x32xf32>, vector<32x32xf32> -> vector<32x32xf32>
    %123 = vector.broadcast %112 : vector<1x32xf32> to vector<32x32xf32>
    %124 = arith.addf %122, %123 : vector<32x32xf32>
    %cst_37 = arith.constant 0.000000e+00 : f32
    %125 = vector.broadcast %cst_37 : f32 to vector<32x32xf32>
    %126 = vector.broadcast %8 : vector<1x32xf32> to vector<32x32xf32>
    %127 = arith.mulf %118, %126 : vector<32x32xf32>
    %cst_38 = arith.constant dense<0.000000e+00> : vector<32x32xf32>
    %128 = tpu.matmul %127, %121, %cst_38 {dimension_numbers = #tpu.dot_dimension_numbers<[1], [1], [0], [0], [0, 0, 1, 0], [], []>} : vector<32x32xf32>, vector<32x32xf32>, vector<32x32xf32> -> vector<32x32xf32>
    %cst_39 = arith.constant -1.000000e+30 : f32
    %129 = vector.broadcast %cst_39 : f32 to vector<32x32xf32>
    %130 = arith.select %72, %128, %129 : vector<32x32xi1>, vector<32x32xf32>
    %cst_40 = arith.constant dense<0xFF800000> : vector<32xf32>
    %131 = vector.multi_reduction <maximumf>, %130, %cst_40 [1] : vector<32x32xf32> to vector<32xf32>
    %132 = vector.shape_cast %131 : vector<32xf32> to vector<32x1xf32>
    %133 = vector.broadcast %132 : vector<32x1xf32> to vector<32x32xf32>
    %134 = arith.subf %130, %133 : vector<32x32xf32>
    %135 = math.exp %134 : vector<32x32xf32>
    %cst_41 = arith.constant dense<0.000000e+00> : vector<32xf32>
    %136 = vector.multi_reduction <add>, %135, %cst_41 [1] : vector<32x32xf32> to vector<32xf32>
    %137 = vector.shape_cast %136 : vector<32xf32> to vector<32x1xf32>
    %138 = tpu.reciprocal %137 {approx = true} : vector<32x1xf32> -> vector<32x1xf32>
    %139 = vector.broadcast %138 : vector<32x1xf32> to vector<32x32xf32>
    %140 = arith.mulf %135, %139 : vector<32x32xf32>
    %141 = vector.broadcast %8 : vector<1x32xf32> to vector<32x32xf32>
    %142 = arith.mulf %124, %141 : vector<32x32xf32>
    %cst_42 = arith.constant dense<0.000000e+00> : vector<32x32xf32>
    %143 = tpu.matmul %140, %142, %cst_42 {dimension_numbers = #tpu.dot_dimension_numbers<[1], [0], [0], [1], [0, 0, 1, 1], [], []>} : vector<32x32xf32>, vector<32x32xf32>, vector<32x32xf32> -> vector<32x32xf32>
    %144 = arith.addf %125, %143 : vector<32x32xf32>
    %145 = vector.broadcast %15 : vector<1x32xf32> to vector<32x32xf32>
    %146 = arith.mulf %118, %145 : vector<32x32xf32>
    %cst_43 = arith.constant dense<0.000000e+00> : vector<32x32xf32>
    %147 = tpu.matmul %146, %121, %cst_43 {dimension_numbers = #tpu.dot_dimension_numbers<[1], [1], [0], [0], [0, 0, 1, 0], [], []>} : vector<32x32xf32>, vector<32x32xf32>, vector<32x32xf32> -> vector<32x32xf32>
    %cst_44 = arith.constant -1.000000e+30 : f32
    %148 = vector.broadcast %cst_44 : f32 to vector<32x32xf32>
    %149 = arith.select %72, %147, %148 : vector<32x32xi1>, vector<32x32xf32>
    %cst_45 = arith.constant dense<0xFF800000> : vector<32xf32>
    %150 = vector.multi_reduction <maximumf>, %149, %cst_45 [1] : vector<32x32xf32> to vector<32xf32>
    %151 = vector.shape_cast %150 : vector<32xf32> to vector<32x1xf32>
    %152 = vector.broadcast %151 : vector<32x1xf32> to vector<32x32xf32>
    %153 = arith.subf %149, %152 : vector<32x32xf32>
    %154 = math.exp %153 : vector<32x32xf32>
    %cst_46 = arith.constant dense<0.000000e+00> : vector<32xf32>
    %155 = vector.multi_reduction <add>, %154, %cst_46 [1] : vector<32x32xf32> to vector<32xf32>
    %156 = vector.shape_cast %155 : vector<32xf32> to vector<32x1xf32>
    %157 = tpu.reciprocal %156 {approx = true} : vector<32x1xf32> -> vector<32x1xf32>
    %158 = vector.broadcast %157 : vector<32x1xf32> to vector<32x32xf32>
    %159 = arith.mulf %154, %158 : vector<32x32xf32>
    %160 = vector.broadcast %15 : vector<1x32xf32> to vector<32x32xf32>
    %161 = arith.mulf %124, %160 : vector<32x32xf32>
    %cst_47 = arith.constant dense<0.000000e+00> : vector<32x32xf32>
    %162 = tpu.matmul %159, %161, %cst_47 {dimension_numbers = #tpu.dot_dimension_numbers<[1], [0], [0], [1], [0, 0, 1, 1], [], []>} : vector<32x32xf32>, vector<32x32xf32>, vector<32x32xf32> -> vector<32x32xf32>
    %163 = arith.addf %144, %162 : vector<32x32xf32>
    %164 = vector.broadcast %22 : vector<1x32xf32> to vector<32x32xf32>
    %165 = arith.mulf %118, %164 : vector<32x32xf32>
    %cst_48 = arith.constant dense<0.000000e+00> : vector<32x32xf32>
    %166 = tpu.matmul %165, %121, %cst_48 {dimension_numbers = #tpu.dot_dimension_numbers<[1], [1], [0], [0], [0, 0, 1, 0], [], []>} : vector<32x32xf32>, vector<32x32xf32>, vector<32x32xf32> -> vector<32x32xf32>
    %cst_49 = arith.constant -1.000000e+30 : f32
    %167 = vector.broadcast %cst_49 : f32 to vector<32x32xf32>
    %168 = arith.select %72, %166, %167 : vector<32x32xi1>, vector<32x32xf32>
    %cst_50 = arith.constant dense<0xFF800000> : vector<32xf32>
    %169 = vector.multi_reduction <maximumf>, %168, %cst_50 [1] : vector<32x32xf32> to vector<32xf32>
    %170 = vector.shape_cast %169 : vector<32xf32> to vector<32x1xf32>
    %171 = vector.broadcast %170 : vector<32x1xf32> to vector<32x32xf32>
    %172 = arith.subf %168, %171 : vector<32x32xf32>
    %173 = math.exp %172 : vector<32x32xf32>
    %cst_51 = arith.constant dense<0.000000e+00> : vector<32xf32>
    %174 = vector.multi_reduction <add>, %173, %cst_51 [1] : vector<32x32xf32> to vector<32xf32>
    %175 = vector.shape_cast %174 : vector<32xf32> to vector<32x1xf32>
    %176 = tpu.reciprocal %175 {approx = true} : vector<32x1xf32> -> vector<32x1xf32>
    %177 = vector.broadcast %176 : vector<32x1xf32> to vector<32x32xf32>
    %178 = arith.mulf %173, %177 : vector<32x32xf32>
    %179 = vector.broadcast %22 : vector<1x32xf32> to vector<32x32xf32>
    %180 = arith.mulf %124, %179 : vector<32x32xf32>
    %cst_52 = arith.constant dense<0.000000e+00> : vector<32x32xf32>
    %181 = tpu.matmul %178, %180, %cst_52 {dimension_numbers = #tpu.dot_dimension_numbers<[1], [0], [0], [1], [0, 0, 1, 1], [], []>} : vector<32x32xf32>, vector<32x32xf32>, vector<32x32xf32> -> vector<32x32xf32>
    %182 = arith.addf %163, %181 : vector<32x32xf32>
    %183 = vector.broadcast %29 : vector<1x32xf32> to vector<32x32xf32>
    %184 = arith.mulf %118, %183 : vector<32x32xf32>
    %cst_53 = arith.constant dense<0.000000e+00> : vector<32x32xf32>
    %185 = tpu.matmul %184, %121, %cst_53 {dimension_numbers = #tpu.dot_dimension_numbers<[1], [1], [0], [0], [0, 0, 1, 0], [], []>} : vector<32x32xf32>, vector<32x32xf32>, vector<32x32xf32> -> vector<32x32xf32>
    %cst_54 = arith.constant -1.000000e+30 : f32
    %186 = vector.broadcast %cst_54 : f32 to vector<32x32xf32>
    %187 = arith.select %72, %185, %186 : vector<32x32xi1>, vector<32x32xf32>
    %cst_55 = arith.constant dense<0xFF800000> : vector<32xf32>
    %188 = vector.multi_reduction <maximumf>, %187, %cst_55 [1] : vector<32x32xf32> to vector<32xf32>
    %189 = vector.shape_cast %188 : vector<32xf32> to vector<32x1xf32>
    %190 = vector.broadcast %189 : vector<32x1xf32> to vector<32x32xf32>
    %191 = arith.subf %187, %190 : vector<32x32xf32>
    %192 = math.exp %191 : vector<32x32xf32>
    %cst_56 = arith.constant dense<0.000000e+00> : vector<32xf32>
    %193 = vector.multi_reduction <add>, %192, %cst_56 [1] : vector<32x32xf32> to vector<32xf32>
    %194 = vector.shape_cast %193 : vector<32xf32> to vector<32x1xf32>
    %195 = tpu.reciprocal %194 {approx = true} : vector<32x1xf32> -> vector<32x1xf32>
    %196 = vector.broadcast %195 : vector<32x1xf32> to vector<32x32xf32>
    %197 = arith.mulf %192, %196 : vector<32x32xf32>
    %198 = vector.broadcast %29 : vector<1x32xf32> to vector<32x32xf32>
    %199 = arith.mulf %124, %198 : vector<32x32xf32>
    %cst_57 = arith.constant dense<0.000000e+00> : vector<32x32xf32>
    %200 = tpu.matmul %197, %199, %cst_57 {dimension_numbers = #tpu.dot_dimension_numbers<[1], [0], [0], [1], [0, 0, 1, 1], [], []>} : vector<32x32xf32>, vector<32x32xf32>, vector<32x32xf32> -> vector<32x32xf32>
    %201 = arith.addf %182, %200 : vector<32x32xf32>
    %cst_58 = arith.constant dense<0.000000e+00> : vector<32x32xf32>
    %202 = tpu.matmul %201, %114, %cst_58 {dimension_numbers = #tpu.dot_dimension_numbers<[1], [0], [0], [1], [0, 0, 1, 1], [], []>} : vector<32x32xf32>, vector<32x32xf32>, vector<32x32xf32> -> vector<32x32xf32>
    %203 = vector.broadcast %115 : vector<1x32xf32> to vector<32x32xf32>
    %204 = arith.addf %202, %203 : vector<32x32xf32>
    %c4 = arith.constant 4 : index
    %c0_59 = arith.constant 0 : index
    %c0_60 = arith.constant 0 : index
    %205 = vector.load %arg3[%c4, %c0_59, %c0_60] : memref<12x32x32xf32, #tpu.memory_space<vmem>>, vector<1x32x32xf32>
    %206 = vector.shape_cast %205 : vector<1x32x32xf32> to vector<32x32xf32>
    %207 = vector.extract_strided_slice %0 {offsets = [17, 0], sizes = [1, 32], strides = [1, 1]} : vector<39x128xf32> to vector<1x32xf32>
    %c5 = arith.constant 5 : index
    %c0_61 = arith.constant 0 : index
    %c0_62 = arith.constant 0 : index
    %208 = vector.load %arg3[%c5, %c0_61, %c0_62] : memref<12x32x32xf32, #tpu.memory_space<vmem>>, vector<1x32x32xf32>
    %209 = vector.shape_cast %208 : vector<1x32x32xf32> to vector<32x32xf32>
    %210 = vector.extract_strided_slice %0 {offsets = [18, 0], sizes = [1, 32], strides = [1, 1]} : vector<39x128xf32> to vector<1x32xf32>
    %c6 = arith.constant 6 : index
    %c0_63 = arith.constant 0 : index
    %c0_64 = arith.constant 0 : index
    %211 = vector.load %arg3[%c6, %c0_63, %c0_64] : memref<12x32x32xf32, #tpu.memory_space<vmem>>, vector<1x32x32xf32>
    %212 = vector.shape_cast %211 : vector<1x32x32xf32> to vector<32x32xf32>
    %213 = vector.extract_strided_slice %0 {offsets = [19, 0], sizes = [1, 32], strides = [1, 1]} : vector<39x128xf32> to vector<1x32xf32>
    %c7 = arith.constant 7 : index
    %c0_65 = arith.constant 0 : index
    %c0_66 = arith.constant 0 : index
    %214 = vector.load %arg3[%c7, %c0_65, %c0_66] : memref<12x32x32xf32, #tpu.memory_space<vmem>>, vector<1x32x32xf32>
    %215 = vector.shape_cast %214 : vector<1x32x32xf32> to vector<32x32xf32>
    %216 = vector.extract_strided_slice %0 {offsets = [20, 0], sizes = [1, 32], strides = [1, 1]} : vector<39x128xf32> to vector<1x32xf32>
    %cst_67 = arith.constant dense<0.000000e+00> : vector<32x32xf32>
    %217 = tpu.matmul %204, %206, %cst_67 {dimension_numbers = #tpu.dot_dimension_numbers<[1], [0], [0], [1], [0, 0, 1, 1], [], []>} : vector<32x32xf32>, vector<32x32xf32>, vector<32x32xf32> -> vector<32x32xf32>
    %218 = vector.broadcast %207 : vector<1x32xf32> to vector<32x32xf32>
    %219 = arith.addf %217, %218 : vector<32x32xf32>
    %cst_68 = arith.constant dense<0.000000e+00> : vector<32x32xf32>
    %220 = tpu.matmul %204, %209, %cst_68 {dimension_numbers = #tpu.dot_dimension_numbers<[1], [0], [0], [1], [0, 0, 1, 1], [], []>} : vector<32x32xf32>, vector<32x32xf32>, vector<32x32xf32> -> vector<32x32xf32>
    %221 = vector.broadcast %210 : vector<1x32xf32> to vector<32x32xf32>
    %222 = arith.addf %220, %221 : vector<32x32xf32>
    %cst_69 = arith.constant dense<0.000000e+00> : vector<32x32xf32>
    %223 = tpu.matmul %204, %212, %cst_69 {dimension_numbers = #tpu.dot_dimension_numbers<[1], [0], [0], [1], [0, 0, 1, 1], [], []>} : vector<32x32xf32>, vector<32x32xf32>, vector<32x32xf32> -> vector<32x32xf32>
    %224 = vector.broadcast %213 : vector<1x32xf32> to vector<32x32xf32>
    %225 = arith.addf %223, %224 : vector<32x32xf32>
    %cst_70 = arith.constant 0.000000e+00 : f32
    %226 = vector.broadcast %cst_70 : f32 to vector<32x32xf32>
    %227 = vector.broadcast %8 : vector<1x32xf32> to vector<32x32xf32>
    %228 = arith.mulf %219, %227 : vector<32x32xf32>
    %cst_71 = arith.constant dense<0.000000e+00> : vector<32x32xf32>
    %229 = tpu.matmul %228, %222, %cst_71 {dimension_numbers = #tpu.dot_dimension_numbers<[1], [1], [0], [0], [0, 0, 1, 0], [], []>} : vector<32x32xf32>, vector<32x32xf32>, vector<32x32xf32> -> vector<32x32xf32>
    %cst_72 = arith.constant -1.000000e+30 : f32
    %230 = vector.broadcast %cst_72 : f32 to vector<32x32xf32>
    %231 = arith.select %93, %229, %230 : vector<32x32xi1>, vector<32x32xf32>
    %cst_73 = arith.constant dense<0xFF800000> : vector<32xf32>
    %232 = vector.multi_reduction <maximumf>, %231, %cst_73 [1] : vector<32x32xf32> to vector<32xf32>
    %233 = vector.shape_cast %232 : vector<32xf32> to vector<32x1xf32>
    %234 = vector.broadcast %233 : vector<32x1xf32> to vector<32x32xf32>
    %235 = arith.subf %231, %234 : vector<32x32xf32>
    %236 = math.exp %235 : vector<32x32xf32>
    %cst_74 = arith.constant dense<0.000000e+00> : vector<32xf32>
    %237 = vector.multi_reduction <add>, %236, %cst_74 [1] : vector<32x32xf32> to vector<32xf32>
    %238 = vector.shape_cast %237 : vector<32xf32> to vector<32x1xf32>
    %239 = tpu.reciprocal %238 {approx = true} : vector<32x1xf32> -> vector<32x1xf32>
    %240 = vector.broadcast %239 : vector<32x1xf32> to vector<32x32xf32>
    %241 = arith.mulf %236, %240 : vector<32x32xf32>
    %242 = vector.broadcast %8 : vector<1x32xf32> to vector<32x32xf32>
    %243 = arith.mulf %225, %242 : vector<32x32xf32>
    %cst_75 = arith.constant dense<0.000000e+00> : vector<32x32xf32>
    %244 = tpu.matmul %241, %243, %cst_75 {dimension_numbers = #tpu.dot_dimension_numbers<[1], [0], [0], [1], [0, 0, 1, 1], [], []>} : vector<32x32xf32>, vector<32x32xf32>, vector<32x32xf32> -> vector<32x32xf32>
    %245 = arith.addf %226, %244 : vector<32x32xf32>
    %246 = vector.broadcast %15 : vector<1x32xf32> to vector<32x32xf32>
    %247 = arith.mulf %219, %246 : vector<32x32xf32>
    %cst_76 = arith.constant dense<0.000000e+00> : vector<32x32xf32>
    %248 = tpu.matmul %247, %222, %cst_76 {dimension_numbers = #tpu.dot_dimension_numbers<[1], [1], [0], [0], [0, 0, 1, 0], [], []>} : vector<32x32xf32>, vector<32x32xf32>, vector<32x32xf32> -> vector<32x32xf32>
    %cst_77 = arith.constant -1.000000e+30 : f32
    %249 = vector.broadcast %cst_77 : f32 to vector<32x32xf32>
    %250 = arith.select %93, %248, %249 : vector<32x32xi1>, vector<32x32xf32>
    %cst_78 = arith.constant dense<0xFF800000> : vector<32xf32>
    %251 = vector.multi_reduction <maximumf>, %250, %cst_78 [1] : vector<32x32xf32> to vector<32xf32>
    %252 = vector.shape_cast %251 : vector<32xf32> to vector<32x1xf32>
    %253 = vector.broadcast %252 : vector<32x1xf32> to vector<32x32xf32>
    %254 = arith.subf %250, %253 : vector<32x32xf32>
    %255 = math.exp %254 : vector<32x32xf32>
    %cst_79 = arith.constant dense<0.000000e+00> : vector<32xf32>
    %256 = vector.multi_reduction <add>, %255, %cst_79 [1] : vector<32x32xf32> to vector<32xf32>
    %257 = vector.shape_cast %256 : vector<32xf32> to vector<32x1xf32>
    %258 = tpu.reciprocal %257 {approx = true} : vector<32x1xf32> -> vector<32x1xf32>
    %259 = vector.broadcast %258 : vector<32x1xf32> to vector<32x32xf32>
    %260 = arith.mulf %255, %259 : vector<32x32xf32>
    %261 = vector.broadcast %15 : vector<1x32xf32> to vector<32x32xf32>
    %262 = arith.mulf %225, %261 : vector<32x32xf32>
    %cst_80 = arith.constant dense<0.000000e+00> : vector<32x32xf32>
    %263 = tpu.matmul %260, %262, %cst_80 {dimension_numbers = #tpu.dot_dimension_numbers<[1], [0], [0], [1], [0, 0, 1, 1], [], []>} : vector<32x32xf32>, vector<32x32xf32>, vector<32x32xf32> -> vector<32x32xf32>
    %264 = arith.addf %245, %263 : vector<32x32xf32>
    %265 = vector.broadcast %22 : vector<1x32xf32> to vector<32x32xf32>
    %266 = arith.mulf %219, %265 : vector<32x32xf32>
    %cst_81 = arith.constant dense<0.000000e+00> : vector<32x32xf32>
    %267 = tpu.matmul %266, %222, %cst_81 {dimension_numbers = #tpu.dot_dimension_numbers<[1], [1], [0], [0], [0, 0, 1, 0], [], []>} : vector<32x32xf32>, vector<32x32xf32>, vector<32x32xf32> -> vector<32x32xf32>
    %cst_82 = arith.constant -1.000000e+30 : f32
    %268 = vector.broadcast %cst_82 : f32 to vector<32x32xf32>
    %269 = arith.select %93, %267, %268 : vector<32x32xi1>, vector<32x32xf32>
    %cst_83 = arith.constant dense<0xFF800000> : vector<32xf32>
    %270 = vector.multi_reduction <maximumf>, %269, %cst_83 [1] : vector<32x32xf32> to vector<32xf32>
    %271 = vector.shape_cast %270 : vector<32xf32> to vector<32x1xf32>
    %272 = vector.broadcast %271 : vector<32x1xf32> to vector<32x32xf32>
    %273 = arith.subf %269, %272 : vector<32x32xf32>
    %274 = math.exp %273 : vector<32x32xf32>
    %cst_84 = arith.constant dense<0.000000e+00> : vector<32xf32>
    %275 = vector.multi_reduction <add>, %274, %cst_84 [1] : vector<32x32xf32> to vector<32xf32>
    %276 = vector.shape_cast %275 : vector<32xf32> to vector<32x1xf32>
    %277 = tpu.reciprocal %276 {approx = true} : vector<32x1xf32> -> vector<32x1xf32>
    %278 = vector.broadcast %277 : vector<32x1xf32> to vector<32x32xf32>
    %279 = arith.mulf %274, %278 : vector<32x32xf32>
    %280 = vector.broadcast %22 : vector<1x32xf32> to vector<32x32xf32>
    %281 = arith.mulf %225, %280 : vector<32x32xf32>
    %cst_85 = arith.constant dense<0.000000e+00> : vector<32x32xf32>
    %282 = tpu.matmul %279, %281, %cst_85 {dimension_numbers = #tpu.dot_dimension_numbers<[1], [0], [0], [1], [0, 0, 1, 1], [], []>} : vector<32x32xf32>, vector<32x32xf32>, vector<32x32xf32> -> vector<32x32xf32>
    %283 = arith.addf %264, %282 : vector<32x32xf32>
    %284 = vector.broadcast %29 : vector<1x32xf32> to vector<32x32xf32>
    %285 = arith.mulf %219, %284 : vector<32x32xf32>
    %cst_86 = arith.constant dense<0.000000e+00> : vector<32x32xf32>
    %286 = tpu.matmul %285, %222, %cst_86 {dimension_numbers = #tpu.dot_dimension_numbers<[1], [1], [0], [0], [0, 0, 1, 0], [], []>} : vector<32x32xf32>, vector<32x32xf32>, vector<32x32xf32> -> vector<32x32xf32>
    %cst_87 = arith.constant -1.000000e+30 : f32
    %287 = vector.broadcast %cst_87 : f32 to vector<32x32xf32>
    %288 = arith.select %93, %286, %287 : vector<32x32xi1>, vector<32x32xf32>
    %cst_88 = arith.constant dense<0xFF800000> : vector<32xf32>
    %289 = vector.multi_reduction <maximumf>, %288, %cst_88 [1] : vector<32x32xf32> to vector<32xf32>
    %290 = vector.shape_cast %289 : vector<32xf32> to vector<32x1xf32>
    %291 = vector.broadcast %290 : vector<32x1xf32> to vector<32x32xf32>
    %292 = arith.subf %288, %291 : vector<32x32xf32>
    %293 = math.exp %292 : vector<32x32xf32>
    %cst_89 = arith.constant dense<0.000000e+00> : vector<32xf32>
    %294 = vector.multi_reduction <add>, %293, %cst_89 [1] : vector<32x32xf32> to vector<32xf32>
    %295 = vector.shape_cast %294 : vector<32xf32> to vector<32x1xf32>
    %296 = tpu.reciprocal %295 {approx = true} : vector<32x1xf32> -> vector<32x1xf32>
    %297 = vector.broadcast %296 : vector<32x1xf32> to vector<32x32xf32>
    %298 = arith.mulf %293, %297 : vector<32x32xf32>
    %299 = vector.broadcast %29 : vector<1x32xf32> to vector<32x32xf32>
    %300 = arith.mulf %225, %299 : vector<32x32xf32>
    %cst_90 = arith.constant dense<0.000000e+00> : vector<32x32xf32>
    %301 = tpu.matmul %298, %300, %cst_90 {dimension_numbers = #tpu.dot_dimension_numbers<[1], [0], [0], [1], [0, 0, 1, 1], [], []>} : vector<32x32xf32>, vector<32x32xf32>, vector<32x32xf32> -> vector<32x32xf32>
    %302 = arith.addf %283, %301 : vector<32x32xf32>
    %cst_91 = arith.constant dense<0.000000e+00> : vector<32x32xf32>
    %303 = tpu.matmul %302, %215, %cst_91 {dimension_numbers = #tpu.dot_dimension_numbers<[1], [0], [0], [1], [0, 0, 1, 1], [], []>} : vector<32x32xf32>, vector<32x32xf32>, vector<32x32xf32> -> vector<32x32xf32>
    %304 = vector.broadcast %216 : vector<1x32xf32> to vector<32x32xf32>
    %305 = arith.addf %303, %304 : vector<32x32xf32>
    %306 = arith.addf %204, %305 : vector<32x32xf32>
    %307 = vector.extract_strided_slice %0 {offsets = [21, 0], sizes = [1, 32], strides = [1, 1]} : vector<39x128xf32> to vector<1x32xf32>
    %308 = vector.extract_strided_slice %0 {offsets = [22, 0], sizes = [1, 32], strides = [1, 1]} : vector<39x128xf32> to vector<1x32xf32>
    %cst_92 = arith.constant dense<0.000000e+00> : vector<32xf32>
    %309 = vector.multi_reduction <add>, %306, %cst_92 [1] : vector<32x32xf32> to vector<32xf32>
    %310 = vector.shape_cast %309 : vector<32xf32> to vector<32x1xf32>
    %cst_93 = arith.constant 3.200000e+01 : f32
    %311 = vector.broadcast %cst_93 : f32 to vector<32x1xf32>
    %312 = arith.divf %310, %311 : vector<32x1xf32>
    %313 = vector.broadcast %312 : vector<32x1xf32> to vector<32x32xf32>
    %314 = arith.subf %306, %313 : vector<32x32xf32>
    %315 = arith.mulf %314, %314 : vector<32x32xf32>
    %cst_94 = arith.constant dense<0.000000e+00> : vector<32xf32>
    %316 = vector.multi_reduction <add>, %315, %cst_94 [1] : vector<32x32xf32> to vector<32xf32>
    %317 = vector.shape_cast %316 : vector<32xf32> to vector<32x1xf32>
    %cst_95 = arith.constant 3.200000e+01 : f32
    %318 = vector.broadcast %cst_95 : f32 to vector<32x1xf32>
    %319 = arith.divf %317, %318 : vector<32x1xf32>
    %320 = vector.broadcast %312 : vector<32x1xf32> to vector<32x32xf32>
    %321 = arith.subf %306, %320 : vector<32x32xf32>
    %cst_96 = arith.constant 9.99999974E-6 : f32
    %322 = vector.broadcast %cst_96 : f32 to vector<32x1xf32>
    %323 = arith.addf %319, %322 : vector<32x1xf32>
    %324 = math.rsqrt %323 : vector<32x1xf32>
    %325 = vector.broadcast %324 : vector<32x1xf32> to vector<32x32xf32>
    %326 = arith.mulf %321, %325 : vector<32x32xf32>
    %327 = vector.broadcast %307 : vector<1x32xf32> to vector<32x32xf32>
    %328 = arith.mulf %326, %327 : vector<32x32xf32>
    %329 = vector.broadcast %308 : vector<1x32xf32> to vector<32x32xf32>
    %330 = arith.addf %328, %329 : vector<32x32xf32>
    %c0_97 = arith.constant 0 : index
    %c0_98 = arith.constant 0 : index
    %c0_99 = arith.constant 0 : index
    %331 = vector.load %arg4[%c0_97, %c0_98, %c0_99] : memref<2x32x128xf32, #tpu.memory_space<vmem>>, vector<1x32x128xf32>
    %332 = vector.shape_cast %331 : vector<1x32x128xf32> to vector<32x128xf32>
    %cst_100 = arith.constant dense<0.000000e+00> : vector<32x128xf32>
    %333 = tpu.matmul %330, %332, %cst_100 {dimension_numbers = #tpu.dot_dimension_numbers<[1], [0], [0], [1], [0, 0, 1, 1], [], []>} : vector<32x32xf32>, vector<32x128xf32>, vector<32x128xf32> -> vector<32x128xf32>
    %334 = vector.extract_strided_slice %0 {offsets = [23, 0], sizes = [1, 128], strides = [1, 1]} : vector<39x128xf32> to vector<1x128xf32>
    %335 = vector.broadcast %334 : vector<1x128xf32> to vector<32x128xf32>
    %336 = arith.addf %333, %335 : vector<32x128xf32>
    %cst_101 = arith.constant 0.000000e+00 : f32
    %337 = vector.broadcast %cst_101 : f32 to vector<32x128xf32>
    %338 = arith.maximumf %336, %337 : vector<32x128xf32>
    %c0_102 = arith.constant 0 : index
    %c0_103 = arith.constant 0 : index
    %c0_104 = arith.constant 0 : index
    %339 = vector.load %arg5[%c0_102, %c0_103, %c0_104] : memref<2x128x32xf32, #tpu.memory_space<vmem>>, vector<1x128x32xf32>
    %340 = vector.shape_cast %339 : vector<1x128x32xf32> to vector<128x32xf32>
    %cst_105 = arith.constant dense<0.000000e+00> : vector<32x32xf32>
    %341 = tpu.matmul %338, %340, %cst_105 {dimension_numbers = #tpu.dot_dimension_numbers<[1], [0], [0], [1], [0, 0, 1, 1], [], []>} : vector<32x128xf32>, vector<128x32xf32>, vector<32x32xf32> -> vector<32x32xf32>
    %342 = vector.extract_strided_slice %0 {offsets = [24, 0], sizes = [1, 32], strides = [1, 1]} : vector<39x128xf32> to vector<1x32xf32>
    %343 = vector.broadcast %342 : vector<1x32xf32> to vector<32x32xf32>
    %344 = arith.addf %341, %343 : vector<32x32xf32>
    %345 = arith.addf %330, %344 : vector<32x32xf32>
    %346 = vector.extract_strided_slice %0 {offsets = [25, 0], sizes = [1, 32], strides = [1, 1]} : vector<39x128xf32> to vector<1x32xf32>
    %347 = vector.extract_strided_slice %0 {offsets = [26, 0], sizes = [1, 32], strides = [1, 1]} : vector<39x128xf32> to vector<1x32xf32>
    %cst_106 = arith.constant dense<0.000000e+00> : vector<32xf32>
    %348 = vector.multi_reduction <add>, %345, %cst_106 [1] : vector<32x32xf32> to vector<32xf32>
    %349 = vector.shape_cast %348 : vector<32xf32> to vector<32x1xf32>
    %cst_107 = arith.constant 3.200000e+01 : f32
    %350 = vector.broadcast %cst_107 : f32 to vector<32x1xf32>
    %351 = arith.divf %349, %350 : vector<32x1xf32>
    %352 = vector.broadcast %351 : vector<32x1xf32> to vector<32x32xf32>
    %353 = arith.subf %345, %352 : vector<32x32xf32>
    %354 = arith.mulf %353, %353 : vector<32x32xf32>
    %cst_108 = arith.constant dense<0.000000e+00> : vector<32xf32>
    %355 = vector.multi_reduction <add>, %354, %cst_108 [1] : vector<32x32xf32> to vector<32xf32>
    %356 = vector.shape_cast %355 : vector<32xf32> to vector<32x1xf32>
    %cst_109 = arith.constant 3.200000e+01 : f32
    %357 = vector.broadcast %cst_109 : f32 to vector<32x1xf32>
    %358 = arith.divf %356, %357 : vector<32x1xf32>
    %359 = vector.broadcast %351 : vector<32x1xf32> to vector<32x32xf32>
    %360 = arith.subf %345, %359 : vector<32x32xf32>
    %cst_110 = arith.constant 9.99999974E-6 : f32
    %361 = vector.broadcast %cst_110 : f32 to vector<32x1xf32>
    %362 = arith.addf %358, %361 : vector<32x1xf32>
    %363 = math.rsqrt %362 : vector<32x1xf32>
    %364 = vector.broadcast %363 : vector<32x1xf32> to vector<32x32xf32>
    %365 = arith.mulf %360, %364 : vector<32x32xf32>
    %366 = vector.broadcast %346 : vector<1x32xf32> to vector<32x32xf32>
    %367 = arith.mulf %365, %366 : vector<32x32xf32>
    %368 = vector.broadcast %347 : vector<1x32xf32> to vector<32x32xf32>
    %369 = arith.addf %367, %368 : vector<32x32xf32>
    %c8 = arith.constant 8 : index
    %c0_111 = arith.constant 0 : index
    %c0_112 = arith.constant 0 : index
    %370 = vector.load %arg3[%c8, %c0_111, %c0_112] : memref<12x32x32xf32, #tpu.memory_space<vmem>>, vector<1x32x32xf32>
    %371 = vector.shape_cast %370 : vector<1x32x32xf32> to vector<32x32xf32>
    %372 = vector.extract_strided_slice %0 {offsets = [27, 0], sizes = [1, 32], strides = [1, 1]} : vector<39x128xf32> to vector<1x32xf32>
    %c9 = arith.constant 9 : index
    %c0_113 = arith.constant 0 : index
    %c0_114 = arith.constant 0 : index
    %373 = vector.load %arg3[%c9, %c0_113, %c0_114] : memref<12x32x32xf32, #tpu.memory_space<vmem>>, vector<1x32x32xf32>
    %374 = vector.shape_cast %373 : vector<1x32x32xf32> to vector<32x32xf32>
    %375 = vector.extract_strided_slice %0 {offsets = [28, 0], sizes = [1, 32], strides = [1, 1]} : vector<39x128xf32> to vector<1x32xf32>
    %c10 = arith.constant 10 : index
    %c0_115 = arith.constant 0 : index
    %c0_116 = arith.constant 0 : index
    %376 = vector.load %arg3[%c10, %c0_115, %c0_116] : memref<12x32x32xf32, #tpu.memory_space<vmem>>, vector<1x32x32xf32>
    %377 = vector.shape_cast %376 : vector<1x32x32xf32> to vector<32x32xf32>
    %378 = vector.extract_strided_slice %0 {offsets = [29, 0], sizes = [1, 32], strides = [1, 1]} : vector<39x128xf32> to vector<1x32xf32>
    %c11 = arith.constant 11 : index
    %c0_117 = arith.constant 0 : index
    %c0_118 = arith.constant 0 : index
    %379 = vector.load %arg3[%c11, %c0_117, %c0_118] : memref<12x32x32xf32, #tpu.memory_space<vmem>>, vector<1x32x32xf32>
    %380 = vector.shape_cast %379 : vector<1x32x32xf32> to vector<32x32xf32>
    %381 = vector.extract_strided_slice %0 {offsets = [30, 0], sizes = [1, 32], strides = [1, 1]} : vector<39x128xf32> to vector<1x32xf32>
    %cst_119 = arith.constant dense<0.000000e+00> : vector<32x32xf32>
    %382 = tpu.matmul %369, %371, %cst_119 {dimension_numbers = #tpu.dot_dimension_numbers<[1], [0], [0], [1], [0, 0, 1, 1], [], []>} : vector<32x32xf32>, vector<32x32xf32>, vector<32x32xf32> -> vector<32x32xf32>
    %383 = vector.broadcast %372 : vector<1x32xf32> to vector<32x32xf32>
    %384 = arith.addf %382, %383 : vector<32x32xf32>
    %cst_120 = arith.constant dense<0.000000e+00> : vector<32x32xf32>
    %385 = tpu.matmul %369, %374, %cst_120 {dimension_numbers = #tpu.dot_dimension_numbers<[1], [0], [0], [1], [0, 0, 1, 1], [], []>} : vector<32x32xf32>, vector<32x32xf32>, vector<32x32xf32> -> vector<32x32xf32>
    %386 = vector.broadcast %375 : vector<1x32xf32> to vector<32x32xf32>
    %387 = arith.addf %385, %386 : vector<32x32xf32>
    %cst_121 = arith.constant dense<0.000000e+00> : vector<32x32xf32>
    %388 = tpu.matmul %369, %377, %cst_121 {dimension_numbers = #tpu.dot_dimension_numbers<[1], [0], [0], [1], [0, 0, 1, 1], [], []>} : vector<32x32xf32>, vector<32x32xf32>, vector<32x32xf32> -> vector<32x32xf32>
    %389 = vector.broadcast %378 : vector<1x32xf32> to vector<32x32xf32>
    %390 = arith.addf %388, %389 : vector<32x32xf32>
    %cst_122 = arith.constant 0.000000e+00 : f32
    %391 = vector.broadcast %cst_122 : f32 to vector<32x32xf32>
    %392 = vector.broadcast %8 : vector<1x32xf32> to vector<32x32xf32>
    %393 = arith.mulf %384, %392 : vector<32x32xf32>
    %cst_123 = arith.constant dense<0.000000e+00> : vector<32x32xf32>
    %394 = tpu.matmul %393, %387, %cst_123 {dimension_numbers = #tpu.dot_dimension_numbers<[1], [1], [0], [0], [0, 0, 1, 0], [], []>} : vector<32x32xf32>, vector<32x32xf32>, vector<32x32xf32> -> vector<32x32xf32>
    %cst_124 = arith.constant -1.000000e+30 : f32
    %395 = vector.broadcast %cst_124 : f32 to vector<32x32xf32>
    %396 = arith.select %93, %394, %395 : vector<32x32xi1>, vector<32x32xf32>
    %cst_125 = arith.constant dense<0xFF800000> : vector<32xf32>
    %397 = vector.multi_reduction <maximumf>, %396, %cst_125 [1] : vector<32x32xf32> to vector<32xf32>
    %398 = vector.shape_cast %397 : vector<32xf32> to vector<32x1xf32>
    %399 = vector.broadcast %398 : vector<32x1xf32> to vector<32x32xf32>
    %400 = arith.subf %396, %399 : vector<32x32xf32>
    %401 = math.exp %400 : vector<32x32xf32>
    %cst_126 = arith.constant dense<0.000000e+00> : vector<32xf32>
    %402 = vector.multi_reduction <add>, %401, %cst_126 [1] : vector<32x32xf32> to vector<32xf32>
    %403 = vector.shape_cast %402 : vector<32xf32> to vector<32x1xf32>
    %404 = tpu.reciprocal %403 {approx = true} : vector<32x1xf32> -> vector<32x1xf32>
    %405 = vector.broadcast %404 : vector<32x1xf32> to vector<32x32xf32>
    %406 = arith.mulf %401, %405 : vector<32x32xf32>
    %407 = vector.broadcast %8 : vector<1x32xf32> to vector<32x32xf32>
    %408 = arith.mulf %390, %407 : vector<32x32xf32>
    %cst_127 = arith.constant dense<0.000000e+00> : vector<32x32xf32>
    %409 = tpu.matmul %406, %408, %cst_127 {dimension_numbers = #tpu.dot_dimension_numbers<[1], [0], [0], [1], [0, 0, 1, 1], [], []>} : vector<32x32xf32>, vector<32x32xf32>, vector<32x32xf32> -> vector<32x32xf32>
    %410 = arith.addf %391, %409 : vector<32x32xf32>
    %411 = vector.broadcast %15 : vector<1x32xf32> to vector<32x32xf32>
    %412 = arith.mulf %384, %411 : vector<32x32xf32>
    %cst_128 = arith.constant dense<0.000000e+00> : vector<32x32xf32>
    %413 = tpu.matmul %412, %387, %cst_128 {dimension_numbers = #tpu.dot_dimension_numbers<[1], [1], [0], [0], [0, 0, 1, 0], [], []>} : vector<32x32xf32>, vector<32x32xf32>, vector<32x32xf32> -> vector<32x32xf32>
    %cst_129 = arith.constant -1.000000e+30 : f32
    %414 = vector.broadcast %cst_129 : f32 to vector<32x32xf32>
    %415 = arith.select %93, %413, %414 : vector<32x32xi1>, vector<32x32xf32>
    %cst_130 = arith.constant dense<0xFF800000> : vector<32xf32>
    %416 = vector.multi_reduction <maximumf>, %415, %cst_130 [1] : vector<32x32xf32> to vector<32xf32>
    %417 = vector.shape_cast %416 : vector<32xf32> to vector<32x1xf32>
    %418 = vector.broadcast %417 : vector<32x1xf32> to vector<32x32xf32>
    %419 = arith.subf %415, %418 : vector<32x32xf32>
    %420 = math.exp %419 : vector<32x32xf32>
    %cst_131 = arith.constant dense<0.000000e+00> : vector<32xf32>
    %421 = vector.multi_reduction <add>, %420, %cst_131 [1] : vector<32x32xf32> to vector<32xf32>
    %422 = vector.shape_cast %421 : vector<32xf32> to vector<32x1xf32>
    %423 = tpu.reciprocal %422 {approx = true} : vector<32x1xf32> -> vector<32x1xf32>
    %424 = vector.broadcast %423 : vector<32x1xf32> to vector<32x32xf32>
    %425 = arith.mulf %420, %424 : vector<32x32xf32>
    %426 = vector.broadcast %15 : vector<1x32xf32> to vector<32x32xf32>
    %427 = arith.mulf %390, %426 : vector<32x32xf32>
    %cst_132 = arith.constant dense<0.000000e+00> : vector<32x32xf32>
    %428 = tpu.matmul %425, %427, %cst_132 {dimension_numbers = #tpu.dot_dimension_numbers<[1], [0], [0], [1], [0, 0, 1, 1], [], []>} : vector<32x32xf32>, vector<32x32xf32>, vector<32x32xf32> -> vector<32x32xf32>
    %429 = arith.addf %410, %428 : vector<32x32xf32>
    %430 = vector.broadcast %22 : vector<1x32xf32> to vector<32x32xf32>
    %431 = arith.mulf %384, %430 : vector<32x32xf32>
    %cst_133 = arith.constant dense<0.000000e+00> : vector<32x32xf32>
    %432 = tpu.matmul %431, %387, %cst_133 {dimension_numbers = #tpu.dot_dimension_numbers<[1], [1], [0], [0], [0, 0, 1, 0], [], []>} : vector<32x32xf32>, vector<32x32xf32>, vector<32x32xf32> -> vector<32x32xf32>
    %cst_134 = arith.constant -1.000000e+30 : f32
    %433 = vector.broadcast %cst_134 : f32 to vector<32x32xf32>
    %434 = arith.select %93, %432, %433 : vector<32x32xi1>, vector<32x32xf32>
    %cst_135 = arith.constant dense<0xFF800000> : vector<32xf32>
    %435 = vector.multi_reduction <maximumf>, %434, %cst_135 [1] : vector<32x32xf32> to vector<32xf32>
    %436 = vector.shape_cast %435 : vector<32xf32> to vector<32x1xf32>
    %437 = vector.broadcast %436 : vector<32x1xf32> to vector<32x32xf32>
    %438 = arith.subf %434, %437 : vector<32x32xf32>
    %439 = math.exp %438 : vector<32x32xf32>
    %cst_136 = arith.constant dense<0.000000e+00> : vector<32xf32>
    %440 = vector.multi_reduction <add>, %439, %cst_136 [1] : vector<32x32xf32> to vector<32xf32>
    %441 = vector.shape_cast %440 : vector<32xf32> to vector<32x1xf32>
    %442 = tpu.reciprocal %441 {approx = true} : vector<32x1xf32> -> vector<32x1xf32>
    %443 = vector.broadcast %442 : vector<32x1xf32> to vector<32x32xf32>
    %444 = arith.mulf %439, %443 : vector<32x32xf32>
    %445 = vector.broadcast %22 : vector<1x32xf32> to vector<32x32xf32>
    %446 = arith.mulf %390, %445 : vector<32x32xf32>
    %cst_137 = arith.constant dense<0.000000e+00> : vector<32x32xf32>
    %447 = tpu.matmul %444, %446, %cst_137 {dimension_numbers = #tpu.dot_dimension_numbers<[1], [0], [0], [1], [0, 0, 1, 1], [], []>} : vector<32x32xf32>, vector<32x32xf32>, vector<32x32xf32> -> vector<32x32xf32>
    %448 = arith.addf %429, %447 : vector<32x32xf32>
    %449 = vector.broadcast %29 : vector<1x32xf32> to vector<32x32xf32>
    %450 = arith.mulf %384, %449 : vector<32x32xf32>
    %cst_138 = arith.constant dense<0.000000e+00> : vector<32x32xf32>
    %451 = tpu.matmul %450, %387, %cst_138 {dimension_numbers = #tpu.dot_dimension_numbers<[1], [1], [0], [0], [0, 0, 1, 0], [], []>} : vector<32x32xf32>, vector<32x32xf32>, vector<32x32xf32> -> vector<32x32xf32>
    %cst_139 = arith.constant -1.000000e+30 : f32
    %452 = vector.broadcast %cst_139 : f32 to vector<32x32xf32>
    %453 = arith.select %93, %451, %452 : vector<32x32xi1>, vector<32x32xf32>
    %cst_140 = arith.constant dense<0xFF800000> : vector<32xf32>
    %454 = vector.multi_reduction <maximumf>, %453, %cst_140 [1] : vector<32x32xf32> to vector<32xf32>
    %455 = vector.shape_cast %454 : vector<32xf32> to vector<32x1xf32>
    %456 = vector.broadcast %455 : vector<32x1xf32> to vector<32x32xf32>
    %457 = arith.subf %453, %456 : vector<32x32xf32>
    %458 = math.exp %457 : vector<32x32xf32>
    %cst_141 = arith.constant dense<0.000000e+00> : vector<32xf32>
    %459 = vector.multi_reduction <add>, %458, %cst_141 [1] : vector<32x32xf32> to vector<32xf32>
    %460 = vector.shape_cast %459 : vector<32xf32> to vector<32x1xf32>
    %461 = tpu.reciprocal %460 {approx = true} : vector<32x1xf32> -> vector<32x1xf32>
    %462 = vector.broadcast %461 : vector<32x1xf32> to vector<32x32xf32>
    %463 = arith.mulf %458, %462 : vector<32x32xf32>
    %464 = vector.broadcast %29 : vector<1x32xf32> to vector<32x32xf32>
    %465 = arith.mulf %390, %464 : vector<32x32xf32>
    %cst_142 = arith.constant dense<0.000000e+00> : vector<32x32xf32>
    %466 = tpu.matmul %463, %465, %cst_142 {dimension_numbers = #tpu.dot_dimension_numbers<[1], [0], [0], [1], [0, 0, 1, 1], [], []>} : vector<32x32xf32>, vector<32x32xf32>, vector<32x32xf32> -> vector<32x32xf32>
    %467 = arith.addf %448, %466 : vector<32x32xf32>
    %cst_143 = arith.constant dense<0.000000e+00> : vector<32x32xf32>
    %468 = tpu.matmul %467, %380, %cst_143 {dimension_numbers = #tpu.dot_dimension_numbers<[1], [0], [0], [1], [0, 0, 1, 1], [], []>} : vector<32x32xf32>, vector<32x32xf32>, vector<32x32xf32> -> vector<32x32xf32>
    %469 = vector.broadcast %381 : vector<1x32xf32> to vector<32x32xf32>
    %470 = arith.addf %468, %469 : vector<32x32xf32>
    %471 = arith.addf %369, %470 : vector<32x32xf32>
    %472 = vector.extract_strided_slice %0 {offsets = [31, 0], sizes = [1, 32], strides = [1, 1]} : vector<39x128xf32> to vector<1x32xf32>
    %473 = vector.extract_strided_slice %0 {offsets = [32, 0], sizes = [1, 32], strides = [1, 1]} : vector<39x128xf32> to vector<1x32xf32>
    %cst_144 = arith.constant dense<0.000000e+00> : vector<32xf32>
    %474 = vector.multi_reduction <add>, %471, %cst_144 [1] : vector<32x32xf32> to vector<32xf32>
    %475 = vector.shape_cast %474 : vector<32xf32> to vector<32x1xf32>
    %cst_145 = arith.constant 3.200000e+01 : f32
    %476 = vector.broadcast %cst_145 : f32 to vector<32x1xf32>
    %477 = arith.divf %475, %476 : vector<32x1xf32>
    %478 = vector.broadcast %477 : vector<32x1xf32> to vector<32x32xf32>
    %479 = arith.subf %471, %478 : vector<32x32xf32>
    %480 = arith.mulf %479, %479 : vector<32x32xf32>
    %cst_146 = arith.constant dense<0.000000e+00> : vector<32xf32>
    %481 = vector.multi_reduction <add>, %480, %cst_146 [1] : vector<32x32xf32> to vector<32xf32>
    %482 = vector.shape_cast %481 : vector<32xf32> to vector<32x1xf32>
    %cst_147 = arith.constant 3.200000e+01 : f32
    %483 = vector.broadcast %cst_147 : f32 to vector<32x1xf32>
    %484 = arith.divf %482, %483 : vector<32x1xf32>
    %485 = vector.broadcast %477 : vector<32x1xf32> to vector<32x32xf32>
    %486 = arith.subf %471, %485 : vector<32x32xf32>
    %cst_148 = arith.constant 9.99999974E-6 : f32
    %487 = vector.broadcast %cst_148 : f32 to vector<32x1xf32>
    %488 = arith.addf %484, %487 : vector<32x1xf32>
    %489 = math.rsqrt %488 : vector<32x1xf32>
    %490 = vector.broadcast %489 : vector<32x1xf32> to vector<32x32xf32>
    %491 = arith.mulf %486, %490 : vector<32x32xf32>
    %492 = vector.broadcast %472 : vector<1x32xf32> to vector<32x32xf32>
    %493 = arith.mulf %491, %492 : vector<32x32xf32>
    %494 = vector.broadcast %473 : vector<1x32xf32> to vector<32x32xf32>
    %495 = arith.addf %493, %494 : vector<32x32xf32>
    %c1_149 = arith.constant 1 : index
    %c0_150 = arith.constant 0 : index
    %c0_151 = arith.constant 0 : index
    %496 = vector.load %arg4[%c1_149, %c0_150, %c0_151] : memref<2x32x128xf32, #tpu.memory_space<vmem>>, vector<1x32x128xf32>
    %497 = vector.shape_cast %496 : vector<1x32x128xf32> to vector<32x128xf32>
    %cst_152 = arith.constant dense<0.000000e+00> : vector<32x128xf32>
    %498 = tpu.matmul %495, %497, %cst_152 {dimension_numbers = #tpu.dot_dimension_numbers<[1], [0], [0], [1], [0, 0, 1, 1], [], []>} : vector<32x32xf32>, vector<32x128xf32>, vector<32x128xf32> -> vector<32x128xf32>
    %499 = vector.extract_strided_slice %0 {offsets = [33, 0], sizes = [1, 128], strides = [1, 1]} : vector<39x128xf32> to vector<1x128xf32>
    %500 = vector.broadcast %499 : vector<1x128xf32> to vector<32x128xf32>
    %501 = arith.addf %498, %500 : vector<32x128xf32>
    %cst_153 = arith.constant 0.000000e+00 : f32
    %502 = vector.broadcast %cst_153 : f32 to vector<32x128xf32>
    %503 = arith.maximumf %501, %502 : vector<32x128xf32>
    %c1_154 = arith.constant 1 : index
    %c0_155 = arith.constant 0 : index
    %c0_156 = arith.constant 0 : index
    %504 = vector.load %arg5[%c1_154, %c0_155, %c0_156] : memref<2x128x32xf32, #tpu.memory_space<vmem>>, vector<1x128x32xf32>
    %505 = vector.shape_cast %504 : vector<1x128x32xf32> to vector<128x32xf32>
    %cst_157 = arith.constant dense<0.000000e+00> : vector<32x32xf32>
    %506 = tpu.matmul %503, %505, %cst_157 {dimension_numbers = #tpu.dot_dimension_numbers<[1], [0], [0], [1], [0, 0, 1, 1], [], []>} : vector<32x128xf32>, vector<128x32xf32>, vector<32x32xf32> -> vector<32x32xf32>
    %507 = vector.extract_strided_slice %0 {offsets = [34, 0], sizes = [1, 32], strides = [1, 1]} : vector<39x128xf32> to vector<1x32xf32>
    %508 = vector.broadcast %507 : vector<1x32xf32> to vector<32x32xf32>
    %509 = arith.addf %506, %508 : vector<32x32xf32>
    %510 = arith.addf %495, %509 : vector<32x32xf32>
    %511 = vector.extract_strided_slice %0 {offsets = [35, 0], sizes = [1, 32], strides = [1, 1]} : vector<39x128xf32> to vector<1x32xf32>
    %512 = vector.extract_strided_slice %0 {offsets = [36, 0], sizes = [1, 32], strides = [1, 1]} : vector<39x128xf32> to vector<1x32xf32>
    %cst_158 = arith.constant dense<0.000000e+00> : vector<32xf32>
    %513 = vector.multi_reduction <add>, %510, %cst_158 [1] : vector<32x32xf32> to vector<32xf32>
    %514 = vector.shape_cast %513 : vector<32xf32> to vector<32x1xf32>
    %cst_159 = arith.constant 3.200000e+01 : f32
    %515 = vector.broadcast %cst_159 : f32 to vector<32x1xf32>
    %516 = arith.divf %514, %515 : vector<32x1xf32>
    %517 = vector.broadcast %516 : vector<32x1xf32> to vector<32x32xf32>
    %518 = arith.subf %510, %517 : vector<32x32xf32>
    %519 = arith.mulf %518, %518 : vector<32x32xf32>
    %cst_160 = arith.constant dense<0.000000e+00> : vector<32xf32>
    %520 = vector.multi_reduction <add>, %519, %cst_160 [1] : vector<32x32xf32> to vector<32xf32>
    %521 = vector.shape_cast %520 : vector<32xf32> to vector<32x1xf32>
    %cst_161 = arith.constant 3.200000e+01 : f32
    %522 = vector.broadcast %cst_161 : f32 to vector<32x1xf32>
    %523 = arith.divf %521, %522 : vector<32x1xf32>
    %524 = vector.broadcast %516 : vector<32x1xf32> to vector<32x32xf32>
    %525 = arith.subf %510, %524 : vector<32x32xf32>
    %cst_162 = arith.constant 9.99999974E-6 : f32
    %526 = vector.broadcast %cst_162 : f32 to vector<32x1xf32>
    %527 = arith.addf %523, %526 : vector<32x1xf32>
    %528 = math.rsqrt %527 : vector<32x1xf32>
    %529 = vector.broadcast %528 : vector<32x1xf32> to vector<32x32xf32>
    %530 = arith.mulf %525, %529 : vector<32x32xf32>
    %531 = vector.broadcast %511 : vector<1x32xf32> to vector<32x32xf32>
    %532 = arith.mulf %530, %531 : vector<32x32xf32>
    %533 = vector.broadcast %512 : vector<1x32xf32> to vector<32x32xf32>
    %534 = arith.addf %532, %533 : vector<32x32xf32>
    %535 = vector.extract_strided_slice %534 {offsets = [0, 0], sizes = [8, 32], strides = [1, 1]} : vector<32x32xf32> to vector<8x32xf32>
    %536 = vector.extract_strided_slice %534 {offsets = [8, 0], sizes = [8, 32], strides = [1, 1]} : vector<32x32xf32> to vector<8x32xf32>
    %537 = arith.addf %535, %536 : vector<8x32xf32>
    %538 = vector.extract_strided_slice %534 {offsets = [16, 0], sizes = [8, 32], strides = [1, 1]} : vector<32x32xf32> to vector<8x32xf32>
    %539 = arith.addf %537, %538 : vector<8x32xf32>
    %540 = vector.extract_strided_slice %534 {offsets = [24, 0], sizes = [8, 32], strides = [1, 1]} : vector<32x32xf32> to vector<8x32xf32>
    %541 = arith.addf %539, %540 : vector<8x32xf32>
    %cst_163 = arith.constant 2.500000e-01 : f32
    %542 = vector.broadcast %cst_163 : f32 to vector<8x32xf32>
    %543 = arith.mulf %541, %542 : vector<8x32xf32>
    %544 = vector.extract_strided_slice %0 {offsets = [37, 0], sizes = [1, 32], strides = [1, 1]} : vector<39x128xf32> to vector<1x32xf32>
    %cst_164 = arith.constant dense<0.000000e+00> : vector<1x8xf32>
    %545 = tpu.matmul %544, %543, %cst_164 {dimension_numbers = #tpu.dot_dimension_numbers<[1], [1], [0], [0], [0, 0, 1, 0], [], []>} : vector<1x32xf32>, vector<8x32xf32>, vector<1x8xf32> -> vector<1x8xf32>
    %546 = vector.extract_strided_slice %0 {offsets = [38, 0], sizes = [1, 1], strides = [1, 1]} : vector<39x128xf32> to vector<1x1xf32>
    %547 = vector.broadcast %546 : vector<1x1xf32> to vector<1x8xf32>
    %548 = arith.addf %545, %547 : vector<1x8xf32>
    %c0_165 = arith.constant 0 : index
    %c0_166 = arith.constant 0 : index
    %c0_167 = arith.constant 0 : index
    %549 = vector.load %arg6[%c0_165, %c0_166, %c0_167] : memref<1x1x8xf32, #tpu.memory_space<vmem>>, vector<1x1x8xf32>
    %550 = vector.shape_cast %549 : vector<1x1x8xf32> to vector<1x8xf32>
    %551 = vector.shape_cast %548 : vector<1x8xf32> to vector<1x1x8xf32>
    tpu.vector_store %arg6[%c0_165, %c0_166, %c0_167], %551 {strides = array<i32>} : memref<1x1x8xf32, #tpu.memory_space<vmem>>, vector<1x1x8xf32>,
    return
  }
  func.func @transform_0(%arg0: i32) -> (i32, i32, i32) {
    %c0_i32 = arith.constant 0 : i32
    %c0_i32_0 = arith.constant 0 : i32
    %c0_i32_1 = arith.constant 0 : i32
    return %arg0, %c0_i32, %c0_i32_0 : i32, i32, i32
  }
  func.func @transform_1(%arg0: i32) -> (i32, i32) {
    %c0_i32 = arith.constant 0 : i32
    %c0_i32_0 = arith.constant 0 : i32
    %c0_i32_1 = arith.constant 0 : i32
    return %c0_i32, %c0_i32_0 : i32, i32
  }
  func.func @transform_2(%arg0: i32) -> (i32, i32, i32) {
    %c0_i32 = arith.constant 0 : i32
    %c0_i32_0 = arith.constant 0 : i32
    %c0_i32_1 = arith.constant 0 : i32
    %c0_i32_2 = arith.constant 0 : i32
    return %c0_i32, %c0_i32_0, %c0_i32_1 : i32, i32, i32
  }
  func.func @transform_3(%arg0: i32) -> (i32, i32, i32) {
    %c0_i32 = arith.constant 0 : i32
    %c0_i32_0 = arith.constant 0 : i32
    %c0_i32_1 = arith.constant 0 : i32
    %c0_i32_2 = arith.constant 0 : i32
    return %c0_i32, %c0_i32_0, %c0_i32_1 : i32, i32, i32
  }
  func.func @transform_4(%arg0: i32) -> (i32, i32, i32) {
    %c0_i32 = arith.constant 0 : i32
    %c0_i32_0 = arith.constant 0 : i32
    %c0_i32_1 = arith.constant 0 : i32
    %c0_i32_2 = arith.constant 0 : i32
    return %c0_i32, %c0_i32_0, %c0_i32_1 : i32, i32, i32
  }
  func.func @transform_5(%arg0: i32) -> (i32, i32, i32) {
    %c0_i32 = arith.constant 0 : i32
    %c0_i32_0 = arith.constant 0 : i32
    %c0_i32_1 = arith.constant 0 : i32
    return %arg0, %c0_i32, %c0_i32_0 : i32, i32, i32
  }
}

</mosaic_0001>

<bundles_post_ra>
// kernel: market_transformer_forward.1
= control target key start
LH: loop header
LB: loop body
LE: loop exit
PB: predicated region body
PF: predicated region fallthrough
CT: control target
= control target key end

     0   :  { %10 = vsyncpa [#allocation3], 0  ;;  %s5441_s0 = inlined_call_operand.vmem [shape: f32[2,32,4], index: 0, kind: input, shape index: {}]   ;;  %s5442_s1 = inlined_call_operand.vmem [shape: f32[39,128], index: 1, kind: input, shape index: {}]   ;;  %s5443_s2 = inlined_call_operand.hbm [shape: f32[12,32,32], index: 2, kind: input, shape index: {}]   ;;  %s5444_s3 = inlined_call_operand.vmem [shape: f32[2,32,128], index: 3, kind: input, shape index: {}]   ;;  %s5445_s4 = inlined_call_operand.vmem [shape: f32[2,128,32], index: 4, kind: input, shape index: {}]   ;;  %s5446_s5 = inlined_call_operand.hbm [shape: f32[2,1,8], index: 5, kind: output, shape index: {}]  }
   0x1   :  { %11 = vsyncpa [#allocation4], 0 }
   0x2   :  { %13 = vsyncpa [#allocation4 + $0x1], 0  ;;  %s4065_s18 = smov 0   ;;  %s4067_s19 = smov 0  }
   0x3   :  { %s4069_s20 = smov 0   ;;  %s4071_s21 = smov 0  }
   0x4 LB: > { %s4086_s22 = sadd.s32 4294967295, %s4027_s21   ;;  %s3403_s23 = sadd.s32 4294967294, %s4027_s21   ;;  %s4027_s21 = sphi %s4071_s21, %s5650_s21   ;;  %s4023_s20 = sphi %s4069_s20, %s5649_s20   ;;  %s4019_s19 = sphi %s4067_s19, %s5648_s19   ;;  %s4015_s18 = sphi %s4065_s18, %s5647_s18  }
   0x5   : > { %s4090_s24 = sadd.s32 1, %s4027_s21   ;;  %s136_s25 = sadd.s32 1, %s4023_s20 }
   0x6   : > { %s133_s26 = ssub.s32 %s4027_s21, %s4090_s24  ;;  %p146_p0 = scmp.ne.s32.totalorder %s4023_s20, %s4019_s19 }
   0x7   : > { %p134_p1 = scmp.eq.s32.totalorder %s133_s26, 0  ;;  %p147_p2 = scmp.eq.s32.totalorder %s4086_s22, 1 }
   0x8   : > { %p152_p3 = scmp.ne.s32.totalorder %s4019_s19, %s4015_s18  ;;  %p153_p4 = scmp.eq.s32.totalorder %s3403_s23, 1 }
   0x9   : > { %s4101_s27 = scalar_select %p134_p1, %s4023_s20, %s136_s25  }
   0xa   : > { %p4103_p5 = por %p147_p2, %p146_p0  ;;  %p4107_p6 = por %p153_p4, %p152_p3 }
   0xb   : > { %p3404_p7 = scmp.ge.s32.totalorder %s4027_s21, 1  ;;  %p160_p8 = scmp.lt.s32.totalorder %s4027_s21, 3 }
   0xc   : > { %p3660_p9 = scmp.eq.s32.totalorder %s4086_s22, 0  ;;  %s174_s7 = sshll.u32 %s5443_s2, 4  ;;  %s175_s7 = int_to_ptr.hbm [resolvable:$true] %s174_s7 }
   0xd   : > { %p161_p10 = pnand %p3404_p7, %p160_p8  ;;  %s4029_s8 = smov [#allocation2]  }
   0xe   : > { %s176_s9 = sshll.u32 %s4029_s8, 4  ;;  %s4030_s10 = smov 128   ;;  %s177_s9 = int_to_ptr.vmem [resolvable:$true] %s176_s9 }
   0xf   : > { %p3652_p11 = pneg %p161_p10  ;;  %s4031_s11 = smov 8  }
  0x10   : > { %206 = sbr.rel (%p161_p10) target bundleno = 5637 (0x1605), region = 40 }
  0x11   : > { %p3653_p12 = pnand %p3660_p9, %p3652_p11 }
  0x13   : > { %3655 = dma.hbm_to_vmem [thread:$0]  (!%p3653_p12), %s175_s7, 6144, %s177_s9, [#allocation3], %s4030_s10, %s4030_s10, %s4031_s11  }
  0x15   : > { %4006 = dma.done.wait (%p3660_p9), [#allocation3], 6144  }
  0x16   : > { %4008 = vsyncadd (%p3660_p9), [#allocation3], 4294961152  ;;  %p234_p13 = scmp.lt.s32.totalorder %s4086_s22, 1  ;;  %vm425_vm0 = vcmask 1043456   ;;  %vm412_vm1 = vcmask 31744   ;;  %v239_v0 = vld [vmem:[%s5442_s1] sm:$0xff]  ;;  %v244_v38 = vlaneseq  ;;  %s3332_s23 = scalar_lea.hbm %s5446_s5, %s4086_s22 }
  0x17   : > { %3415 = vmatpush.msk.msra.mxu0 %vm425_vm0, %v239_v0  ;;  %3645 = vmatpush.msk.msra.mxu2 %vm425_vm0, %v239_v0  ;;  %v471_v3 = vld [vmem:[#allocation2 + $0x18] sm:$0xff]  ;;  %v470_v8 = vld [vmem:[#allocation2 + $0x10] sm:$0xff]  ;;  %v469_v11 = vld [vmem:[#allocation2 + $0x8] sm:$0xff]  ;;  %v460_v18 = vrot.slane %v239_v0, 5  ;;  %v411_v20 = vperm.slane %v239_v0, 4  ;;  %vm459_vm2 = vcmask 1042432  }
  0x18   : > { %s235_s12 = scalar_select %p234_p13, %s4086_s22, 1  ;;  %v476_v4 = vld [vmem:[#allocation2 + $0x38] sm:$0xff]  ;;  %513 = vmatpush.msra.mxu1 %v471_v3  ;;  %v475_v9 = vld [vmem:[#allocation2 + $0x30] sm:$0xff]  ;;  %v474_v12 = vld [vmem:[#allocation2 + $0x28] sm:$0xff]  ;;  %vm5449_vm3 = vcmask 261120   ;;  %v4154_v40 = vand.u32 127, %v244_v38 }
  0x19   : > { %v481_v5 = vld [vmem:[#allocation2 + $0x58] sm:$0xff]  ;;  %543 = vmatpush.msrb.mxu2 %v476_v4  ;;  %v480_v10 = vld [vmem:[#allocation2 + $0x50] sm:$0xff]  ;;  %v479_v13 = vld [vmem:[#allocation2 + $0x48] sm:$0xff]  ;;  %v4032_v51 = vmov 0.0   ;;  %s232_s15 = sand.u32 1, %s4019_s19   ;;  %s3336_s30 = sshll.u32 %s3332_s23, 4  ;;  %s3337_s30 = int_to_ptr.hbm [resolvable:$true] %s3336_s30 }
  0x1a   : > { %s3644_s13 = sshll.u32 %s235_s12, 5  ;;  %573 = vmatpush.msra.mxu3 %v481_v5  ;;  %514 = vmatpush.msra.mxu1 %v470_v8  ;;  %v468_v14 = vld [vmem:[#allocation2] sm:$0xff]  ;;  %v4138_v17 = vld [vmem:[%s5442_s1 + $0x8] sm:$0xff]  ;;  %vm251_vm4 = vcmp.ge.s32.totalorder %v4154_v40, 8  ;;  %vm252_vm5 = vcmp.lt.s32.totalorder %v4154_v40, 16  ;;  %vm247_vm7 = vcmp.lt.s32.totalorder %v4154_v40, 8 }
  0x1b   : > { %s238_s16 = scalar_lea.vmem %s5441_s0, %s3644_s13  ;;  %544 = vmatpush.msrb.mxu2 %v475_v9  ;;  %v473_v15 = vld [vmem:[#allocation2 + $0x20] sm:$0xff]  ;;  %v461_v19 = vrot.slane %v4138_v17, 5  ;;  %v530_v42 = vperm.slane %v4138_v17, 6  ;;  %v560_v43 = vperm.slane %v4138_v17, 7  ;;  %vm4160_vm6 = vmand %vm251_vm4, %vm252_vm5  ;;  %vm261_vm8 = vcmp.ge.s32.totalorder %v4154_v40, 24  ;;  %s233_s25 = scalar_lea.vmem [#allocation5], %s232_s15 }
  0x1c   : > { %v407_v1 = vld [vmem:[%s238_s16] sm:$0xff]  ;;  %v409_v2 = vld [vmem:[%s238_s16 + $0x10] sm:$0xff]  ;;  %v408_v6 = vld [vmem:[%s238_s16 + $0x8] sm:$0xff]  ;;  %574 = vmatpush.msra.mxu3 %v480_v10  ;;  %515 = vmatpush.msra.mxu1 %v469_v11  ;;  %v4170_v52 = vsel %vm4160_vm6, 1.0, %v4032_v51  ;;  %v4174_v53 = vsel %vm247_vm7, 1.0, %v4032_v51  ;;  %vm262_vm9 = vcmp.lt.s32.totalorder %v4154_v40, 32 }
  0x1d   : > { %3416 = vmatmul.msk.f32.vlgmr.msra.gmra.mxu0 %vm412_vm1, %v407_v1  ;;  %3418 = vmatmul.msk.f32.vlgmr.msra.gmra.mxu2 %vm412_vm1, %v409_v2  ;;  %v410_v7 = vld [vmem:[%s238_s16 + $0x18] sm:$0xff]  ;;  %v478_v16 = vld [vmem:[#allocation2 + $0x40] sm:$0xff]  ;;  %v462_v22 = vsel %vm459_vm2, %v460_v18, %v461_v19  ;;  %vm4183_vm10 = vmand %vm261_vm8, %vm262_vm9  ;;  %v4188_v62 = vperm.slane %v4138_v17, 5  ;;  %vm256_vm11 = vcmp.ge.s32.totalorder %v4154_v40, 16  ;;  %vm257_vm12 = vcmp.lt.s32.totalorder %v4154_v40, 24  ;;  %s3334_s26 = sshll.u32 %s233_s25, 4  ;;  %s3335_s26 = int_to_ptr.vmem [resolvable:$true] %s3334_s26 }
  0x1e   : > { %545 = vmatpush.msrb.mxu2 %v474_v12  ;;  %575 = vmatpush.msra.mxu3 %v479_v13  ;;  %v4198_v2 = vsel %vm4183_vm10, 1.0, %v4032_v51  ;;  %vm4202_vm13 = vmand %vm256_vm11, %vm257_vm12  ;;  %s3324_s6 = scalar_lea.sflag [#allocation4], %s232_s15  ;;  %s3975_s7 = sshra.s32 %s3337_s30, 4  ;;  %s3976_s7 = int_to_ptr.hbm [resolvable:$true] %s3975_s7 }
  0x1f   : > { %516 = vmatpush.msra.mxu1 %v468_v14  ;;  %v4216_v11 = vsel %vm4202_vm13, 1.0, %v4032_v51  ;;  %s3977_s8 = scalar_lea.hbm %s3976_s7, 1  ;;  %s3981_s10 = scalar_lea.hbm %s5446_s5, 2 }
  0x20   : > { %546 = vmatpush.msrb.mxu2 %v473_v15  ;;  %576 = vmatpush.msra.mxu3 %v478_v16  ;;  %p3978_p0 = scmp.ne.s32.totalorder %s3976_s7, %s3977_s8  ;;  %p3982_p3 = scmp.lt.s32.totalorder %s3976_s7, %s5446_s5 }
  0x21   : > { %p3983_p4 = scmp.lt.s32.totalorder %s3981_s10, %s3977_s8 }
  0x22   : > { %p3979_p1 = pnand %p3978_p0, %p4103_p5 }
  0x23   : > { %p3984_p7 = por %p3983_p4, %p3982_p3 }
  0x24   : > { %p3980_p2 = pneg %p3979_p1 }
  0x25   : > { %3417 = vmatmul.msk.f32.gmra.mxu0 %vm412_vm1, %v408_v6  ;;  %3419 = vmatmul.msk.f32.gmra.mxu2 %vm412_vm1, %v410_v7 }
  0x26   : > { %p3985_p8 = pnand %p3984_p7, %p3980_p2 }
  0x9a   : > { %v446_v21 = vpop.f32.mrf.mxu0 }
  0x9b   : > { %v447_v23 = vadd.f32 %v446_v21, %v411_v20 }
  0x9d   : > { %v464_v24 = vadd.f32 %v462_v22, %v447_v23 }
  0x9f   : > { %3420 = vmatmul.msk.f32.vlgmr.msra.gmra.mxu1 %vm5449_vm3, %v464_v24  ;;  %3424 = vmatmul.msk.f32.vlgmr.msrb.gmra.mxu2 %vm5449_vm3, %v464_v24 }
  0xa0   : > { %3428 = vmatmul.msk.f32.vlgmr.msra.gmra.mxu3 %vm5449_vm3, %v464_v24  ;;  %v452_v26 = vpop.f32.mrf.mxu2 }
  0xa1   : > { %v453_v29 = vadd.f32 %v452_v26, %v411_v20 }
  0xa2   : > { %v449_v25 = vpop.f32.mrf.mxu0 }
  0xa3   : > { %v450_v27 = vadd.f32 %v449_v25, %v411_v20  ;;  %v466_v30 = vadd.f32 %v462_v22, %v453_v29 }
  0xa5   : > { %v465_v28 = vadd.f32 %v462_v22, %v450_v27 }
  0xa7   : > { %3421 = vmatmul.msk.f32.gmra.mxu1 %vm5449_vm3, %v465_v28  ;;  %3425 = vmatmul.msk.f32.gmra.mxu2 %vm5449_vm3, %v465_v28 }
  0xa8   : > { %3429 = vmatmul.msk.f32.gmra.mxu3 %vm5449_vm3, %v465_v28  ;;  %v455_v31 = vpop.f32.mrf.mxu2 }
  0xa9   : > { %v456_v32 = vadd.f32 %v455_v31, %v411_v20 }
  0xab   : > { %v467_v33 = vadd.f32 %v462_v22, %v456_v32 }
  0xaf   : > { %3422 = vmatmul.msk.f32.gmra.mxu1 %vm5449_vm3, %v466_v30  ;;  %3426 = vmatmul.msk.f32.gmra.mxu2 %vm5449_vm3, %v466_v30 }
  0xb0   : > { %3430 = vmatmul.msk.f32.gmra.mxu3 %vm5449_vm3, %v466_v30 }
  0xb7   : > { %3423 = vmatmul.msk.f32.gmra.mxu1 %vm5449_vm3, %v467_v33  ;;  %3427 = vmatmul.msk.f32.gmra.mxu2 %vm5449_vm3, %v467_v33 }
  0xb8   : > { %3431 = vmatmul.msk.f32.gmra.mxu3 %vm5449_vm3, %v467_v33 }
 0x11c   : > { %v518_v50 = vpop.f32.mrf.mxu1 }
 0x11d   : > { %v4210_v7 = vadd.f32 %v518_v50, %v4188_v62 }
 0x11f   : > { %v590_v14 = vmul.f32 %v4174_v53, %v4210_v7  ;;  %v699_v15 = vmul.f32 %v4170_v52, %v4210_v7  ;;  %v878_v31 = vmul.f32 %v4216_v11, %v4210_v7 }
 0x122   : > { %v548_v34 = vpop.f32.mrf.mxu2 }
 0x123   : > { %v578_v35 = vpop.f32.mrf.mxu3  ;;  %v549_v8 = vadd.f32 %v548_v34, %v530_v42 }
 0x124   : > { %v579_v58 = vadd.f32 %v578_v35, %v560_v43  ;;  %v521_v9 = vpop.f32.mrf.mxu1 }
 0x125   : > { %v4233_v18 = vadd.f32 %v521_v9, %v4188_v62 }
 0x126   : > { %v792_v3 = vmul.f32 %v4170_v52, %v579_v58  ;;  %v695_v4 = vmul.f32 %v4174_v53, %v579_v58  ;;  %v1113_v17 = vmul.f32 %v4198_v2, %v579_v58  ;;  %v971_v20 = vmul.f32 %v4216_v11, %v579_v58 }
 0x127   : > { %v591_v22 = vmul.f32 %v4174_v53, %v4233_v18  ;;  %v700_v23 = vmul.f32 %v4170_v52, %v4233_v18  ;;  %v879_v32 = vmul.f32 %v4216_v11, %v4233_v18 }
 0x12a   : > { %v551_v36 = vpop.f32.mrf.mxu2 }
 0x12b   : > { %v581_v37 = vpop.f32.mrf.mxu3  ;;  %v552_v1 = vadd.f32 %v551_v36, %v530_v42 }
 0x12c   : > { %v582_v54 = vadd.f32 %v581_v37, %v560_v43  ;;  %v524_v21 = vpop.f32.mrf.mxu1 }
 0x12d   : > { %v4248_v24 = vadd.f32 %v524_v21, %v4188_v62 }
 0x12e   : > { %v793_v63 = vmul.f32 %v4170_v52, %v582_v54  ;;  %v696_v0 = vmul.f32 %v4174_v53, %v582_v54  ;;  %v1114_v13 = vmul.f32 %v4198_v2, %v582_v54  ;;  %v972_v19 = vmul.f32 %v4216_v11, %v582_v54 }
 0x12f   : > { %v592_v25 = vmul.f32 %v4174_v53, %v4248_v24  ;;  %v701_v27 = vmul.f32 %v4170_v52, %v4248_v24  ;;  %v880_v33 = vmul.f32 %v4216_v11, %v4248_v24 }
 0x132   : > { %v554_v39 = vpop.f32.mrf.mxu2 }
 0x133   : > { %v584_v41 = vpop.f32.mrf.mxu3  ;;  %v555_v57 = vadd.f32 %v554_v39, %v530_v42 }
 0x134   : > { %v585_v48 = vadd.f32 %v584_v41, %v560_v43  ;;  %v527_v26 = vpop.f32.mrf.mxu1 }
 0x135   : > { %v4258_v28 = vadd.f32 %v527_v26, %v4188_v62 }
 0x136   : > { %v794_v59 = vmul.f32 %v4170_v52, %v585_v48  ;;  %v697_v60 = vmul.f32 %v4174_v53, %v585_v48  ;;  %v1115_v10 = vmul.f32 %v4198_v2, %v585_v48  ;;  %v973_v16 = vmul.f32 %v4216_v11, %v585_v48 }
 0x137   : > { %v593_v29 = vmul.f32 %v4174_v53, %v4258_v28  ;;  %v702_v30 = vmul.f32 %v4170_v52, %v4258_v28  ;;  %v881_v34 = vmul.f32 %v4216_v11, %v4258_v28 }
 0x13a   : > { %v557_v44 = vpop.f32.mrf.mxu2 }
 0x13b   : > { %v558_v46 = vadd.f32 %v557_v44, %v530_v42  ;;  %v587_v47 = vpop.f32.mrf.mxu3 }
 0x13c   : > { %v588_v49 = vadd.f32 %v587_v47, %v560_v43 }
 0x13d   : > { %3432 = vmatpush.xpose.msk.msrb.mxu0 %vm5449_vm3, %v558_v46  ;;  %3440 = vmatpush.xpose.msk.msrb.mxu1 %vm5449_vm3, %v558_v46 }
 0x13e   : > { %v795_v55 = vmul.f32 %v4170_v52, %v588_v49  ;;  %v698_v56 = vmul.f32 %v4174_v53, %v588_v49  ;;  %v1116_v6 = vmul.f32 %v4198_v2, %v588_v49  ;;  %v974_v12 = vmul.f32 %v4216_v11, %v588_v49 }
 0x140   : > { %820 = vmatpush.msra.mxu2 %v795_v55  ;;  %861 = vmatpush.msrb.mxu3 %v698_v56 }
 0x141   : > { %3433 = vmatpush.xpose.msk.msrb.mxu0 %vm5449_vm3, %v555_v57  ;;  %3441 = vmatpush.xpose.msk.msrb.mxu1 %vm5449_vm3, %v555_v57 }
 0x142   : > { %821 = vmatpush.msra.mxu2 %v794_v59  ;;  %862 = vmatpush.msrb.mxu3 %v697_v60 }
 0x144   : > { %822 = vmatpush.msra.mxu2 %v793_v63  ;;  %863 = vmatpush.msrb.mxu3 %v696_v0 }
 0x145   : > { %3434 = vmatpush.xpose.msk.msrb.mxu0 %vm5449_vm3, %v552_v1  ;;  %3442 = vmatpush.xpose.msk.msrb.mxu1 %vm5449_vm3, %v552_v1 }
 0x146   : > { %823 = vmatpush.msra.mxu2 %v792_v3  ;;  %864 = vmatpush.msrb.mxu3 %v695_v4 }
 0x148   : > { %3468 = vmatpush.xpose.msk.msrb.mxu2 %vm5449_vm3, %v558_v46  ;;  %1141 = vmatpush.msra.mxu3 %v1116_v6 }
 0x149   : > { %3435 = vmatpush.xpose.msk.msrb.mxu0 %vm5449_vm3, %v549_v8  ;;  %3443 = vmatpush.xpose.msk.msrb.mxu1 %vm5449_vm3, %v549_v8 }
 0x14a   : > { %1142 = vmatpush.msra.mxu3 %v1115_v10 }
 0x14c   : > { %3469 = vmatpush.xpose.msk.msrb.mxu2 %vm5449_vm3, %v555_v57  ;;  %1143 = vmatpush.msra.mxu3 %v1114_v13 }
 0x14d   : > { %3456 = vmatpush.xpose.msk.msra.mxu0 %vm5449_vm3, %v558_v46  ;;  %999 = vmatpush.msra.mxu1 %v974_v12 }
 0x14e   : > { %3436 = vmatmul.msk.f32.vlgmr.msrb.gmra.mxu0 %vm5449_vm3, %v590_v14  ;;  %3444 = vmatmul.msk.f32.vlgmr.msrb.gmra.mxu1 %vm5449_vm3, %v699_v15 }
 0x14f   : > { %1000 = vmatpush.msra.mxu1 %v973_v16  ;;  %1144 = vmatpush.msra.mxu3 %v1113_v17 }
 0x150   : > { %3470 = vmatpush.xpose.msk.msrb.mxu2 %vm5449_vm3, %v552_v1 }
 0x151   : > { %3457 = vmatpush.xpose.msk.msra.mxu0 %vm5449_vm3, %v555_v57  ;;  %1001 = vmatpush.msra.mxu1 %v972_v19 }
 0x153   : > { %1002 = vmatpush.msra.mxu1 %v971_v20 }
 0x154   : > { %3471 = vmatpush.xpose.msk.msrb.mxu2 %vm5449_vm3, %v549_v8 }
 0x155   : > { %3458 = vmatpush.xpose.msk.msra.mxu0 %vm5449_vm3, %v552_v1 }
 0x156   : > { %3437 = vmatmul.msk.f32.gmra.mxu0 %vm5449_vm3, %v591_v22  ;;  %3445 = vmatmul.msk.f32.gmra.mxu1 %vm5449_vm3, %v700_v23 }
 0x159   : > { %3459 = vmatpush.xpose.msk.msra.mxu0 %vm5449_vm3, %v549_v8 }
 0x15e   : > { %3438 = vmatmul.msk.f32.gmra.mxu0 %vm5449_vm3, %v592_v25  ;;  %3446 = vmatmul.msk.f32.gmra.mxu1 %vm5449_vm3, %v701_v27 }
 0x166   : > { %3439 = vmatmul.msk.f32.gmra.mxu0 %vm5449_vm3, %v593_v29  ;;  %3447 = vmatmul.msk.f32.gmra.mxu1 %vm5449_vm3, %v702_v30 }
 0x16e   : > { %3460 = vmatmul.msk.f32.vlgmr.msra.gmra.mxu0 %vm5449_vm3, %v878_v31 }
 0x176   : > { %3461 = vmatmul.msk.f32.gmra.mxu0 %vm5449_vm3, %v879_v32 }
 0x17e   : > { %3462 = vmatmul.msk.f32.gmra.mxu0 %vm5449_vm3, %v880_v33 }
 0x186   : > { %3463 = vmatmul.msk.f32.gmra.mxu0 %vm5449_vm3, %v881_v34 }
 0x1cb   : > { %v732_v35 = vpop.f32.mrf.mxu1  ;;  %v635_v51 = vpop.f32.mrf.mxu0 }
 0x1cc   : > { %v744_v36 = vsel %vm247_vm7, %v732_v35, -1e+30  ;;  %v4294_v10 = vsel %vm247_vm7, %v635_v51, -1e+30 }
 0x1cd   : > { %v748_v37 = vsel %vm5449_vm3, %v744_v36, -inf  ;;  %v651_v15 = vsel %vm5449_vm3, %v4294_v10, -inf }
 0x1ce   : > { %749 = vmax.xlane.f32.xlu0 %v748_v37 }
 0x1d3   : > { %v735_v39 = vpop.f32.mrf.mxu1  ;;  %v638_v59 = vpop.f32.mrf.mxu0 }
 0x1d4   : > { %v745_v41 = vsel %vm4160_vm6, %v735_v39, -1e+30  ;;  %v4301_v17 = vsel %vm4160_vm6, %v638_v59, -1e+30 }
 0x1d5   : > { %v751_v42 = vsel %vm5449_vm3, %v745_v41, -inf  ;;  %v654_v22 = vsel %vm5449_vm3, %v4301_v17, -inf }
 0x1d6   : > { %752 = vmax.xlane.f32.xlu0 %v751_v42 }
 0x1db   : > { %v738_v43 = vpop.f32.mrf.mxu1  ;;  %v641_v6 = vpop.f32.mrf.mxu0 }
 0x1dc   : > { %v746_v44 = vsel %vm4202_vm13, %v738_v43, -1e+30  ;;  %v4314_v25 = vsel %vm4202_vm13, %v641_v6, -1e+30 }
 0x1dd   : > { %v754_v46 = vsel %vm5449_vm3, %v746_v44, -inf  ;;  %v657_v26 = vsel %vm5449_vm3, %v4314_v25, -inf }
 0x1de   : > { %755 = vmax.xlane.f32.xlu1 %v754_v46  ;;  %v1020_v46 = vmul.f32 %v4198_v2, %v4210_v7 }
 0x1e3   : > { %v741_v47 = vpop.f32.mrf.mxu1  ;;  %v644_v16 = vpop.f32.mrf.mxu0 }
 0x1e4   : > { %v747_v48 = vsel %vm4183_vm10, %v741_v47, -1e+30  ;;  %v4305_v19 = vsel %vm4183_vm10, %v644_v16, -1e+30  ;;  %v1021_v47 = vmul.f32 %v4198_v2, %v4233_v18 }
 0x1e5   : > { %v757_v49 = vsel %vm5449_vm3, %v747_v48, -inf  ;;  %v660_v23 = vsel %vm5449_vm3, %v4305_v19, -inf }
 0x1e6   : > { %758 = vmax.xlane.f32.xlu1 %v757_v49  ;;  %v1023_v49 = vmul.f32 %v4198_v2, %v4258_v28 }
 0x1eb   : > { %v911_v27 = vpop.f32.mrf.mxu0 }
 0x1ec   : > { %v4320_v29 = vsel %vm247_vm7, %v911_v27, -1e+30 }
 0x1ed   : > { %v927_v30 = vsel %vm5449_vm3, %v4320_v29, -inf }
 0x241   : > { %v750_v50 = vpop.xlane.xlu0 %749 }
 0x242   : > { %v760_v54 = vsub.f32 %v744_v36, %v750_v50 }
 0x244   : > { %v764_v55 = vmul.f32 1.442695, %v760_v54 }
 0x246   : > { %3703 = vpow2.f32 %v764_v55  ;;  %v914_v55 = vpop.f32.mrf.mxu0 }
 0x249   : > { %v753_v56 = vpop.xlane.xlu0 %752 }
 0x24a   : > { %v761_v57 = vsub.f32 %v745_v41, %v753_v56 }
 0x24c   : > { %v3704_v58 = vpop.eup %3703  ;;  %v766_v60 = vmul.f32 1.442695, %v761_v57 }
 0x24d   : > { %v772_v62 = vsel %vm5449_vm3, %v3704_v58, 0.0 }
 0x24e   : > { %3705 = vpow2.f32 %v766_v60  ;;  %773 = vadd.xlane.f32.xlu2 %v772_v62  ;;  %v4354_v60 = vsel %vm4160_vm6, %v914_v55, -1e+30 }
 0x251   : > { %v756_v63 = vpop.xlane.xlu1 %755 }
 0x252   : > { %v762_v0 = vsub.f32 %v746_v44, %v756_v63 }
 0x254   : > { %v3706_v1 = vpop.eup %3705  ;;  %v768_v3 = vmul.f32 1.442695, %v762_v0  ;;  %v917_v0 = vpop.f32.mrf.mxu0 }
 0x255   : > { %v775_v4 = vsel %vm5449_vm3, %v3706_v1, 0.0 }
 0x256   : > { %3707 = vpow2.f32 %v768_v3  ;;  %776 = vadd.xlane.f32.xlu2 %v775_v4  ;;  %v930_v3 = vsel %vm5449_vm3, %v4354_v60, -inf }
 0x259   : > { %v759_v8 = vpop.xlane.xlu1 %758 }
 0x25a   : > { %v763_v9 = vsub.f32 %v747_v48, %v759_v8  ;;  %v1022_v48 = vmul.f32 %v4198_v2, %v4248_v24 }
 0x25c   : > { %v3708_v12 = vpop.eup %3707  ;;  %v770_v13 = vmul.f32 1.442695, %v763_v9 }
 0x25d   : > { %v778_v14 = vsel %vm5449_vm3, %v3708_v12, 0.0 }
 0x25e   : > { %3709 = vpow2.f32 %v770_v13  ;;  %779 = vadd.xlane.f32.xlu0 %v778_v14  ;;  %652 = vmax.xlane.f32.xlu2 %v651_v15 }
 0x264   : > { %v3710_v20 = vpop.eup %3709 }
 0x265   : > { %v781_v21 = vsel %vm5449_vm3, %v3710_v20, 0.0 }
 0x266   : > { %782 = vadd.xlane.f32.xlu1 %v781_v21  ;;  %655 = vmax.xlane.f32.xlu0 %v654_v22  ;;  %v920_v21 = vpop.f32.mrf.mxu0 }
 0x267   : > { %661 = vmax.xlane.f32.xlu2 %v660_v23  ;;  %v4379_v5 = vsel %vm4183_vm10, %v920_v21, -1e+30 }
 0x26e   : > { %658 = vmax.xlane.f32.xlu1 %v657_v26 }
 0x276   : > { %928 = vmax.xlane.f32.xlu1 %v927_v30 }
 0x2c1   : > { %v774_v31 = vpop.xlane.xlu2 %773 }
 0x2c2   : > { %3711 = vrcp.f32 %v774_v31 }
 0x2c8   : > { %v3712_v32 = vpop.eup %3711 }
 0x2c9   : > { %v788_v33 = vmul.f32 %v3712_v32, %v3704_v58  ;;  %v777_v34 = vpop.xlane.xlu2 %776  ;;  %v936_v32 = vsel %vm5449_vm3, %v4379_v5, -inf }
 0x2ca   : > { %3713 = vrcp.f32 %v777_v34 }
 0x2cb   : > { %3448 = vmatmul.msk.f32.vlgmr.msra.gmra.mxu2 %vm5449_vm3, %v788_v33 }
 0x2d0   : > { %v3714_v35 = vpop.eup %3713 }
 0x2d1   : > { %v780_v36 = vpop.xlane.xlu0 %779  ;;  %v789_v37 = vmul.f32 %v3714_v35, %v3706_v1  ;;  %v653_v18 = vpop.xlane.xlu2 %652 }
 0x2d2   : > { %3715 = vrcp.f32 %v780_v36  ;;  %v663_v57 = vsub.f32 %v4294_v10, %v653_v18  ;;  %v4364_v10 = vsel %vm4202_vm13, %v917_v0, -1e+30 }
 0x2d3   : > { %3449 = vmatmul.msk.f32.gmra.mxu2 %vm5449_vm3, %v789_v37 }
 0x2d4   : > { %v667_v58 = vmul.f32 1.442695, %v663_v57 }
 0x2d8   : > { %v3716_v39 = vpop.eup %3715 }
 0x2d9   : > { %v783_v41 = vpop.xlane.xlu1 %782  ;;  %v790_v42 = vmul.f32 %v3716_v39, %v3708_v12  ;;  %v656_v59 = vpop.xlane.xlu0 %655 }
 0x2da   : > { %3717 = vrcp.f32 %v783_v41  ;;  %v664_v1 = vsub.f32 %v4301_v17, %v656_v59  ;;  %v662_v9 = vpop.xlane.xlu2 %661  ;;  %v933_v17 = vsel %vm5449_vm3, %v4364_v10, -inf }
 0x2db   : > { %3450 = vmatmul.msk.f32.gmra.mxu2 %vm5449_vm3, %v790_v42  ;;  %3719 = vpow2.f32 %v667_v58  ;;  %v666_v15 = vsub.f32 %v4305_v19, %v662_v9 }
 0x2dc   : > { %v669_v8 = vmul.f32 1.442695, %v664_v1 }
 0x2dd   : > { %v673_v23 = vmul.f32 1.442695, %v666_v15 }
 0x2de   : > { %3721 = vpow2.f32 %v669_v8 }
 0x2e0   : > { %v3718_v43 = vpop.eup %3717 }
 0x2e1   : > { %v791_v44 = vmul.f32 %v3718_v43, %v3710_v20  ;;  %v659_v6 = vpop.xlane.xlu1 %658  ;;  %v4366_v45 = vpop.eup %3719 }
 0x2e2   : > { %v665_v13 = vsub.f32 %v4314_v25, %v659_v6  ;;  %v675_v20 = vsel %vm5449_vm3, %v4366_v45, 0.0 }
 0x2e3   : > { %3451 = vmatmul.msk.f32.gmra.mxu2 %vm5449_vm3, %v791_v44 }
 0x2e4   : > { %v671_v22 = vmul.f32 1.442695, %v665_v13  ;;  %v4381_v19 = vpop.eup %3721 }
 0x2e5   : > { %v678_v33 = vsel %vm5449_vm3, %v4381_v19, 0.0 }
 0x2e6   : > { %3723 = vpow2.f32 %v671_v22 }
 0x2e7   : > { %3725 = vpow2.f32 %v673_v23 }
 0x2e9   : > { %v929_v25 = vpop.xlane.xlu1 %928 }
 0x2ea   : > { %v939_v27 = vsub.f32 %v4320_v29, %v929_v25 }
 0x2eb   : > { %3472 = vmatmul.msk.f32.vlgmr.msrb.gmra.mxu2 %vm5449_vm3, %v1020_v46 }
 0x2ec   : > { %v943_v34 = vmul.f32 1.442695, %v939_v27  ;;  %v4391_v35 = vpop.eup %3723 }
 0x2ed   : > { %v4393_v36 = vpop.eup %3725  ;;  %v681_v61 = vsel %vm5449_vm3, %v4391_v35, 0.0 }
 0x2ee   : > { %3727 = vpow2.f32 %v943_v34  ;;  %v684_v29 = vsel %vm5449_vm3, %v4393_v36, 0.0 }
 0x2f3   : > { %3473 = vmatmul.msk.f32.gmra.mxu2 %vm5449_vm3, %v1021_v47 }
 0x2f4   : > { %v4399_v37 = vpop.eup %3727 }
 0x2f5   : > { %v951_v39 = vsel %vm5449_vm3, %v4399_v37, 0.0 }
 0x2fb   : > { %3474 = vmatmul.msk.f32.gmra.mxu2 %vm5449_vm3, %v1022_v48 }
 0x303   : > { %3475 = vmatmul.msk.f32.gmra.mxu2 %vm5449_vm3, %v1023_v49 }
 0x34e   : > { %v4340_v50 = vpop.f32.mrf.mxu2 }
 0x356   : > { %v4342_v7 = vpop.f32.mrf.mxu2 }
 0x35e   : > { %v4344_v51 = vpop.f32.mrf.mxu2 }
 0x366   : > { %v4346_v54 = vpop.f32.mrf.mxu2 }
 0x36e   : > { %v1053_v56 = vpop.f32.mrf.mxu2 }
 0x36f   : > { %v1065_v24 = vsel %vm247_vm7, %v1053_v56, -1e+30 }
 0x370   : > { %v1069_v28 = vsel %vm5449_vm3, %v1065_v24, -inf }
 0x371   : > { %1070 = vmax.xlane.f32.xlu0 %v1069_v28 }
 0x376   : > { %v1056_v62 = vpop.f32.mrf.mxu2 }
 0x377   : > { %v1066_v63 = vsel %vm4160_vm6, %v1056_v62, -1e+30 }
 0x378   : > { %v1072_v4 = vsel %vm5449_vm3, %v1066_v63, -inf }
 0x379   : > { %931 = vmax.xlane.f32.xlu0 %v930_v3  ;;  %1073 = vmax.xlane.f32.xlu2 %v1072_v4 }
 0x37e   : > { %v1059_v12 = vpop.f32.mrf.mxu2 }
 0x37f   : > { %v1067_v14 = vsel %vm4202_vm13, %v1059_v12, -1e+30 }
 0x380   : > { %v1075_v16 = vsel %vm5449_vm3, %v1067_v14, -inf }
 0x381   : > { %1076 = vmax.xlane.f32.xlu1 %v1075_v16  ;;  %934 = vmax.xlane.f32.xlu0 %v933_v17 }
 0x382   : > { %676 = vadd.xlane.f32.xlu2 %v675_v20 }
 0x386   : > { %v1062_v26 = vpop.f32.mrf.mxu2 }
 0x387   : > { %v1068_v30 = vsel %vm4183_vm10, %v1062_v26, -1e+30 }
 0x388   : > { %v1078_v31 = vsel %vm5449_vm3, %v1068_v30, -inf }
 0x389   : > { %1079 = vmax.xlane.f32.xlu1 %v1078_v31  ;;  %937 = vmax.xlane.f32.xlu0 %v936_v32 }
 0x38a   : > { %679 = vadd.xlane.f32.xlu2 %v678_v33 }
 0x391   : > { %682 = vadd.xlane.f32.xlu1 %v681_v61 }
 0x392   : > { %685 = vadd.xlane.f32.xlu2 %v684_v29 }
 0x399   : > { %952 = vadd.xlane.f32.xlu1 %v951_v39 }
 0x3e4   : > { %v1071_v41 = vpop.xlane.xlu0 %1070 }
 0x3e5   : > { %v1081_v42 = vsub.f32 %v1065_v24, %v1071_v41 }
 0x3e7   : > { %v1085_v43 = vmul.f32 1.442695, %v1081_v42 }
 0x3e9   : > { %3729 = vpow2.f32 %v1085_v43 }
 0x3ec   : > { %v932_v44 = vpop.xlane.xlu0 %931  ;;  %v1074_v46 = vpop.xlane.xlu2 %1073 }
 0x3ed   : > { %v940_v47 = vsub.f32 %v4354_v60, %v932_v44  ;;  %v1082_v48 = vsub.f32 %v1066_v63, %v1074_v46 }
 0x3ef   : > { %v4404_v49 = vpop.eup %3729  ;;  %v945_v18 = vmul.f32 1.442695, %v940_v47  ;;  %v1087_v55 = vmul.f32 1.442695, %v1082_v48 }
 0x3f0   : > { %v1093_v56 = vsel %vm5449_vm3, %v4404_v49, 0.0 }
 0x3f1   : > { %3731 = vpow2.f32 %v945_v18  ;;  %1094 = vadd.xlane.f32.xlu0 %v1093_v56  ;;  %v486_v18 = vld [vmem:[#allocation2 + $0x78] sm:$0xff] }
 0x3f2   : > { %3733 = vpow2.f32 %v1087_v55  ;;  %v485_v55 = vld [vmem:[#allocation2 + $0x70] sm:$0xff]  ;;  %1187 = vmatpush.msrb.mxu0 %v486_v18 }
 0x3f4   : > { %v1077_v57 = vpop.xlane.xlu1 %1076  ;;  %v935_v28 = vpop.xlane.xlu0 %934  ;;  %1188 = vmatpush.msrb.mxu0 %v485_v55 }
 0x3f5   : > { %v1083_v24 = vsub.f32 %v1067_v14, %v1077_v57  ;;  %v941_v58 = vsub.f32 %v4364_v10, %v935_v28  ;;  %v677_v59 = vpop.xlane.xlu2 %676 }
 0x3f6   : > { %3735 = vrcp.f32 %v677_v59 }
 0x3f7   : > { %v4409_v62 = vpop.eup %3731  ;;  %v1089_v60 = vmul.f32 1.442695, %v1083_v24  ;;  %v947_v63 = vmul.f32 1.442695, %v941_v58 }
 0x3f8   : > { %v4411_v0 = vpop.eup %3733  ;;  %v954_v1 = vsel %vm5449_vm3, %v4409_v62, 0.0 }
 0x3f9   : > { %3737 = vpow2.f32 %v1089_v60  ;;  %955 = vadd.xlane.f32.xlu0 %v954_v1  ;;  %v1096_v3 = vsel %vm5449_vm3, %v4411_v0, 0.0  ;;  %v484_v1 = vld [vmem:[#allocation2 + $0x68] sm:$0xff] }
 0x3fa   : > { %3739 = vpow2.f32 %v947_v63  ;;  %1097 = vadd.xlane.f32.xlu2 %v1096_v3  ;;  %1189 = vmatpush.msrb.mxu0 %v484_v1  ;;  %v483_v3 = vld [vmem:[#allocation2 + $0x60] sm:$0xff] }
 0x3fc   : > { %v3736_v4 = vpop.eup %3735  ;;  %v1080_v6 = vpop.xlane.xlu1 %1079  ;;  %1190 = vmatpush.msrb.mxu0 %v483_v3 }
 0x3fd   : > { %v938_v8 = vpop.xlane.xlu0 %937  ;;  %v1084_v9 = vsub.f32 %v1068_v30, %v1080_v6  ;;  %v680_v12 = vpop.xlane.xlu2 %679  ;;  %v691_v13 = vmul.f32 %v3736_v4, %v4366_v45 }
 0x3fe   : > { %v942_v10 = vsub.f32 %v4379_v5, %v938_v8  ;;  %3741 = vrcp.f32 %v680_v12  ;;  %v1213_v12 = vld [vmem:[#allocation2 + $0xb8] sm:$0xff] }
 0x3ff   : > { %v3738_v14 = vpop.eup %3737  ;;  %v1091_v15 = vmul.f32 1.442695, %v1084_v9  ;;  %3452 = vmatmul.msk.f32.vlgmr.msrb.gmra.mxu3 %vm5449_vm3, %v691_v13  ;;  %v1218_v13 = vld [vmem:[#allocation2 + $0xd8] sm:$0xff]  ;;  %1279 = vmatpush.msra.mxu2 %v1213_v12 }
 0x400   : > { %v949_v16 = vmul.f32 1.442695, %v942_v10  ;;  %v3740_v17 = vpop.eup %3739  ;;  %v1099_v20 = vsel %vm5449_vm3, %v3738_v14, 0.0  ;;  %v1208_v10 = vld [vmem:[#allocation2 + $0x98] sm:$0xff]  ;;  %1309 = vmatpush.msrb.mxu3 %v1218_v13 }
 0x401   : > { %3743 = vpow2.f32 %v1091_v15  ;;  %1100 = vadd.xlane.f32.xlu1 %v1099_v20  ;;  %v957_v21 = vsel %vm5449_vm3, %v3740_v17, 0.0  ;;  %1249 = vmatpush.msrb.mxu1 %v1208_v10  ;;  %v1207_v15 = vld [vmem:[#allocation2 + $0x90] sm:$0xff] }
 0x402   : > { %3745 = vpow2.f32 %v949_v16  ;;  %958 = vadd.xlane.f32.xlu2 %v957_v21  ;;  %v1212_v16 = vld [vmem:[#allocation2 + $0xb0] sm:$0xff] }
 0x403   : > { %1250 = vmatpush.msrb.mxu1 %v1207_v15  ;;  %1280 = vmatpush.msra.mxu2 %v1212_v16 }
 0x404   : > { %v3742_v22 = vpop.eup %3741  ;;  %v683_v23 = vpop.xlane.xlu1 %682 }
 0x405   : > { %3747 = vrcp.f32 %v683_v23  ;;  %v692_v45 = vmul.f32 %v3742_v22, %v4381_v19  ;;  %v686_v27 = vpop.xlane.xlu2 %685 }
 0x406   : > { %3749 = vrcp.f32 %v686_v27 }
 0x407   : > { %v3744_v25 = vpop.eup %3743  ;;  %3453 = vmatmul.msk.f32.gmra.mxu3 %vm5449_vm3, %v692_v45 }
 0x408   : > { %v3746_v5 = vpop.eup %3745  ;;  %v1102_v26 = vsel %vm5449_vm3, %v3744_v25, 0.0 }
 0x409   : > { %1103 = vadd.xlane.f32.xlu0 %v1102_v26  ;;  %v960_v30 = vsel %vm5449_vm3, %v3746_v5, 0.0 }
 0x40a   : > { %961 = vadd.xlane.f32.xlu1 %v960_v30 }
 0x40b   : > { %v3748_v31 = vpop.eup %3747 }
 0x40c   : > { %v953_v32 = vpop.xlane.xlu1 %952  ;;  %v693_v33 = vmul.f32 %v3748_v31, %v4391_v35  ;;  %v3750_v19 = vpop.eup %3749 }
 0x40d   : > { %3751 = vrcp.f32 %v953_v32  ;;  %v694_v29 = vmul.f32 %v3750_v19, %v4393_v36 }
 0x40f   : > { %3454 = vmatmul.msk.f32.gmra.mxu3 %vm5449_vm3, %v693_v33 }
 0x413   : > { %v3752_v34 = vpop.eup %3751 }
 0x414   : > { %v967_v61 = vmul.f32 %v3752_v34, %v4399_v37 }
 0x416   : > { %3464 = vmatmul.msk.f32.vlgmr.msra.gmra.mxu1 %vm5449_vm3, %v967_v61 }
 0x417   : > { %3455 = vmatmul.msk.f32.gmra.mxu3 %vm5449_vm3, %v694_v29 }
 0x464   : > { %v1095_v39 = vpop.xlane.xlu0 %1094 }
 0x465   : > { %3753 = vrcp.f32 %v1095_v39  ;;  %v1211_v39 = vld [vmem:[#allocation2 + $0xa8] sm:$0xff] }
 0x466   : > { %1281 = vmatpush.msra.mxu2 %v1211_v39 }
 0x46b   : > { %v3754_v41 = vpop.eup %3753 }
 0x46c   : > { %v1109_v42 = vmul.f32 %v3754_v41, %v4404_v49  ;;  %v956_v43 = vpop.xlane.xlu0 %955  ;;  %v1216_v41 = vld [vmem:[#allocation2 + $0xc8] sm:$0xff] }
 0x46d   : > { %3755 = vrcp.f32 %v956_v43  ;;  %v1098_v35 = vpop.xlane.xlu2 %1097  ;;  %v1215_v43 = vld [vmem:[#allocation2 + $0xc0] sm:$0xff] }
 0x46e   : > { %3757 = vrcp.f32 %v1098_v35  ;;  %3476 = vmatmul.msk.f32.vlgmr.msra.gmra.mxu3 %vm5449_vm3, %v1109_v42  ;;  %v1205_v42 = vld [vmem:[#allocation2 + $0x80] sm:$0xff] }
 0x473   : > { %v3756_v44 = vpop.eup %3755 }
 0x474   : > { %v3758_v46 = vpop.eup %3757  ;;  %v1101_v37 = vpop.xlane.xlu1 %1100  ;;  %v968_v36 = vmul.f32 %v3756_v44, %v4409_v62 }
 0x475   : > { %3759 = vrcp.f32 %v1101_v37  ;;  %v959_v47 = vpop.xlane.xlu2 %958  ;;  %v1110_v48 = vmul.f32 %v3758_v46, %v4411_v0 }
 0x476   : > { %3761 = vrcp.f32 %v959_v47  ;;  %3465 = vmatmul.msk.f32.gmra.mxu1 %vm5449_vm3, %v968_v36 }
 0x477   : > { %3477 = vmatmul.msk.f32.gmra.mxu3 %vm5449_vm3, %v1110_v48 }
 0x47b   : > { %v3760_v49 = vpop.eup %3759 }
 0x47c   : > { %v3762_v56 = vpop.eup %3761  ;;  %v1104_v57 = vpop.xlane.xlu0 %1103  ;;  %v1111_v28 = vmul.f32 %v3760_v49, %v3738_v14 }
 0x47d   : > { %v962_v24 = vpop.xlane.xlu1 %961  ;;  %3763 = vrcp.f32 %v1104_v57  ;;  %v969_v58 = vmul.f32 %v3762_v56, %v3740_v17  ;;  %v1217_v17 = vld [vmem:[#allocation2 + $0xd0] sm:$0xff] }
 0x47e   : > { %3765 = vrcp.f32 %v962_v24  ;;  %1310 = vmatpush.msrb.mxu3 %v1217_v17 }
 0x47f   : > { %3466 = vmatmul.msk.f32.gmra.mxu1 %vm5449_vm3, %v969_v58  ;;  %3478 = vmatmul.msk.f32.gmra.mxu3 %vm5449_vm3, %v1111_v28 }
 0x480   : > { %1311 = vmatpush.msrb.mxu3 %v1216_v41 }
 0x482   : > { %v866_v0 = vpop.f32.mrf.mxu3  ;;  %1312 = vmatpush.msrb.mxu3 %v1215_v43 }
 0x483   : > { %v3764_v59 = vpop.eup %3763  ;;  %v867_v14 = vadd.f32 %v866_v0, %v4340_v50 }
 0x484   : > { %v3766_v62 = vpop.eup %3765  ;;  %v1112_v60 = vmul.f32 %v3764_v59, %v3744_v25 }
 0x485   : > { %v970_v63 = vmul.f32 %v3766_v62, %v3746_v5 }
 0x487   : > { %3467 = vmatmul.msk.f32.gmra.mxu1 %vm5449_vm3, %v970_v63  ;;  %3479 = vmatmul.msk.f32.gmra.mxu3 %vm5449_vm3, %v1112_v60 }
 0x48a   : > { %v869_v4 = vpop.f32.mrf.mxu3 }
 0x48b   : > { %v870_v45 = vadd.f32 %v869_v4, %v4342_v7  ;;  %v1206_v7 = vld [vmem:[#allocation2 + $0x88] sm:$0xff] }
 0x48c   : > { %1251 = vmatpush.msrb.mxu1 %v1206_v7 }
 0x48e   : > { %1252 = vmatpush.msrb.mxu1 %v1205_v42 }
 0x492   : > { %v872_v6 = vpop.f32.mrf.mxu3 }
 0x493   : > { %v1004_v9 = vpop.f32.mrf.mxu1  ;;  %v873_v27 = vadd.f32 %v872_v6, %v4344_v51  ;;  %v1210_v51 = vld [vmem:[#allocation2 + $0xa0] sm:$0xff] }
 0x494   : > { %v1016_v20 = vadd.f32 %v1004_v9, %v867_v14  ;;  %1282 = vmatpush.msra.mxu2 %v1210_v51 }
 0x49a   : > { %v875_v8 = vpop.f32.mrf.mxu3 }
 0x49b   : > { %v876_v19 = vadd.f32 %v875_v8, %v4346_v54  ;;  %v4453_v54 = vld [vmem:[%s5442_s1 + $0x10] sm:$0xff] }
 0x49c   : > { %v1162_v35 = vperm.slane %v4453_v54, 0  ;;  %v1266_v59 = vperm.slane %v4453_v54, 2  ;;  %v1296_v62 = vperm.slane %v4453_v54, 3  ;;  %v1224_v15 = vperm.slane %v4453_v54, 1 }
 0x4f1   : > { %v1146_v21 = vpop.f32.mrf.mxu3 }
 0x4f2   : > { %v1158_v22 = vadd.f32 %v1146_v21, %v1016_v20 }
 0x4f3   : > { %v1007_v23 = vpop.f32.mrf.mxu1 }
 0x4f4   : > { %3480 = vmatmul.msk.f32.vlgmr.msrb.gmra.mxu0 %vm5449_vm3, %v1158_v22  ;;  %v1017_v25 = vadd.f32 %v1007_v23, %v870_v45 }
 0x4fa   : > { %v1149_v5 = vpop.f32.mrf.mxu3 }
 0x4fb   : > { %v1159_v50 = vadd.f32 %v1149_v5, %v1017_v25 }
 0x4fc   : > { %v1010_v26 = vpop.f32.mrf.mxu1 }
 0x4fd   : > { %3481 = vmatmul.msk.f32.gmra.mxu0 %vm5449_vm3, %v1159_v50  ;;  %v1018_v30 = vadd.f32 %v1010_v26, %v873_v27 }
 0x502   : > { %v1152_v31 = vpop.f32.mrf.mxu3 }
 0x503   : > { %v1160_v32 = vadd.f32 %v1152_v31, %v1018_v30 }
 0x504   : > { %v1013_v33 = vpop.f32.mrf.mxu1 }
 0x505   : > { %3482 = vmatmul.msk.f32.gmra.mxu0 %vm5449_vm3, %v1160_v32  ;;  %v1019_v34 = vadd.f32 %v1013_v33, %v876_v19 }
 0x50a   : > { %v1155_v61 = vpop.f32.mrf.mxu3 }
 0x50b   : > { %v1161_v29 = vadd.f32 %v1155_v61, %v1019_v34 }
 0x50d   : > { %3483 = vmatmul.msk.f32.gmra.mxu0 %vm5449_vm3, %v1161_v29 }
 0x571   : > { %v1192_v44 = vpop.f32.mrf.mxu0 }
 0x572   : > { %v4456_v46 = vadd.f32 %v1192_v44, %v1162_v35 }
 0x574   : > { %3484 = vmatmul.msk.f32.vlgmr.msrb.gmra.mxu1 %vm5449_vm3, %v4456_v46  ;;  %3488 = vmatmul.msk.f32.vlgmr.msra.gmra.mxu2 %vm5449_vm3, %v4456_v46 }
 0x575   : > { %3492 = vmatmul.msk.f32.vlgmr.msrb.gmra.mxu3 %vm5449_vm3, %v4456_v46 }
 0x57a   : > { %v1195_v37 = vpop.f32.mrf.mxu0 }
 0x57b   : > { %v4464_v36 = vadd.f32 %v1195_v37, %v1162_v35 }
 0x57d   : > { %3485 = vmatmul.msk.f32.gmra.mxu1 %vm5449_vm3, %v4464_v36  ;;  %3489 = vmatmul.msk.f32.gmra.mxu2 %vm5449_vm3, %v4464_v36 }
 0x57e   : > { %3493 = vmatmul.msk.f32.gmra.mxu3 %vm5449_vm3, %v4464_v36 }
 0x582   : > { %v1198_v47 = vpop.f32.mrf.mxu0 }
 0x583   : > { %v4472_v48 = vadd.f32 %v1198_v47, %v1162_v35 }
 0x585   : > { %3486 = vmatmul.msk.f32.gmra.mxu1 %vm5449_vm3, %v4472_v48  ;;  %3490 = vmatmul.msk.f32.gmra.mxu2 %vm5449_vm3, %v4472_v48 }
 0x586   : > { %3494 = vmatmul.msk.f32.gmra.mxu3 %vm5449_vm3, %v4472_v48 }
 0x58a   : > { %v1201_v49 = vpop.f32.mrf.mxu0 }
 0x58b   : > { %v4480_v18 = vadd.f32 %v1201_v49, %v1162_v35 }
 0x58d   : > { %3487 = vmatmul.msk.f32.gmra.mxu1 %vm5449_vm3, %v4480_v18  ;;  %3491 = vmatmul.msk.f32.gmra.mxu2 %vm5449_vm3, %v4480_v18 }
 0x58e   : > { %3495 = vmatmul.msk.f32.gmra.mxu3 %vm5449_vm3, %v4480_v18 }
 0x5f1   : > { %v1254_v4 = vpop.f32.mrf.mxu1 }
 0x5f2   : > { %v4506_v45 = vadd.f32 %v1254_v4, %v1224_v15 }
 0x5f4   : > { %v1326_v27 = vmul.f32 %v4174_v53, %v4506_v45  ;;  %v1435_v31 = vmul.f32 %v4170_v52, %v4506_v45  ;;  %v1614_v47 = vmul.f32 %v4216_v11, %v4506_v45 }
 0x5f7   : > { %v1284_v55 = vpop.f32.mrf.mxu2 }
 0x5f8   : > { %v1314_v56 = vpop.f32.mrf.mxu3  ;;  %v1285_v25 = vadd.f32 %v1284_v55, %v1266_v59 }
 0x5f9   : > { %v1315_v12 = vadd.f32 %v1314_v56, %v1296_v62 }
 0x5fa   : > { %v1257_v5 = vpop.f32.mrf.mxu1 }
 0x5fb   : > { %v1528_v21 = vmul.f32 %v4170_v52, %v1315_v12  ;;  %v1431_v22 = vmul.f32 %v4174_v53, %v1315_v12  ;;  %v1849_v33 = vmul.f32 %v4198_v2, %v1315_v12  ;;  %v4524_v19 = vadd.f32 %v1257_v5, %v1224_v15 }
 0x5fc   : > { %v1707_v61 = vmul.f32 %v4216_v11, %v1315_v12 }
 0x5fd   : > { %v1327_v7 = vmul.f32 %v4174_v53, %v4524_v19  ;;  %v1436_v39 = vmul.f32 %v4170_v52, %v4524_v19  ;;  %v1615_v49 = vmul.f32 %v4216_v11, %v4524_v19 }
 0x600   : > { %v1287_v57 = vpop.f32.mrf.mxu2 }
 0x601   : > { %v1317_v28 = vpop.f32.mrf.mxu3  ;;  %v1288_v20 = vadd.f32 %v1287_v57, %v1266_v59  ;;  %v267_v57 = vshrl.u32 %v244_v38, 7  ;;  %v5458_v38 = vmov 0 }
 0x602   : > { %v1318_v6 = vadd.f32 %v1317_v28, %v1296_v62  ;;  %v1260_v29 = vpop.f32.mrf.mxu1 }
 0x603   : > { %v4538_v41 = vadd.f32 %v1260_v29, %v1224_v15  ;;  %v351_v28 = vsub.s32 %v267_v57, %v4154_v40 }
 0x604   : > { %v1529_v16 = vmul.f32 %v4170_v52, %v1318_v6  ;;  %v1432_v17 = vmul.f32 %v4174_v53, %v1318_v6  ;;  %v1850_v30 = vmul.f32 %v4198_v2, %v1318_v6  ;;  %v1708_v34 = vmul.f32 %v4216_v11, %v1318_v6 }
 0x605   : > { %v1328_v42 = vmul.f32 %v4174_v53, %v4538_v41  ;;  %v1437_v43 = vmul.f32 %v4170_v52, %v4538_v41  ;;  %v1616_v55 = vmul.f32 %v4216_v11, %v4538_v41  ;;  %vm355_vm14 = vcmp.eq.s32.totalorder %v351_v28, 0 }
 0x606   : > { %vm367_vm15 = vcmp.eq.s32.totalorder %v351_v28, 4294967288  ;;  %vm383_vm1 = vcmp.eq.s32.totalorder %v351_v28, 4294967280  ;;  %vm399_vm6 = vcmp.eq.s32.totalorder %v351_v28, 4294967272 }
 0x607   : > { %vm371_vm0 = vmor %vm355_vm14, %vm367_vm15 }
 0x608   : > { %v1290_v24 = vpop.f32.mrf.mxu2  ;;  %vm387_vm5 = vmor %vm371_vm0, %vm383_vm1 }
 0x609   : > { %v1320_v58 = vpop.f32.mrf.mxu3  ;;  %v1291_v10 = vadd.f32 %v1290_v24, %v1266_v59  ;;  %v268_v24 = vadd.s32 8, %v267_v57  ;;  %vm4571_vm9 = vmor %vm387_vm5, %vm399_vm6 }
 0x60a   : > { %v1321_v1 = vadd.f32 %v1320_v58, %v1296_v62  ;;  %v1263_v51 = vpop.f32.mrf.mxu1  ;;  %v5459_v38 = vsel %vm4571_vm9, 4294967295, %v5458_v38 }
 0x60b   : > { %v4547_v35 = vadd.f32 %v1263_v51, %v1224_v15  ;;  %v352_v58 = vsub.s32 %v268_v24, %v4154_v40 }
 0x60c   : > { %v1530_v13 = vmul.f32 %v4170_v52, %v1321_v1  ;;  %v1433_v14 = vmul.f32 %v4174_v53, %v1321_v1  ;;  %v1851_v50 = vmul.f32 %v4198_v2, %v1321_v1  ;;  %v1709_v32 = vmul.f32 %v4216_v11, %v1321_v1 }
 0x60d   : > { %v1329_v44 = vmul.f32 %v4174_v53, %v4547_v35  ;;  %v1438_v37 = vmul.f32 %v4170_v52, %v4547_v35  ;;  %v1617_v56 = vmul.f32 %v4216_v11, %v4547_v35  ;;  %vm356_vm2 = vcmp.eq.s32.totalorder %v352_v58, 0 }
 0x60e   : > { %vm360_vm4 = vcmp.eq.s32.totalorder %v352_v58, 8  ;;  %vm368_vm8 = vcmp.eq.s32.totalorder %v352_v58, 4294967288  ;;  %vm384_vm13 = vcmp.eq.s32.totalorder %v352_v58, 4294967280  ;;  %vm400_vm1 = vcmp.eq.s32.totalorder %v352_v58, 4294967272 }
 0x60f   : > { %vm364_vm7 = vmor %vm356_vm2, %vm360_vm4 }
 0x610   : > { %v1293_v60 = vpop.f32.mrf.mxu2  ;;  %vm372_vm12 = vmor %vm364_vm7, %vm368_vm8 }
 0x611   : > { %v1294_v63 = vadd.f32 %v1293_v60, %v1266_v59  ;;  %v1323_v0 = vpop.f32.mrf.mxu3  ;;  %v269_v59 = vadd.s32 16, %v267_v57  ;;  %v270_v60 = vadd.s32 24, %v267_v57  ;;  %vm388_vm0 = vmor %vm372_vm12, %vm384_vm13 }
 0x612   : > { %v1324_v3 = vadd.f32 %v1323_v0, %v1296_v62  ;;  %vm4579_vm7 = vmor %vm388_vm0, %vm400_vm1 }
 0x613   : > { %3496 = vmatpush.xpose.msk.msra.mxu0 %vm5449_vm3, %v1294_v63  ;;  %3504 = vmatpush.xpose.msk.msra.mxu1 %vm5449_vm3, %v1294_v63  ;;  %v353_v62 = vsub.s32 %v269_v59, %v4154_v40  ;;  %v354_v0 = vsub.s32 %v270_v60, %v4154_v40 }
 0x614   : > { %v1531_v8 = vmul.f32 %v4170_v52, %v1324_v3  ;;  %v1434_v9 = vmul.f32 %v4174_v53, %v1324_v3  ;;  %v1852_v23 = vmul.f32 %v4198_v2, %v1324_v3  ;;  %v1710_v26 = vmul.f32 %v4216_v11, %v1324_v3 }
 0x615   : > { %vm357_vm10 = vcmp.eq.s32.totalorder %v353_v62, 0  ;;  %vm361_vm11 = vcmp.eq.s32.totalorder %v353_v62, 8  ;;  %vm369_vm15 = vcmp.eq.s32.totalorder %v353_v62, 4294967288  ;;  %vm358_vm2 = vcmp.eq.s32.totalorder %v354_v0, 0 }
 0x616   : > { %1556 = vmatpush.msrb.mxu2 %v1531_v8  ;;  %1597 = vmatpush.msra.mxu3 %v1434_v9  ;;  %vm365_vm14 = vmor %vm357_vm10, %vm361_vm11  ;;  %vm362_vm4 = vcmp.eq.s32.totalorder %v354_v0, 8  ;;  %vm377_vm6 = vcmp.eq.s32.totalorder %v353_v62, 16  ;;  %vm385_vm10 = vcmp.eq.s32.totalorder %v353_v62, 4294967280  ;;  %vm5462_vm11 = vcmask 261120  }
 0x617   : > { %3497 = vmatpush.xpose.msk.msra.mxu0 %vm5449_vm3, %v1291_v10  ;;  %3505 = vmatpush.xpose.msk.msra.mxu1 %vm5449_vm3, %v1291_v10  ;;  %vm373_vm5 = vmor %vm365_vm14, %vm369_vm15  ;;  %vm378_vm13 = vcmp.eq.s32.totalorder %v354_v0, 16  ;;  %vm401_vm15 = vcmp.eq.s32.totalorder %v353_v62, 4294967272  ;;  %vm386_vm1 = vcmp.eq.s32.totalorder %v354_v0, 4294967280 }
 0x618   : > { %1557 = vmatpush.msrb.mxu2 %v1530_v13  ;;  %1598 = vmatpush.msra.mxu3 %v1433_v14  ;;  %vm366_vm8 = vmor %vm358_vm2, %vm362_vm4 }
 0x61a   : > { %1558 = vmatpush.msrb.mxu2 %v1529_v16  ;;  %1599 = vmatpush.msra.mxu3 %v1432_v17 }
 0x61b   : > { %3498 = vmatpush.xpose.msk.msra.mxu0 %vm5449_vm3, %v1288_v20  ;;  %3506 = vmatpush.xpose.msk.msra.mxu1 %vm5449_vm3, %v1288_v20 }
 0x61c   : > { %1559 = vmatpush.msrb.mxu2 %v1528_v21  ;;  %1600 = vmatpush.msra.mxu3 %v1431_v22 }
 0x61e   : > { %3532 = vmatpush.xpose.msk.msra.mxu2 %vm5449_vm3, %v1294_v63  ;;  %1877 = vmatpush.msrb.mxu3 %v1852_v23 }
 0x61f   : > { %3499 = vmatpush.xpose.msk.msra.mxu0 %vm5449_vm3, %v1285_v25  ;;  %3507 = vmatpush.xpose.msk.msra.mxu1 %vm5449_vm3, %v1285_v25 }
 0x620   : > { %1878 = vmatpush.msrb.mxu3 %v1851_v50 }
 0x622   : > { %3533 = vmatpush.xpose.msk.msra.mxu2 %vm5449_vm3, %v1291_v10  ;;  %1879 = vmatpush.msrb.mxu3 %v1850_v30 }
 0x623   : > { %3520 = vmatpush.xpose.msk.msrb.mxu0 %vm5449_vm3, %v1294_v63  ;;  %1735 = vmatpush.msrb.mxu1 %v1710_v26 }
 0x624   : > { %3500 = vmatmul.msk.f32.vlgmr.msra.gmra.mxu0 %vm5449_vm3, %v1326_v27  ;;  %3508 = vmatmul.msk.f32.vlgmr.msra.gmra.mxu1 %vm5449_vm3, %v1435_v31 }
 0x625   : > { %1736 = vmatpush.msrb.mxu1 %v1709_v32  ;;  %1880 = vmatpush.msrb.mxu3 %v1849_v33 }
 0x626   : > { %3534 = vmatpush.xpose.msk.msra.mxu2 %vm5449_vm3, %v1288_v20 }
 0x627   : > { %3521 = vmatpush.xpose.msk.msrb.mxu0 %vm5449_vm3, %v1291_v10  ;;  %1737 = vmatpush.msrb.mxu1 %v1708_v34 }
 0x629   : > { %1738 = vmatpush.msrb.mxu1 %v1707_v61 }
 0x62a   : > { %3535 = vmatpush.xpose.msk.msra.mxu2 %vm5449_vm3, %v1285_v25 }
 0x62b   : > { %3522 = vmatpush.xpose.msk.msrb.mxu0 %vm5449_vm3, %v1288_v20 }
 0x62c   : > { %3501 = vmatmul.msk.f32.gmra.mxu0 %vm5449_vm3, %v1327_v7  ;;  %3509 = vmatmul.msk.f32.gmra.mxu1 %vm5449_vm3, %v1436_v39 }
 0x62f   : > { %3523 = vmatpush.xpose.msk.msrb.mxu0 %vm5449_vm3, %v1285_v25 }
 0x634   : > { %3502 = vmatmul.msk.f32.gmra.mxu0 %vm5449_vm3, %v1328_v42  ;;  %3510 = vmatmul.msk.f32.gmra.mxu1 %vm5449_vm3, %v1437_v43 }
 0x63c   : > { %3503 = vmatmul.msk.f32.gmra.mxu0 %vm5449_vm3, %v1329_v44  ;;  %3511 = vmatmul.msk.f32.gmra.mxu1 %vm5449_vm3, %v1438_v37 }
 0x644   : > { %3524 = vmatmul.msk.f32.vlgmr.msrb.gmra.mxu0 %vm5449_vm3, %v1614_v47 }
 0x64c   : > { %3525 = vmatmul.msk.f32.gmra.mxu0 %vm5449_vm3, %v1615_v49 }
 0x654   : > { %3526 = vmatmul.msk.f32.gmra.mxu0 %vm5449_vm3, %v1616_v55 }
 0x65c   : > { %3527 = vmatmul.msk.f32.gmra.mxu0 %vm5449_vm3, %v1617_v56 }
 0x6a1   : > { %v1468_v63 = vpop.f32.mrf.mxu1  ;;  %v1371_v21 = vpop.f32.mrf.mxu0 }
 0x6a2   : > { %v1480_v1 = vsel %vm4571_vm9, %v1468_v63, -1e+30  ;;  %vm370_vm9 = vcmp.eq.s32.totalorder %v354_v0, 4294967288 }
 0x6a3   : > { %v1484_v3 = vsel %vm5449_vm3, %v1480_v1, -inf  ;;  %vm381_vm3 = vmor %vm373_vm5, %vm377_vm6  ;;  %vm394_vm5 = vcmp.eq.s32.totalorder %v354_v0, 24 }
 0x6a4   : > { %1485 = vmax.xlane.f32.xlu2 %v1484_v3  ;;  %vm374_vm12 = vmor %vm366_vm8, %vm370_vm9  ;;  %vm402_vm8 = vcmp.eq.s32.totalorder %v354_v0, 4294967272 }
 0x6a5   : > { %vm389_vm14 = vmor %vm381_vm3, %vm385_vm10 }
 0x6a6   : > { %vm382_vm0 = vmor %vm374_vm12, %vm378_vm13  ;;  %vm5471_vm13 = vnez %v5459_v38 }
 0x6a7   : > { %vm4586_vm2 = vmor %vm389_vm14, %vm401_vm15  ;;  %v4604_v42 = vsel %vm5471_vm13, %v1371_v21, -1e+30  ;;  %v1757_v21 = vmul.f32 %v4198_v2, %v4524_v19 }
 0x6a8   : > { %vm390_vm4 = vmor %vm382_vm0, %vm386_vm1 }
 0x6a9   : > { %v1471_v40 = vpop.f32.mrf.mxu1  ;;  %vm5465_vm6 = vmmov %vm5462_vm11  ;;  %v1374_v26 = vpop.f32.mrf.mxu0 }
 0x6aa   : > { %v1481_v6 = vsel %vm4579_vm7, %v1471_v40, -1e+30  ;;  %vm398_vm9 = vmor %vm390_vm4, %vm394_vm5  ;;  %v4611_v49 = vsel %vm4579_vm7, %v1374_v26, -1e+30 }
 0x6ab   : > { %v1487_v8 = vsel %vm5462_vm11, %v1481_v6, -inf  ;;  %vm4593_vm11 = vmor %vm398_vm9, %vm402_vm8 }
 0x6ac   : > { %1488 = vmax.xlane.f32.xlu0 %v1487_v8  ;;  %vm5468_vm3 = vmmov %vm5465_vm6 }
 0x6ad   : > { %vm5469_vm10 = vmmov %vm5468_vm3 }
 0x6ae   : > { %vm5470_vm12 = vmmov %vm5468_vm3 }
 0x6af   : > { %vm5472_vm14 = vmmov %vm5468_vm3 }
 0x6b0   : > { %v1387_v44 = vsel %vm5472_vm14, %v4604_v42, -inf  ;;  %vm5473_vm15 = vmmov %vm5468_vm3 }
 0x6b1   : > { %v1474_v10 = vpop.f32.mrf.mxu1  ;;  %v1377_v29 = vpop.f32.mrf.mxu0  ;;  %vm5474_vm0 = vmmov %vm5468_vm3 }
 0x6b2   : > { %v1482_v12 = vsel %vm4586_vm2, %v1474_v10, -1e+30  ;;  %v1390_v57 = vsel %vm5474_vm0, %v4611_v49, -inf  ;;  %vm5475_vm1 = vmmov %vm5474_vm0  ;;  %v4624_v58 = vsel %vm4586_vm2, %v1377_v29, -1e+30 }
 0x6b3   : > { %v1490_v13 = vsel %vm5465_vm6, %v1482_v12, -inf  ;;  %vm5476_vm4 = vmmov %vm5474_vm0 }
 0x6b4   : > { %1491 = vmax.xlane.f32.xlu1 %v1490_v13  ;;  %vm5477_vm5 = vmmov %vm5474_vm0 }
 0x6b5   : > { %v1393_v59 = vsel %vm5477_vm5, %v4624_v58, -inf  ;;  %vm5478_vm6 = vmmov %vm5474_vm0 }
 0x6b6   : > { %vm5479_vm9 = vmmov %vm5474_vm0 }
 0x6b7   : > { %vm5480_vm8 = vmmov %vm5474_vm0 }
 0x6b8   : > { %vm5484_vm14 = vmmov %vm5474_vm0 }
 0x6b9   : > { %v1477_v15 = vpop.f32.mrf.mxu1  ;;  %v1380_v47 = vpop.f32.mrf.mxu0  ;;  %vm5488_vm5 = vmmov %vm5474_vm0 }
 0x6ba   : > { %v1483_v16 = vsel %vm4593_vm11, %v1477_v15, -1e+30  ;;  %v4615_v55 = vsel %vm4593_vm11, %v1380_v47, -1e+30 }
 0x6bb   : > { %v1493_v17 = vsel %vm5468_vm3, %v1483_v16, -inf  ;;  %v1396_v24 = vsel %vm5476_vm4, %v4615_v55, -inf  ;;  %vm5481_vm3 = vmmov %vm5474_vm0 }
 0x6bc   : > { %1494 = vmax.xlane.f32.xlu2 %v1493_v17  ;;  %vm5487_vm4 = vmmov %vm5474_vm0 }
 0x6c1   : > { %v1647_v62 = vpop.f32.mrf.mxu0 }
 0x6c2   : > { %v4630_v60 = vsel %vm5471_vm13, %v1647_v62, -1e+30 }
 0x6c3   : > { %v1663_v63 = vsel %vm5478_vm6, %v4630_v60, -inf  ;;  %vm5489_vm6 = vmmov %vm5474_vm0 }
 0x6c9   : > { %v1650_v26 = vpop.f32.mrf.mxu0 }
 0x6d1   : > { %v1653_v29 = vpop.f32.mrf.mxu0 }
 0x717   : > { %v1486_v20 = vpop.xlane.xlu2 %1485 }
 0x718   : > { %v1496_v22 = vsub.f32 %v1480_v1, %v1486_v20  ;;  %v1756_v20 = vmul.f32 %v4198_v2, %v4506_v45 }
 0x71a   : > { %v1500_v23 = vmul.f32 1.442695, %v1496_v22  ;;  %v1758_v22 = vmul.f32 %v4198_v2, %v4538_v41 }
 0x71c   : > { %3767 = vpow2.f32 %v1500_v23  ;;  %v1759_v23 = vmul.f32 %v4198_v2, %v4547_v35 }
 0x71f   : > { %v1489_v25 = vpop.xlane.xlu0 %1488 }
 0x720   : > { %v1497_v5 = vsub.f32 %v1481_v6, %v1489_v25 }
 0x722   : > { %v3768_v50 = vpop.eup %3767  ;;  %v1502_v27 = vmul.f32 1.442695, %v1497_v5 }
 0x723   : > { %v1508_v30 = vsel %vm5469_vm10, %v3768_v50, 0.0  ;;  %vm5482_vm10 = vmmov %vm5474_vm0 }
 0x724   : > { %3769 = vpow2.f32 %v1502_v27  ;;  %1509 = vadd.xlane.f32.xlu0 %v1508_v30 }
 0x727   : > { %v1492_v31 = vpop.xlane.xlu1 %1491 }
 0x728   : > { %v1498_v32 = vsub.f32 %v1482_v12, %v1492_v31 }
 0x72a   : > { %v3770_v33 = vpop.eup %3769  ;;  %v1504_v34 = vmul.f32 1.442695, %v1498_v32  ;;  %v4664_v32 = vsel %vm4579_vm7, %v1650_v26, -1e+30 }
 0x72b   : > { %v1511_v61 = vsel %vm5470_vm12, %v3770_v33, 0.0  ;;  %vm5483_vm12 = vmmov %vm5474_vm0 }
 0x72c   : > { %3771 = vpow2.f32 %v1504_v34  ;;  %1512 = vadd.xlane.f32.xlu1 %v1511_v61 }
 0x72f   : > { %v1495_v7 = vpop.xlane.xlu2 %1494 }
 0x730   : > { %v1499_v39 = vsub.f32 %v1483_v16, %v1495_v7 }
 0x732   : > { %v3772_v51 = vpop.eup %3771  ;;  %v1506_v43 = vmul.f32 1.442695, %v1499_v39  ;;  %v1666_v39 = vsel %vm5487_vm4, %v4664_v32, -inf  ;;  %vm5498_vm4 = vmmov %vm5474_vm0 }
 0x733   : > { %v1514_v37 = vsel %vm5473_vm15, %v3772_v51, 0.0  ;;  %vm5485_vm15 = vmmov %vm5474_vm0 }
 0x734   : > { %3773 = vpow2.f32 %v1506_v43  ;;  %1388 = vmax.xlane.f32.xlu1 %v1387_v44  ;;  %1515 = vadd.xlane.f32.xlu2 %v1514_v37  ;;  %v4674_v44 = vsel %vm4586_vm2, %v1653_v29, -1e+30 }
 0x73a   : > { %v3774_v56 = vpop.eup %3773 }
 0x73b   : > { %v1517_v28 = vsel %vm5475_vm1, %v3774_v56, 0.0  ;;  %vm5486_vm1 = vmmov %vm5474_vm0 }
 0x73c   : > { %1391 = vmax.xlane.f32.xlu2 %v1390_v57  ;;  %1518 = vadd.xlane.f32.xlu0 %v1517_v28 }
 0x73d   : > { %1397 = vmax.xlane.f32.xlu1 %v1396_v24 }
 0x744   : > { %1394 = vmax.xlane.f32.xlu0 %v1393_v59 }
 0x74c   : > { %1664 = vmax.xlane.f32.xlu0 %v1663_v63  ;;  %v1656_v63 = vpop.f32.mrf.mxu0 }
 0x797   : > { %v1510_v0 = vpop.xlane.xlu0 %1509 }
 0x798   : > { %3775 = vrcp.f32 %v1510_v0 }
 0x79e   : > { %v3776_v1 = vpop.eup %3775 }
 0x79f   : > { %v1524_v3 = vmul.f32 %v3776_v1, %v3768_v50  ;;  %v1513_v40 = vpop.xlane.xlu1 %1512 }
 0x7a0   : > { %3777 = vrcp.f32 %v1513_v40 }
 0x7a1   : > { %3512 = vmatmul.msk.f32.vlgmr.msrb.gmra.mxu2 %vm5479_vm9, %v1524_v3  ;;  %vm5490_vm9 = vmmov %vm5474_vm0  ;;  %v4689_v3 = vsel %vm4593_vm11, %v1656_v63, -1e+30 }
 0x7a2   : > { %v1669_v59 = vsel %vm5490_vm9, %v4674_v44, -inf  ;;  %vm5501_vm9 = vmmov %vm5474_vm0 }
 0x7a6   : > { %v3778_v6 = vpop.eup %3777 }
 0x7a7   : > { %v1516_v8 = vpop.xlane.xlu2 %1515  ;;  %v1525_v10 = vmul.f32 %v3778_v6, %v3770_v33  ;;  %v1389_v19 = vpop.xlane.xlu1 %1388 }
 0x7a8   : > { %3779 = vrcp.f32 %v1516_v8  ;;  %v1399_v30 = vsub.f32 %v4604_v42, %v1389_v19 }
 0x7a9   : > { %3513 = vmatmul.msk.f32.gmra.mxu2 %vm5480_vm8, %v1525_v10  ;;  %vm5491_vm8 = vmmov %vm5474_vm0 }
 0x7aa   : > { %v1403_v31 = vmul.f32 1.442695, %v1399_v30 }
 0x7ae   : > { %v3780_v12 = vpop.eup %3779 }
 0x7af   : > { %v1519_v13 = vpop.xlane.xlu0 %1518  ;;  %v1526_v15 = vmul.f32 %v3780_v12, %v3772_v51  ;;  %v1392_v33 = vpop.xlane.xlu2 %1391 }
 0x7b0   : > { %3781 = vrcp.f32 %v1519_v13  ;;  %v1400_v7 = vsub.f32 %v4611_v49, %v1392_v33  ;;  %v1398_v37 = vpop.xlane.xlu1 %1397 }
 0x7b1   : > { %3514 = vmatmul.msk.f32.gmra.mxu2 %vm5481_vm3, %v1526_v15  ;;  %3783 = vpow2.f32 %v1403_v31  ;;  %v1402_v28 = vsub.f32 %v4615_v55, %v1398_v37  ;;  %vm5492_vm3 = vmmov %vm5474_vm0 }
 0x7b2   : > { %v1405_v43 = vmul.f32 1.442695, %v1400_v7 }
 0x7b4   : > { %3785 = vpow2.f32 %v1405_v43 }
 0x7b6   : > { %v3782_v16 = vpop.eup %3781 }
 0x7b7   : > { %v1527_v17 = vmul.f32 %v3782_v16, %v3774_v56  ;;  %v1395_v51 = vpop.xlane.xlu0 %1394  ;;  %v4676_v47 = vpop.eup %3783 }
 0x7b8   : > { %v1401_v57 = vsub.f32 %v4624_v58, %v1395_v51  ;;  %v1411_v62 = vsel %vm5491_vm8, %v4676_v47, 0.0  ;;  %v1409_v58 = vmul.f32 1.442695, %v1402_v28  ;;  %vm5502_vm8 = vmmov %vm5474_vm0 }
 0x7b9   : > { %3515 = vmatmul.msk.f32.gmra.mxu2 %vm5482_vm10, %v1527_v17  ;;  %vm5493_vm10 = vmmov %vm5474_vm0 }
 0x7ba   : > { %v1407_v0 = vmul.f32 1.442695, %v1401_v57  ;;  %v4691_v55 = vpop.eup %3785  ;;  %v1672_v12 = vsel %vm5493_vm10, %v4689_v3, -inf  ;;  %vm5504_vm10 = vmmov %vm5474_vm0 }
 0x7bc   : > { %3787 = vpow2.f32 %v1407_v0 }
 0x7bd   : > { %3789 = vpow2.f32 %v1409_v58 }
 0x7bf   : > { %v1665_v1 = vpop.xlane.xlu0 %1664 }
 0x7c0   : > { %v1675_v6 = vsub.f32 %v4630_v60, %v1665_v1 }
 0x7c1   : > { %3536 = vmatmul.msk.f32.vlgmr.msra.gmra.mxu2 %vm5483_vm12, %v1756_v20  ;;  %vm5494_vm12 = vmmov %vm5474_vm0 }
 0x7c2   : > { %v1414_v13 = vsel %vm5494_vm12, %v4691_v55, 0.0  ;;  %v1679_v15 = vmul.f32 1.442695, %v1675_v6  ;;  %v4701_v16 = vpop.eup %3787  ;;  %vm5505_vm12 = vmmov %vm5474_vm0 }
 0x7c3   : > { %v4703_v17 = vpop.eup %3789 }
 0x7c4   : > { %3791 = vpow2.f32 %v1679_v15 }
 0x7c9   : > { %3537 = vmatmul.msk.f32.gmra.mxu2 %vm5484_vm14, %v1757_v21  ;;  %vm5495_vm14 = vmmov %vm5474_vm0 }
 0x7ca   : > { %v1417_v60 = vsel %vm5495_vm14, %v4701_v16, 0.0  ;;  %v4709_v21 = vpop.eup %3791  ;;  %vm5506_vm14 = vmmov %vm5474_vm0 }
 0x7d1   : > { %3538 = vmatmul.msk.f32.gmra.mxu2 %vm5485_vm15, %v1758_v22  ;;  %vm5496_vm15 = vmmov %vm5474_vm0  ;;  %v1687_v22 = vsel %vm5474_vm0, %v4709_v21, 0.0 }
 0x7d2   : > { %v1420_v20 = vsel %vm5496_vm15, %v4703_v17, 0.0  ;;  %vm5507_vm15 = vmmov %vm5474_vm0 }
 0x7d9   : > { %3539 = vmatmul.msk.f32.gmra.mxu2 %vm5474_vm0, %v1759_v23 }
 0x824   : > { %v4650_v25 = vpop.f32.mrf.mxu2 }
 0x82c   : > { %v4652_v45 = vpop.f32.mrf.mxu2 }
 0x834   : > { %v4654_v5 = vpop.f32.mrf.mxu2 }
 0x83c   : > { %v4656_v50 = vpop.f32.mrf.mxu2 }
 0x844   : > { %v1789_v27 = vpop.f32.mrf.mxu2 }
 0x845   : > { %v1801_v41 = vsel %vm5471_vm13, %v1789_v27, -1e+30 }
 0x846   : > { %v1805_v35 = vsel %vm5486_vm1, %v1801_v41, -inf  ;;  %vm5497_vm1 = vmmov %vm5474_vm0 }
 0x847   : > { %1806 = vmax.xlane.f32.xlu2 %v1805_v35 }
 0x84c   : > { %v1792_v34 = vpop.f32.mrf.mxu2 }
 0x84d   : > { %v1802_v61 = vsel %vm4579_vm7, %v1792_v34, -1e+30 }
 0x84e   : > { %v1808_v42 = vsel %vm5488_vm5, %v1802_v61, -inf  ;;  %vm5499_vm5 = vmmov %vm5474_vm0 }
 0x84f   : > { %1667 = vmax.xlane.f32.xlu2 %v1666_v39  ;;  %1809 = vmax.xlane.f32.xlu1 %v1808_v42 }
 0x854   : > { %v1795_v56 = vpop.f32.mrf.mxu2 }
 0x855   : > { %v1803_v49 = vsel %vm4586_vm2, %v1795_v56, -1e+30 }
 0x856   : > { %v1811_v24 = vsel %vm5489_vm6, %v1803_v49, -inf  ;;  %vm5500_vm6 = vmmov %vm5474_vm0 }
 0x857   : > { %1812 = vmax.xlane.f32.xlu0 %v1811_v24  ;;  %1670 = vmax.xlane.f32.xlu2 %v1669_v59 }
 0x858   : > { %1412 = vadd.xlane.f32.xlu1 %v1411_v62 }
 0x85c   : > { %v1798_v40 = vpop.f32.mrf.mxu2 }
 0x85d   : > { %v1804_v8 = vsel %vm4593_vm11, %v1798_v40, -1e+30 }
 0x85e   : > { %v1814_v10 = vsel %vm5492_vm3, %v1804_v8, -inf  ;;  %vm5503_vm3 = vmmov %vm5474_vm0 }
 0x85f   : > { %1815 = vmax.xlane.f32.xlu0 %v1814_v10  ;;  %1673 = vmax.xlane.f32.xlu2 %v1672_v12 }
 0x860   : > { %1415 = vadd.xlane.f32.xlu1 %v1414_v13 }
 0x867   : > { %1418 = vadd.xlane.f32.xlu0 %v1417_v60 }
 0x868   : > { %1421 = vadd.xlane.f32.xlu1 %v1420_v20 }
 0x86f   : > { %1688 = vadd.xlane.f32.xlu0 %v1687_v22 }
 0x8ba   : > { %v1807_v23 = vpop.xlane.xlu2 %1806 }
 0x8bb   : > { %v1817_v19 = vsub.f32 %v1801_v41, %v1807_v23 }
 0x8bd   : > { %v1821_v26 = vmul.f32 1.442695, %v1817_v19 }
 0x8bf   : > { %3793 = vpow2.f32 %v1821_v26 }
 0x8c2   : > { %v1668_v27 = vpop.xlane.xlu2 %1667  ;;  %v1810_v30 = vpop.xlane.xlu1 %1809 }
 0x8c3   : > { %v1676_v35 = vsub.f32 %v4664_v32, %v1668_v27  ;;  %v1818_v31 = vsub.f32 %v1802_v61, %v1810_v30 }
 0x8c5   : > { %v4714_v33 = vpop.eup %3793  ;;  %v1681_v34 = vmul.f32 1.442695, %v1676_v35  ;;  %v1823_v29 = vmul.f32 1.442695, %v1818_v31 }
 0x8c6   : > { %v1829_v7 = vsel %vm5497_vm1, %v4714_v33, 0.0  ;;  %vm5508_vm1 = vmmov %vm5474_vm0 }
 0x8c7   : > { %3795 = vpow2.f32 %v1681_v34  ;;  %1830 = vadd.xlane.f32.xlu2 %v1829_v7 }
 0x8c8   : > { %3797 = vpow2.f32 %v1823_v29 }
 0x8ca   : > { %v1813_v39 = vpop.xlane.xlu0 %1812  ;;  %v1671_v42 = vpop.xlane.xlu2 %1670 }
 0x8cb   : > { %v1819_v41 = vsub.f32 %v1803_v49, %v1813_v39  ;;  %v1677_v51 = vsub.f32 %v4674_v44, %v1671_v42  ;;  %v1413_v43 = vpop.xlane.xlu1 %1412 }
 0x8cc   : > { %3799 = vrcp.f32 %v1413_v43  ;;  %v1223_v43 = vld [vmem:[#allocation2 + $0xf8] sm:$0xff] }
 0x8cd   : > { %v4719_v37 = vpop.eup %3795  ;;  %v1825_v32 = vmul.f32 1.442695, %v1819_v41  ;;  %v1683_v61 = vmul.f32 1.442695, %v1677_v51  ;;  %1923 = vmatpush.msra.mxu0 %v1223_v43 }
 0x8ce   : > { %v4721_v56 = vpop.eup %3797  ;;  %v1690_v57 = vsel %vm5498_vm4, %v4719_v37, 0.0  ;;  %vm5509_vm4 = vmmov %vm5474_vm0 }
 0x8cf   : > { %3801 = vpow2.f32 %v1825_v32  ;;  %1691 = vadd.xlane.f32.xlu2 %v1690_v57  ;;  %v1832_v28 = vsel %vm5499_vm5, %v4721_v56, 0.0  ;;  %vm5510_vm5 = vmmov %vm5474_vm0  ;;  %v1222_v32 = vld [vmem:[#allocation2 + $0xf0] sm:$0xff] }
 0x8d0   : > { %3803 = vpow2.f32 %v1683_v61  ;;  %1833 = vadd.xlane.f32.xlu1 %v1832_v28  ;;  %1924 = vmatpush.msra.mxu0 %v1222_v32  ;;  %v4033_v32 = vmov 32.0  }
 0x8d2   : > { %v3800_v49 = vpop.eup %3799  ;;  %v1816_v44 = vpop.xlane.xlu0 %1815 }
 0x8d3   : > { %v1674_v24 = vpop.xlane.xlu2 %1673  ;;  %v1427_v59 = vmul.f32 %v3800_v49, %v4676_v47  ;;  %v1820_v62 = vsub.f32 %v1804_v8, %v1816_v44  ;;  %v1416_v0 = vpop.xlane.xlu1 %1415 }
 0x8d4   : > { %v1678_v63 = vsub.f32 %v4689_v3, %v1674_v24  ;;  %3805 = vrcp.f32 %v1416_v0  ;;  %v1220_v0 = vld [vmem:[#allocation2 + $0xe0] sm:$0xff] }
 0x8d5   : > { %v3802_v58 = vpop.eup %3801  ;;  %v1827_v1 = vmul.f32 1.442695, %v1820_v62  ;;  %3516 = vmatmul.msk.f32.vlgmr.msra.gmra.mxu3 %vm5500_vm6, %v1427_v59  ;;  %vm5511_vm6 = vmmov %vm5474_vm0 }
 0x8d6   : > { %v1685_v40 = vmul.f32 1.442695, %v1678_v63  ;;  %v3804_v6 = vpop.eup %3803  ;;  %v1835_v10 = vsel %vm5501_vm9, %v3802_v58, 0.0  ;;  %vm5512_vm9 = vmmov %vm5474_vm0  ;;  %v1221_v63 = vld [vmem:[#allocation2 + $0xe8] sm:$0xff] }
 0x8d7   : > { %3807 = vpow2.f32 %v1827_v1  ;;  %1836 = vadd.xlane.f32.xlu0 %v1835_v10  ;;  %v1693_v12 = vsel %vm5502_vm8, %v3804_v6, 0.0  ;;  %vm5513_vm8 = vmmov %vm5474_vm0  ;;  %1925 = vmatpush.msra.mxu0 %v1221_v63 }
 0x8d8   : > { %3809 = vpow2.f32 %v1685_v40  ;;  %1694 = vadd.xlane.f32.xlu1 %v1693_v12 }
 0x8d9   : > { %1926 = vmatpush.msra.mxu0 %v1220_v0 }
 0x8da   : > { %v3806_v47 = vpop.eup %3805  ;;  %v1419_v8 = vpop.xlane.xlu0 %1418 }
 0x8db   : > { %3811 = vrcp.f32 %v1419_v8  ;;  %v1428_v3 = vmul.f32 %v3806_v47, %v4691_v55  ;;  %v1422_v20 = vpop.xlane.xlu1 %1421 }
 0x8dc   : > { %3813 = vrcp.f32 %v1422_v20 }
 0x8dd   : > { %v3808_v13 = vpop.eup %3807  ;;  %3517 = vmatmul.msk.f32.gmra.mxu3 %vm5503_vm3, %v1428_v3  ;;  %vm5514_vm3 = vmmov %vm5474_vm0 }
 0x8de   : > { %v3810_v15 = vpop.eup %3809  ;;  %v1838_v60 = vsel %vm5504_vm10, %v3808_v13, 0.0  ;;  %vm5515_vm10 = vmmov %vm5474_vm0 }
 0x8df   : > { %1839 = vadd.xlane.f32.xlu2 %v1838_v60  ;;  %v1696_v22 = vsel %vm5505_vm12, %v3810_v15, 0.0  ;;  %vm5516_vm12 = vmmov %vm5474_vm0 }
 0x8e0   : > { %1697 = vadd.xlane.f32.xlu0 %v1696_v22 }
 0x8e1   : > { %v3812_v23 = vpop.eup %3811 }
 0x8e2   : > { %v1689_v19 = vpop.xlane.xlu0 %1688  ;;  %v1429_v26 = vmul.f32 %v3812_v23, %v4701_v16  ;;  %v3814_v55 = vpop.eup %3813 }
 0x8e3   : > { %3815 = vrcp.f32 %v1689_v19  ;;  %v1430_v35 = vmul.f32 %v3814_v55, %v4703_v17 }
 0x8e5   : > { %3518 = vmatmul.msk.f32.gmra.mxu3 %vm5506_vm14, %v1429_v26  ;;  %vm5517_vm14 = vmmov %vm5474_vm0 }
 0x8e9   : > { %v3816_v27 = vpop.eup %3815 }
 0x8ea   : > { %v1703_v30 = vmul.f32 %v3816_v27, %v4709_v21 }
 0x8ec   : > { %3528 = vmatmul.msk.f32.vlgmr.msrb.gmra.mxu1 %vm5507_vm15, %v1703_v30  ;;  %vm5518_vm15 = vmmov %vm5474_vm0 }
 0x8ed   : > { %3519 = vmatmul.msk.f32.gmra.mxu3 %vm5474_vm0, %v1430_v35 }
 0x93a   : > { %v1831_v31 = vpop.xlane.xlu2 %1830 }
 0x93b   : > { %3817 = vrcp.f32 %v1831_v31 }
 0x941   : > { %v3818_v34 = vpop.eup %3817 }
 0x942   : > { %v1845_v29 = vmul.f32 %v3818_v34, %v4714_v33  ;;  %v1692_v7 = vpop.xlane.xlu2 %1691 }
 0x943   : > { %3819 = vrcp.f32 %v1692_v7  ;;  %v1834_v16 = vpop.xlane.xlu1 %1833 }
 0x944   : > { %3821 = vrcp.f32 %v1834_v16  ;;  %3540 = vmatmul.msk.f32.vlgmr.msrb.gmra.mxu3 %vm5508_vm1, %v1845_v29  ;;  %vm5519_vm1 = vmmov %vm5474_vm0 }
 0x949   : > { %v3820_v39 = vpop.eup %3819 }
 0x94a   : > { %v3822_v42 = vpop.eup %3821  ;;  %v1837_v21 = vpop.xlane.xlu0 %1836  ;;  %v1704_v17 = vmul.f32 %v3820_v39, %v4719_v37 }
 0x94b   : > { %3823 = vrcp.f32 %v1837_v21  ;;  %v1695_v41 = vpop.xlane.xlu1 %1694  ;;  %v1846_v51 = vmul.f32 %v3822_v42, %v4721_v56 }
 0x94c   : > { %3825 = vrcp.f32 %v1695_v41  ;;  %3529 = vmatmul.msk.f32.gmra.mxu1 %vm5509_vm4, %v1704_v17  ;;  %vm5520_vm4 = vmmov %vm5474_vm0 }
 0x94d   : > { %3541 = vmatmul.msk.f32.gmra.mxu3 %vm5510_vm5, %v1846_v51  ;;  %vm5521_vm5 = vmmov %vm5474_vm0 }
 0x951   : > { %v3824_v33 = vpop.eup %3823 }
 0x952   : > { %v3826_v61 = vpop.eup %3825  ;;  %v1840_v57 = vpop.xlane.xlu2 %1839  ;;  %v1847_v28 = vmul.f32 %v3824_v33, %v3802_v58 }
 0x953   : > { %v1698_v49 = vpop.xlane.xlu0 %1697  ;;  %3827 = vrcp.f32 %v1840_v57  ;;  %v1705_v44 = vmul.f32 %v3826_v61, %v3804_v6 }
 0x954   : > { %3829 = vrcp.f32 %v1698_v49 }
 0x955   : > { %3530 = vmatmul.msk.f32.gmra.mxu1 %vm5511_vm6, %v1705_v44  ;;  %3542 = vmatmul.msk.f32.gmra.mxu3 %vm5512_vm9, %v1847_v28  ;;  %3831 = vrcp.f32 %v4033_v32  ;;  %vm5522_vm9 = vmmov %vm5474_vm0  ;;  %v2112_v32 = vld [vmem:[%s5445_s4 + $0x68] sm:$0xff] }
 0x958   : > { %v1602_v62 = vpop.f32.mrf.mxu3 }
 0x959   : > { %v3828_v37 = vpop.eup %3827  ;;  %v1603_v10 = vadd.f32 %v1602_v62, %v4650_v25 }
 0x95a   : > { %v3830_v56 = vpop.eup %3829  ;;  %v1848_v24 = vmul.f32 %v3828_v37, %v3808_v13 }
 0x95b   : > { %v1706_v59 = vmul.f32 %v3830_v56, %v3810_v15 }
 0x95d   : > { %3531 = vmatmul.msk.f32.gmra.mxu1 %vm5513_vm8, %v1706_v59  ;;  %3543 = vmatmul.msk.f32.gmra.mxu3 %vm5514_vm3, %v1848_v24  ;;  %vm5523_vm8 = vmmov %vm5474_vm0 }
 0x95e   : > { %vm5524_vm3 = vmmov %vm5474_vm0 }
 0x960   : > { %v1605_v58 = vpop.f32.mrf.mxu3 }
 0x961   : > { %v1606_v13 = vadd.f32 %v1605_v58, %v4652_v45  ;;  %v1898_v45 = vperm.slane %v4453_v54, 4 }
 0x968   : > { %v1608_v1 = vpop.f32.mrf.mxu3 }
 0x969   : > { %v1740_v6 = vpop.f32.mrf.mxu1  ;;  %v1609_v23 = vadd.f32 %v1608_v1, %v4654_v5 }
 0x96a   : > { %v1752_v12 = vadd.f32 %v1740_v6, %v1603_v10 }
 0x970   : > { %v1611_v40 = vpop.f32.mrf.mxu3 }
 0x971   : > { %v1612_v27 = vadd.f32 %v1611_v40, %v4656_v50 }
 0x9c7   : > { %v1882_v47 = vpop.f32.mrf.mxu3 }
 0x9c8   : > { %v1894_v8 = vadd.f32 %v1882_v47, %v1752_v12 }
 0x9c9   : > { %v1743_v3 = vpop.f32.mrf.mxu1 }
 0x9ca   : > { %3544 = vmatmul.msk.f32.vlgmr.msra.gmra.mxu0 %vm5515_vm10, %v1894_v8  ;;  %v1753_v15 = vadd.f32 %v1743_v3, %v1606_v13  ;;  %vm5525_vm10 = vmmov %vm5474_vm0 }
 0x9d0   : > { %v1885_v60 = vpop.f32.mrf.mxu3 }
 0x9d1   : > { %v1895_v20 = vadd.f32 %v1885_v60, %v1753_v15  ;;  %v2052_v60 = vld [vmem:[%s5444_s3 + $0x18] sm:$0xff] }
 0x9d2   : > { %v1746_v22 = vpop.f32.mrf.mxu1  ;;  %2078 = vmatpush.msra.mxu1 %v2052_v60 }
 0x9d3   : > { %3545 = vmatmul.msk.f32.gmra.mxu0 %vm5516_vm12, %v1895_v20  ;;  %v1754_v19 = vadd.f32 %v1746_v22, %v1609_v23  ;;  %v2051_v20 = vld [vmem:[%s5444_s3 + $0x10] sm:$0xff]  ;;  %v2050_v22 = vld [vmem:[%s5444_s3 + $0x8] sm:$0xff]  ;;  %v2049_v23 = vld [vmem:[%s5444_s3] sm:$0xff] }
 0x9d4   : > { %2079 = vmatpush.msra.mxu1 %v2051_v20 }
 0x9d6   : > { %2080 = vmatpush.msra.mxu1 %v2050_v22 }
 0x9d8   : > { %v1888_v26 = vpop.f32.mrf.mxu3  ;;  %2081 = vmatpush.msra.mxu1 %v2049_v23  ;;  %v2105_v23 = vld [vmem:[%s5445_s4 + $0x30] sm:$0xff] }
 0x9d9   : > { %v1896_v55 = vadd.f32 %v1888_v26, %v1754_v19 }
 0x9da   : > { %v1749_v25 = vpop.f32.mrf.mxu1 }
 0x9db   : > { %3546 = vmatmul.msk.f32.gmra.mxu0 %vm5517_vm14, %v1896_v55  ;;  %v1755_v30 = vadd.f32 %v1749_v25, %v1612_v27 }
 0x9e0   : > { %v1891_v35 = vpop.f32.mrf.mxu3 }
 0x9e1   : > { %v1897_v31 = vadd.f32 %v1891_v35, %v1755_v30 }
 0x9e3   : > { %3547 = vmatmul.msk.f32.gmra.mxu0 %vm5518_vm15, %v1897_v31 }
 0xa47   : > { %v1928_v34 = vpop.f32.mrf.mxu0 }
 0xa48   : > { %v1929_v29 = vadd.f32 %v1928_v34, %v1898_v45 }
 0xa4a   : > { %v1940_v7 = vadd.f32 %v1929_v29, %v4456_v46 }
 0xa4c   : > { %v1944_v5 = vsel %vm5474_vm0, %v1940_v7, 0.0 }
 0xa4d   : > { %1945 = vadd.xlane.f32.xlu1 %v1944_v5 }
 0xa50   : > { %v1931_v16 = vpop.f32.mrf.mxu0 }
 0xa51   : > { %v1932_v39 = vadd.f32 %v1931_v16, %v1898_v45 }
 0xa53   : > { %v1941_v42 = vadd.f32 %v1932_v39, %v4464_v36  ;;  %v3832_v36 = vpop.eup %3831 }
 0xa54   : > { %v1957_v61 = vmul.f32 32.0, %v3832_v36  ;;  %vm1961_vm6 = vweird.f32 %v3832_v36 }
 0xa55   : > { %v1947_v50 = vsel %vm5519_vm1, %v1941_v42, 0.0 }
 0xa56   : > { %1948 = vadd.xlane.f32.xlu2 %v1947_v50  ;;  %v1958_v57 = vsub.f32 1.0, %v1957_v61  ;;  %v4809_v50 = vld [vmem:[%s5442_s1 + $0x10] sm:$0xff] }
 0xa58   : > { %v1934_v21 = vpop.f32.mrf.mxu0  ;;  %v1959_v28 = vmul.f32 %v3832_v36, %v1958_v57 }
 0xa59   : > { %v1935_v17 = vadd.f32 %v1934_v21, %v1898_v45  ;;  %v4812_v21 = vperm.slane %v4809_v50, 5 }
 0xa5a   : > { %v1960_v49 = vadd.f32 %v3832_v36, %v1959_v28 }
 0xa5b   : > { %v1942_v41 = vadd.f32 %v1935_v17, %v4472_v48 }
 0xa5c   : > { %v4769_v44 = vsel %vm1961_vm6, %v3832_v36, %v1960_v49  ;;  %v2111_v49 = vld [vmem:[%s5445_s4 + $0x60] sm:$0xff] }
 0xa5d   : > { %v1950_v54 = vsel %vm5520_vm4, %v1942_v41, 0.0  ;;  %vm5526_vm4 = vmmov %vm5524_vm3 }
 0xa5e   : > { %1951 = vadd.xlane.f32.xlu0 %v1950_v54  ;;  %v2114_v54 = vld [vmem:[%s5445_s4 + $0x78] sm:$0xff] }
 0xa5f   : > { %2116 = vmatpush.msrb.mxu2 %v2114_v54 }
 0xa60   : > { %v1937_v51 = vpop.f32.mrf.mxu0 }
 0xa61   : > { %v1938_v33 = vadd.f32 %v1937_v51, %v1898_v45  ;;  %v2113_v51 = vld [vmem:[%s5445_s4 + $0x70] sm:$0xff] }
 0xa62   : > { %2117 = vmatpush.msrb.mxu2 %v2113_v51 }
 0xa63   : > { %v1943_v46 = vadd.f32 %v1938_v33, %v4480_v18  ;;  %v4821_v33 = vperm.slane %v4809_v50, 6 }
 0xa64   : > { %2118 = vmatpush.msrb.mxu2 %v2112_v32 }
 0xa65   : > { %v1953_v43 = vsel %vm5521_vm5, %v1943_v46, 0.0 }
 0xa66   : > { %1954 = vadd.xlane.f32.xlu1 %v1953_v43  ;;  %2119 = vmatpush.msrb.mxu2 %v2111_v49 }
 0xac0   : > { %v1946_v48 = vpop.xlane.xlu1 %1945 }
 0xac1   : > { %v1963_v37 = vmul.f32 %v4769_v44, %v1946_v48 }
 0xac3   : > { %v1967_v56 = vsub.f32 %v1940_v7, %v1963_v37 }
 0xac5   : > { %v1971_v24 = vmul.f32 %v1967_v56, %v1967_v56 }
 0xac7   : > { %v1975_v18 = vsel %vm5522_vm9, %v1971_v24, 0.0 }
 0xac8   : > { %1976 = vadd.xlane.f32.xlu2 %v1975_v18  ;;  %v2110_v18 = vld [vmem:[%s5445_s4 + $0x58] sm:$0xff] }
 0xac9   : > { %v1949_v59 = vpop.xlane.xlu2 %1948  ;;  %2120 = vmatpush.msrb.mxu2 %v2110_v18 }
 0xaca   : > { %v1964_v62 = vmul.f32 %v4769_v44, %v1949_v59 }
 0xacc   : > { %v4774_v63 = vsub.f32 %v1941_v42, %v1964_v62 }
 0xace   : > { %v1972_v0 = vmul.f32 %v4774_v63, %v4774_v63 }
 0xad0   : > { %v1978_v58 = vsel %vm5523_vm8, %v1972_v0, 0.0  ;;  %v2109_v0 = vld [vmem:[%s5445_s4 + $0x50] sm:$0xff] }
 0xad1   : > { %1979 = vadd.xlane.f32.xlu0 %v1978_v58  ;;  %v1952_v1 = vpop.xlane.xlu0 %1951  ;;  %2121 = vmatpush.msrb.mxu2 %v2109_v0 }
 0xad2   : > { %v1965_v40 = vmul.f32 %v4769_v44, %v1952_v1 }
 0xad4   : > { %v4780_v6 = vsub.f32 %v1942_v41, %v1965_v40 }
 0xad6   : > { %v1973_v10 = vmul.f32 %v4780_v6, %v4780_v6 }
 0xad8   : > { %v1981_v12 = vsel %vm5524_vm3, %v1973_v10, 0.0  ;;  %v2108_v10 = vld [vmem:[%s5445_s4 + $0x48] sm:$0xff] }
 0xad9   : > { %1982 = vadd.xlane.f32.xlu1 %v1981_v12  ;;  %v1955_v47 = vpop.xlane.xlu1 %1954  ;;  %2122 = vmatpush.msrb.mxu2 %v2108_v10 }
 0xada   : > { %v1966_v8 = vmul.f32 %v4769_v44, %v1955_v47 }
 0xadc   : > { %v4786_v3 = vsub.f32 %v1943_v46, %v1966_v8  ;;  %v2107_v8 = vld [vmem:[%s5445_s4 + $0x40] sm:$0xff] }
 0xadd   : > { %2123 = vmatpush.msrb.mxu2 %v2107_v8 }
 0xade   : > { %v1974_v13 = vmul.f32 %v4786_v3, %v4786_v3 }
 0xae0   : > { %v1984_v15 = vsel %vm5525_vm10, %v1974_v13, 0.0 }
 0xae1   : > { %1985 = vadd.xlane.f32.xlu2 %v1984_v15 }
 0xb3b   : > { %v1977_v19 = vpop.xlane.xlu2 %1976 }
 0xb3c   : > { %v1987_v26 = vmul.f32 %v1977_v19, %v4769_v44 }
 0xb3e   : > { %v1991_v55 = vadd.f32 1e-05, %v1987_v26 }
 0xb40   : > { %3833 = vrsqrt.f32 %v1991_v55  ;;  %vm2001_vm14 = vweird.f32 %v1991_v55 }
 0xb44   : > { %v1980_v25 = vpop.xlane.xlu0 %1979 }
 0xb45   : > { %v1988_v27 = vmul.f32 %v1980_v25, %v4769_v44  ;;  %v2104_v25 = vld [vmem:[%s5445_s4 + $0x28] sm:$0xff] }
 0xb46   : > { %v3834_v30 = vpop.eup %3833 }
 0xb47   : > { %v1996_v35 = vmul.f32 %v3834_v30, %v1991_v55  ;;  %v1992_v31 = vadd.f32 1e-05, %v1988_v27  ;;  %vm2002_vm12 = vweird.f32 %v3834_v30 }
 0xb48   : > { %vm2003_vm15 = vmor %vm2001_vm14, %vm2002_vm12 }
 0xb49   : > { %v1997_v45 = vmul.f32 %v3834_v30, %v1996_v35  ;;  %3835 = vrsqrt.f32 %v1992_v31  ;;  %vm2011_vm1 = vweird.f32 %v1992_v31  ;;  %v2103_v35 = vld [vmem:[%s5445_s4 + $0x20] sm:$0xff] }
 0xb4b   : > { %v1998_v34 = vmul.f32 0.5, %v1997_v45 }
 0xb4c   : > { %v1983_v29 = vpop.xlane.xlu1 %1982 }
 0xb4d   : > { %v1999_v7 = vsub.f32 1.5, %v1998_v34  ;;  %v1989_v5 = vmul.f32 %v1983_v29, %v4769_v44 }
 0xb4f   : > { %v3836_v16 = vpop.eup %3835  ;;  %v2000_v39 = vmul.f32 %v3834_v30, %v1999_v7  ;;  %v1993_v42 = vadd.f32 1e-05, %v1989_v5 }
 0xb50   : > { %v2006_v17 = vmul.f32 %v3836_v16, %v1992_v31  ;;  %vm2012_vm0 = vweird.f32 %v3836_v16 }
 0xb51   : > { %v2004_v41 = vsel %vm2003_vm15, %v3834_v30, %v2000_v39  ;;  %3837 = vrsqrt.f32 %v1993_v42  ;;  %vm2013_vm5 = vmor %vm2011_vm1, %vm2012_vm0  ;;  %vm2021_vm9 = vweird.f32 %v1993_v42  ;;  %v2101_v39 = vld [vmem:[%s5445_s4 + $0x10] sm:$0xff] }
 0xb52   : > { %v2035_v46 = vmul.f32 %v2004_v41, %v1967_v56  ;;  %v2007_v43 = vmul.f32 %v3836_v16, %v2006_v17  ;;  %vm5527_vm15 = vmmov %vm5524_vm3 }
 0xb53   : > { %vm5528_vm0 = vmmov %vm5524_vm3 }
 0xb54   : > { %v2040_v36 = vmul.f32 %v4812_v21, %v2035_v46  ;;  %v2008_v61 = vmul.f32 0.5, %v2007_v43  ;;  %v1986_v57 = vpop.xlane.xlu2 %1985  ;;  %vm5529_vm1 = vmmov %vm5528_vm0 }
 0xb55   : > { %v1990_v28 = vmul.f32 %v1986_v57, %v4769_v44 }
 0xb56   : > { %v4832_v48 = vadd.f32 %v4821_v33, %v2040_v36  ;;  %v2009_v37 = vsub.f32 1.5, %v2008_v61 }
 0xb57   : > { %v3838_v56 = vpop.eup %3837  ;;  %v1994_v24 = vadd.f32 1e-05, %v1990_v28 }
 0xb58   : > { %v2010_v59 = vmul.f32 %v3836_v16, %v2009_v37  ;;  %v2016_v62 = vmul.f32 %v3838_v56, %v1993_v42  ;;  %3548 = vmatmul.msk.f32.vlgmr.msra.gmra.mxu1 %vm5526_vm4, %v4832_v48  ;;  %vm2022_vm6 = vweird.f32 %v3838_v56  ;;  %v2100_v42 = vld [vmem:[%s5445_s4 + $0x8] sm:$0xff]  ;;  %vm5530_vm4 = vmmov %vm5528_vm0 }
 0xb59   : > { %3839 = vrsqrt.f32 %v1994_v24  ;;  %vm2023_vm8 = vmor %vm2021_vm9, %vm2022_vm6  ;;  %vm2031_vm12 = vweird.f32 %v1994_v24 }
 0xb5a   : > { %v2014_v58 = vsel %vm2013_vm5, %v3836_v16, %v2010_v59  ;;  %v2017_v1 = vmul.f32 %v3838_v56, %v2016_v62  ;;  %vm5531_vm5 = vmmov %vm5528_vm0 }
 0xb5b   : > { %v2036_v40 = vmul.f32 %v2014_v58, %v4774_v63  ;;  %v2106_v63 = vld [vmem:[%s5445_s4 + $0x38] sm:$0xff]  ;;  %vm5532_vm6 = vmmov %vm5528_vm0 }
 0xb5c   : > { %v2018_v12 = vmul.f32 0.5, %v2017_v1  ;;  %2124 = vmatpush.msrb.mxu2 %v2106_v63  ;;  %vm5533_vm9 = vmmov %vm5528_vm0 }
 0xb5d   : > { %v2041_v47 = vmul.f32 %v4812_v21, %v2036_v40 }
 0xb5e   : > { %v2019_v13 = vsub.f32 1.5, %v2018_v12  ;;  %2125 = vmatpush.msrb.mxu2 %v2105_v23 }
 0xb5f   : > { %v3840_v15 = vpop.eup %3839  ;;  %v4851_v60 = vadd.f32 %v4821_v33, %v2041_v47 }
 0xb60   : > { %v2020_v20 = vmul.f32 %v3838_v56, %v2019_v13  ;;  %v2026_v22 = vmul.f32 %v3840_v15, %v1994_v24  ;;  %vm2032_vm10 = vweird.f32 %v3840_v15  ;;  %2126 = vmatpush.msrb.mxu2 %v2104_v25 }
 0xb61   : > { %3549 = vmatmul.msk.f32.gmra.mxu1 %vm5524_vm3, %v4851_v60  ;;  %vm2033_vm14 = vmor %vm2031_vm12, %vm2032_vm10 }
 0xb62   : > { %v2024_v19 = vsel %vm2023_vm8, %v3838_v56, %v2020_v20  ;;  %v2027_v26 = vmul.f32 %v3840_v15, %v2026_v22  ;;  %2127 = vmatpush.msrb.mxu2 %v2103_v35  ;;  %vm5534_vm8 = vmmov %vm5528_vm0 }
 0xb63   : > { %v2037_v55 = vmul.f32 %v2024_v19, %v4780_v6  ;;  %v2102_v6 = vld [vmem:[%s5445_s4 + $0x18] sm:$0xff]  ;;  %vm5535_vm3 = vmmov %vm5528_vm0 }
 0xb64   : > { %v2028_v27 = vmul.f32 0.5, %v2027_v26  ;;  %2128 = vmatpush.msrb.mxu2 %v2102_v6  ;;  %vm5536_vm10 = vmmov %vm5528_vm0 }
 0xb65   : > { %v2042_v30 = vmul.f32 %v4812_v21, %v2037_v55 }
 0xb66   : > { %v2029_v31 = vsub.f32 1.5, %v2028_v27  ;;  %2129 = vmatpush.msrb.mxu2 %v2101_v39  ;;  %v2256_v39 = vld [vmem:[#allocation2 + $0x138] sm:$0xff] }
 0xb67   : > { %v2047_v45 = vadd.f32 %v4821_v33, %v2042_v30  ;;  %2322 = vmatpush.msrb.mxu0 %v2256_v39 }
 0xb68   : > { %v2030_v34 = vmul.f32 %v3840_v15, %v2029_v31  ;;  %2130 = vmatpush.msrb.mxu2 %v2100_v42  ;;  %v2261_v42 = vld [vmem:[#allocation2 + $0x158] sm:$0xff] }
 0xb69   : > { %3550 = vmatmul.msk.f32.gmra.mxu1 %vm5527_vm15, %v2047_v45 }
 0xb6a   : > { %v2034_v29 = vsel %vm2033_vm14, %v3840_v15, %v2030_v34  ;;  %2352 = vmatpush.msrb.mxu1 %v2261_v42 }
 0xb6b   : > { %v2038_v7 = vmul.f32 %v2034_v29, %v4786_v3  ;;  %v2099_v3 = vld [vmem:[%s5445_s4] sm:$0xff] }
 0xb6c   : > { %2131 = vmatpush.msrb.mxu2 %v2099_v3  ;;  %v2250_v3 = vld [vmem:[#allocation2 + $0x110] sm:$0xff] }
 0xb6d   : > { %v2043_v5 = vmul.f32 %v4812_v21, %v2038_v7  ;;  %v2053_v21 = vperm.slane %v4809_v50, 7  ;;  %v4891_v50 = vld [vmem:[%s5442_s1 + $0x18] sm:$0xff] }
 0xb6e   : > { %v2115_v49 = vperm.slane %v4891_v50, 0 }
 0xb6f   : > { %v2048_v16 = vadd.f32 %v4821_v33, %v2043_v5 }
 0xb71   : > { %3551 = vmatmul.msk.f32.gmra.mxu1 %vm5528_vm0, %v2048_v16 }
 0xbd5   : > { %v2083_v17 = vpop.f32.mrf.mxu1 }
 0xbd6   : > { %v2084_v41 = vadd.f32 %v2083_v17, %v2053_v21  ;;  %v2260_v17 = vld [vmem:[#allocation2 + $0x150] sm:$0xff] }
 0xbd7   : > { %2353 = vmatpush.msrb.mxu1 %v2260_v17 }
 0xbd8   : > { %v2095_v54 = vmax.f32 %v2084_v41, 0.0  ;;  %v2249_v41 = vld [vmem:[#allocation2 + $0x108] sm:$0xff] }
 0xbda   : > { %2132 = vmatmul.f32.vlgmr.msrb.gmra.mxu2 %v2095_v54  ;;  %v2254_v54 = vld [vmem:[#allocation2 + $0x128] sm:$0xff] }
 0xbde   : > { %v2086_v51 = vpop.f32.mrf.mxu1 }
 0xbdf   : > { %v2087_v33 = vadd.f32 %v2086_v51, %v2053_v21  ;;  %v2259_v51 = vld [vmem:[#allocation2 + $0x148] sm:$0xff] }
 0xbe0   : > { %2354 = vmatpush.msrb.mxu1 %v2259_v51 }
 0xbe1   : > { %v2096_v46 = vmax.f32 %v2087_v33, 0.0  ;;  %v2248_v33 = vld [vmem:[#allocation2 + $0x100] sm:$0xff] }
 0xbe3   : > { %2135 = vmatmul.f32.gmra.mxu2 %v2096_v46  ;;  %v2253_v46 = vld [vmem:[#allocation2 + $0x120] sm:$0xff] }
 0xbe6   : > { %v2089_v43 = vpop.f32.mrf.mxu1 }
 0xbe7   : > { %v2090_v32 = vadd.f32 %v2089_v43, %v2053_v21  ;;  %v2258_v43 = vld [vmem:[#allocation2 + $0x140] sm:$0xff] }
 0xbe8   : > { %2355 = vmatpush.msrb.mxu1 %v2258_v43 }
 0xbe9   : > { %v2097_v36 = vmax.f32 %v2090_v32, 0.0 }
 0xbeb   : > { %2138 = vmatmul.f32.gmra.mxu2 %v2097_v36 }
 0xbee   : > { %v2092_v61 = vpop.f32.mrf.mxu1 }
 0xbef   : > { %v2093_v57 = vadd.f32 %v2092_v61, %v2053_v21  ;;  %v2255_v21 = vld [vmem:[#allocation2 + $0x130] sm:$0xff] }
 0xbf0   : > { %2323 = vmatpush.msrb.mxu0 %v2255_v21 }
 0xbf1   : > { %v2098_v28 = vmax.f32 %v2093_v57, 0.0 }
 0xbf2   : > { %2324 = vmatpush.msrb.mxu0 %v2254_v54 }
 0xbf3   : > { %2141 = vmatmul.f32.gmra.mxu2 %v2098_v28 }
 0xbf4   : > { %2325 = vmatpush.msrb.mxu0 %v2253_v46 }
 0xc5d   : > { %v2133_v37 = vpop.f32.mrf.mxu2 }
 0xc5e   : > { %v2134_v56 = vadd.f32 %v2133_v37, %v2115_v49 }
 0xc60   : > { %v2145_v24 = vadd.f32 %v2134_v56, %v4832_v48 }
 0xc62   : > { %v2149_v18 = vsel %vm5529_vm1, %v2145_v24, 0.0 }
 0xc63   : > { %2150 = vadd.xlane.f32.xlu0 %v2149_v18 }
 0xc66   : > { %v2136_v59 = vpop.f32.mrf.mxu2 }
 0xc67   : > { %v2137_v62 = vadd.f32 %v2136_v59, %v2115_v49 }
 0xc69   : > { %v2146_v0 = vadd.f32 %v2137_v62, %v4851_v60 }
 0xc6b   : > { %v2152_v58 = vsel %vm5530_vm4, %v2146_v0, 0.0  ;;  %vm5537_vm4 = vmmov %vm5535_vm3 }
 0xc6c   : > { %2153 = vadd.xlane.f32.xlu1 %v2152_v58 }
 0xc6e   : > { %v2139_v1 = vpop.f32.mrf.mxu2 }
 0xc6f   : > { %v2140_v40 = vadd.f32 %v2139_v1, %v2115_v49 }
 0xc71   : > { %v2147_v10 = vadd.f32 %v2140_v40, %v2047_v45 }
 0xc73   : > { %v2155_v12 = vsel %vm5531_vm5, %v2147_v10, 0.0  ;;  %vm5538_vm5 = vmmov %vm5535_vm3 }
 0xc74   : > { %2156 = vadd.xlane.f32.xlu2 %v2155_v12 }
 0xc76   : > { %v2142_v47 = vpop.f32.mrf.mxu2 }
 0xc77   : > { %v2143_v8 = vadd.f32 %v2142_v47, %v2115_v49 }
 0xc79   : > { %v2148_v13 = vadd.f32 %v2143_v8, %v2048_v16  ;;  %v2251_v16 = vld [vmem:[#allocation2 + $0x118] sm:$0xff]  ;;  %v2242_v8 = vperm.slane %v4891_v50, 2 }
 0xc7a   : > { %2292 = vmatpush.msra.mxu3 %v2251_v16 }
 0xc7b   : > { %v2158_v48 = vsel %vm5532_vm6, %v2148_v13, 0.0 }
 0xc7c   : > { %2159 = vadd.xlane.f32.xlu0 %v2158_v48  ;;  %2293 = vmatpush.msra.mxu3 %v2250_v3 }
 0xc7e   : > { %2294 = vmatpush.msra.mxu3 %v2249_v41 }
 0xc80   : > { %2295 = vmatpush.msra.mxu3 %v2248_v33 }
 0xcd6   : > { %v2151_v15 = vpop.xlane.xlu0 %2150 }
 0xcd7   : > { %v2161_v63 = vmul.f32 %v2151_v15, %v4769_v44 }
 0xcd9   : > { %v4901_v20 = vsub.f32 %v2145_v24, %v2161_v63 }
 0xcdb   : > { %v2169_v60 = vmul.f32 %v4901_v20, %v4901_v20 }
 0xcdd   : > { %v2173_v22 = vsel %vm5533_vm9, %v2169_v60, 0.0  ;;  %vm5539_vm9 = vmmov %vm5535_vm3 }
 0xcde   : > { %2174 = vadd.xlane.f32.xlu1 %v2173_v22 }
 0xcdf   : > { %v2154_v23 = vpop.xlane.xlu1 %2153 }
 0xce0   : > { %v2162_v19 = vmul.f32 %v2154_v23, %v4769_v44 }
 0xce2   : > { %v4907_v26 = vsub.f32 %v2146_v0, %v2162_v19 }
 0xce4   : > { %v2170_v55 = vmul.f32 %v4907_v26, %v4907_v26 }
 0xce6   : > { %v2176_v25 = vsel %vm5534_vm8, %v2170_v55, 0.0 }
 0xce7   : > { %v2157_v27 = vpop.xlane.xlu2 %2156  ;;  %2177 = vadd.xlane.f32.xlu2 %v2176_v25 }
 0xce8   : > { %v2163_v30 = vmul.f32 %v2157_v27, %v4769_v44 }
 0xcea   : > { %v4913_v35 = vsub.f32 %v2147_v10, %v2163_v30  ;;  %v2237_v10 = vperm.slane %v4891_v50, 1 }
 0xcec   : > { %v2171_v31 = vmul.f32 %v4913_v35, %v4913_v35 }
 0xcee   : > { %v2179_v45 = vsel %vm5535_vm3, %v2171_v31, 0.0 }
 0xcef   : > { %v2160_v6 = vpop.xlane.xlu0 %2159  ;;  %2180 = vadd.xlane.f32.xlu0 %v2179_v45 }
 0xcf0   : > { %v2164_v34 = vmul.f32 %v2160_v6, %v4769_v44 }
 0xcf2   : > { %v4919_v29 = vsub.f32 %v2148_v13, %v2164_v34 }
 0xcf4   : > { %v2172_v7 = vmul.f32 %v4919_v29, %v4919_v29 }
 0xcf6   : > { %v2182_v5 = vsel %vm5536_vm10, %v2172_v7, 0.0 }
 0xcf7   : > { %2183 = vadd.xlane.f32.xlu1 %v2182_v5 }
 0xd51   : > { %v2175_v32 = vpop.xlane.xlu1 %2174 }
 0xd52   : > { %v2185_v36 = vmul.f32 %v2175_v32, %v4769_v44 }
 0xd54   : > { %v2189_v61 = vadd.f32 1e-05, %v2185_v36 }
 0xd56   : > { %3841 = vrsqrt.f32 %v2189_v61  ;;  %vm2199_vm14 = vweird.f32 %v2189_v61 }
 0xd5a   : > { %v2178_v57 = vpop.xlane.xlu2 %2177 }
 0xd5b   : > { %v2186_v28 = vmul.f32 %v2178_v57, %v4769_v44 }
 0xd5c   : > { %v3842_v49 = vpop.eup %3841 }
 0xd5d   : > { %v2194_v37 = vmul.f32 %v3842_v49, %v2189_v61  ;;  %v2190_v56 = vadd.f32 1e-05, %v2186_v28  ;;  %vm2200_vm12 = vweird.f32 %v3842_v49 }
 0xd5e   : > { %vm2201_vm15 = vmor %vm2199_vm14, %vm2200_vm12 }
 0xd5f   : > { %v2195_v24 = vmul.f32 %v3842_v49, %v2194_v37  ;;  %3843 = vrsqrt.f32 %v2190_v56  ;;  %vm2209_vm1 = vweird.f32 %v2190_v56  ;;  %vm5540_vm12 = vmmov %vm5537_vm4 }
 0xd60   : > { %vm5541_vm14 = vmmov %vm5537_vm4 }
 0xd61   : > { %v2196_v18 = vmul.f32 0.5, %v2195_v24 }
 0xd62   : > { %v2181_v59 = vpop.xlane.xlu0 %2180 }
 0xd63   : > { %v2197_v62 = vsub.f32 1.5, %v2196_v18  ;;  %v2187_v0 = vmul.f32 %v2181_v59, %v4769_v44 }
 0xd65   : > { %v3844_v58 = vpop.eup %3843  ;;  %v2198_v1 = vmul.f32 %v3842_v49, %v2197_v62  ;;  %v2191_v40 = vadd.f32 1e-05, %v2187_v0 }
 0xd66   : > { %v2204_v12 = vmul.f32 %v3844_v58, %v2190_v56  ;;  %vm2210_vm0 = vweird.f32 %v3844_v58  ;;  %v2339_v56 = vperm.slane %v4891_v50, 5 }
 0xd67   : > { %v2202_v47 = vsel %vm2201_vm15, %v3842_v49, %v2198_v1  ;;  %3845 = vrsqrt.f32 %v2191_v40  ;;  %vm2211_vm6 = vmor %vm2209_vm1, %vm2210_vm0  ;;  %vm2219_vm3 = vweird.f32 %v2191_v40 }
 0xd68   : > { %v2233_v13 = vmul.f32 %v2202_v47, %v4901_v20  ;;  %v2205_v48 = vmul.f32 %v3844_v58, %v2204_v12  ;;  %vm5542_vm15 = vmmov %vm5537_vm4 }
 0xd6a   : > { %v2238_v15 = vmul.f32 %v2237_v10, %v2233_v13  ;;  %v2206_v63 = vmul.f32 0.5, %v2205_v48  ;;  %v2184_v60 = vpop.xlane.xlu1 %2183  ;;  %v2267_v48 = vperm.slane %v4891_v50, 3 }
 0xd6b   : > { %v2188_v22 = vmul.f32 %v2184_v60, %v4769_v44 }
 0xd6c   : > { %v4931_v23 = vadd.f32 %v2242_v8, %v2238_v15  ;;  %v2207_v19 = vsub.f32 1.5, %v2206_v63 }
 0xd6d   : > { %v3846_v55 = vpop.eup %3845  ;;  %v2192_v25 = vadd.f32 1e-05, %v2188_v22 }
 0xd6e   : > { %v2208_v27 = vmul.f32 %v3844_v58, %v2207_v19  ;;  %v2214_v30 = vmul.f32 %v3846_v55, %v2191_v40  ;;  %3552 = vmatmul.msk.f32.vlgmr.msra.gmra.mxu3 %vm5537_vm4, %v4931_v23  ;;  %3556 = vmatmul.msk.f32.vlgmr.msrb.gmra.mxu0 %vm5538_vm5, %v4931_v23  ;;  %vm2220_vm8 = vweird.f32 %v3846_v55 }
 0xd6f   : > { %3847 = vrsqrt.f32 %v2192_v25  ;;  %3560 = vmatmul.msk.f32.vlgmr.msrb.gmra.mxu1 %vm5539_vm9, %v4931_v23  ;;  %vm2221_vm10 = vmor %vm2219_vm3, %vm2220_vm8  ;;  %vm2229_vm1 = vweird.f32 %v2192_v25 }
 0xd70   : > { %v2212_v20 = vsel %vm2211_vm6, %v3844_v58, %v2208_v27  ;;  %v2215_v31 = vmul.f32 %v3846_v55, %v2214_v30  ;;  %vm5543_vm6 = vmmov %vm5538_vm5 }
 0xd71   : > { %v2234_v45 = vmul.f32 %v2212_v20, %v4907_v26  ;;  %vm5544_vm9 = vmmov %vm5538_vm5 }
 0xd72   : > { %v2216_v6 = vmul.f32 0.5, %v2215_v31  ;;  %vm5545_vm8 = vmmov %vm5538_vm5 }
 0xd73   : > { %v2239_v34 = vmul.f32 %v2237_v10, %v2234_v45  ;;  %vm5546_vm3 = vmmov %vm5538_vm5 }
 0xd74   : > { %v2217_v7 = vsub.f32 1.5, %v2216_v6 }
 0xd75   : > { %v3848_v5 = vpop.eup %3847  ;;  %v4940_v16 = vadd.f32 %v2242_v8, %v2239_v34 }
 0xd76   : > { %v2218_v39 = vmul.f32 %v3846_v55, %v2217_v7  ;;  %v2224_v42 = vmul.f32 %v3848_v5, %v2192_v25  ;;  %vm2230_vm0 = vweird.f32 %v3848_v5 }
 0xd77   : > { %3553 = vmatmul.msk.f32.gmra.mxu3 %vm5540_vm12, %v4940_v16  ;;  %3557 = vmatmul.msk.f32.gmra.mxu0 %vm5541_vm14, %v4940_v16  ;;  %vm2231_vm4 = vmor %vm2229_vm1, %vm2230_vm0 }
 0xd78   : > { %v2222_v3 = vsel %vm2221_vm10, %v3846_v55, %v2218_v39  ;;  %v2225_v21 = vmul.f32 %v3848_v5, %v2224_v42  ;;  %3561 = vmatmul.msk.f32.gmra.mxu1 %vm5542_vm15, %v4940_v16  ;;  %vm5547_vm10 = vmmov %vm5546_vm3 }
 0xd79   : > { %v2235_v26 = vmul.f32 %v2222_v3, %v4913_v35  ;;  %vm5548_vm12 = vmmov %vm5546_vm3 }
 0xd7a   : > { %v2226_v17 = vmul.f32 0.5, %v2225_v21  ;;  %vm5549_vm14 = vmmov %vm5546_vm3 }
 0xd7b   : > { %v2240_v41 = vmul.f32 %v2237_v10, %v2235_v26  ;;  %vm5550_vm15 = vmmov %vm5546_vm3 }
 0xd7c   : > { %v2227_v54 = vsub.f32 1.5, %v2226_v17  ;;  %vm5551_vm0 = vmmov %vm5546_vm3 }
 0xd7d   : > { %v4949_v51 = vadd.f32 %v2242_v8, %v2240_v41  ;;  %vm5552_vm1 = vmmov %vm5551_vm0 }
 0xd7e   : > { %v2228_v33 = vmul.f32 %v3848_v5, %v2227_v54 }
 0xd7f   : > { %3554 = vmatmul.msk.f32.gmra.mxu3 %vm5538_vm5, %v4949_v51  ;;  %3558 = vmatmul.msk.f32.gmra.mxu0 %vm5543_vm6, %v4949_v51  ;;  %vm5554_vm5 = vmmov %vm5551_vm0 }
 0xd80   : > { %v2232_v46 = vsel %vm2231_vm4, %v3848_v5, %v2228_v33  ;;  %3562 = vmatmul.msk.f32.gmra.mxu1 %vm5544_vm9, %v4949_v51  ;;  %vm5553_vm4 = vmmov %vm5551_vm0 }
 0xd81   : > { %v2236_v35 = vmul.f32 %v2232_v46, %v4919_v29  ;;  %v2309_v29 = vperm.slane %v4891_v50, 4  ;;  %vm5555_vm6 = vmmov %vm5551_vm0 }
 0xd82   : > { %vm5556_vm9 = vmmov %vm5551_vm0 }
 0xd83   : > { %v2241_v43 = vmul.f32 %v2237_v10, %v2236_v35 }
 0xd85   : > { %v4958_v32 = vadd.f32 %v2242_v8, %v2241_v43 }
 0xd87   : > { %3555 = vmatmul.msk.f32.gmra.mxu3 %vm5545_vm8, %v4958_v32  ;;  %3559 = vmatmul.msk.f32.gmra.mxu0 %vm5546_vm3, %v4958_v32  ;;  %vm5557_vm8 = vmmov %vm5551_vm0 }
 0xd88   : > { %3563 = vmatmul.msk.f32.gmra.mxu1 %vm5547_vm10, %v4958_v32  ;;  %vm5558_vm3 = vmmov %vm5551_vm0 }
 0xd89   : > { %vm5559_vm10 = vmmov %vm5551_vm0 }
 0xdeb   : > { %v2327_v36 = vpop.f32.mrf.mxu0 }
 0xdec   : > { %v2357_v61 = vpop.f32.mrf.mxu1  ;;  %v2328_v25 = vadd.f32 %v2327_v36, %v2309_v29 }
 0xded   : > { %v2358_v47 = vadd.f32 %v2357_v61, %v2339_v56 }
 0xdef   : > { %v2571_v22 = vmul.f32 %v4170_v52, %v2358_v47  ;;  %v2474_v19 = vmul.f32 %v4174_v53, %v2358_v47  ;;  %v2892_v7 = vmul.f32 %v4198_v2, %v2358_v47  ;;  %v2750_v42 = vmul.f32 %v4216_v11, %v2358_v47 }
 0xdf1   : > { %v2297_v58 = vpop.f32.mrf.mxu3 }
 0xdf2   : > { %v4984_v50 = vadd.f32 %v2297_v58, %v2267_v48 }
 0xdf4   : > { %v2330_v57 = vpop.f32.mrf.mxu0  ;;  %v2369_v31 = vmul.f32 %v4174_v53, %v4984_v50  ;;  %v2478_v6 = vmul.f32 %v4170_v52, %v4984_v50  ;;  %v2657_v36 = vmul.f32 %v4216_v11, %v4984_v50 }
 0xdf5   : > { %v2360_v28 = vpop.f32.mrf.mxu1  ;;  %v2331_v60 = vadd.f32 %v2330_v57, %v2309_v29 }
 0xdf6   : > { %v2361_v1 = vadd.f32 %v2360_v28, %v2339_v56 }
 0xdf8   : > { %v2572_v15 = vmul.f32 %v4170_v52, %v2361_v1  ;;  %v2475_v63 = vmul.f32 %v4174_v53, %v2361_v1  ;;  %v2893_v45 = vmul.f32 %v4198_v2, %v2361_v1  ;;  %v2751_v39 = vmul.f32 %v4216_v11, %v2361_v1 }
 0xdfa   : > { %v2300_v27 = vpop.f32.mrf.mxu3 }
 0xdfb   : > { %v5002_v5 = vadd.f32 %v2300_v27, %v2267_v48 }
 0xdfc   : > { %v2333_v49 = vpop.f32.mrf.mxu0 }
 0xdfd   : > { %v2363_v37 = vpop.f32.mrf.mxu1  ;;  %v2334_v12 = vadd.f32 %v2333_v49, %v2309_v29  ;;  %v2370_v21 = vmul.f32 %v4174_v53, %v5002_v5  ;;  %v2479_v26 = vmul.f32 %v4170_v52, %v5002_v5  ;;  %v2658_v61 = vmul.f32 %v4216_v11, %v5002_v5 }
 0xdfe   : > { %v2364_v62 = vadd.f32 %v2363_v37, %v2339_v56 }
 0xe00   : > { %v2573_v8 = vmul.f32 %v4170_v52, %v2364_v62  ;;  %v2476_v13 = vmul.f32 %v4174_v53, %v2364_v62  ;;  %v2894_v30 = vmul.f32 %v4198_v2, %v2364_v62  ;;  %v2752_v34 = vmul.f32 %v4216_v11, %v2364_v62 }
 0xe02   : > { %v2303_v3 = vpop.f32.mrf.mxu3 }
 0xe03   : > { %v5016_v17 = vadd.f32 %v2303_v3, %v2267_v48 }
 0xe04   : > { %v2336_v24 = vpop.f32.mrf.mxu0 }
 0xe05   : > { %v2337_v18 = vadd.f32 %v2336_v24, %v2309_v29  ;;  %v2366_v59 = vpop.f32.mrf.mxu1  ;;  %v2371_v41 = vmul.f32 %v4174_v53, %v5016_v17  ;;  %v2480_v33 = vmul.f32 %v4170_v52, %v5016_v17 }
 0xe06   : > { %v2367_v0 = vadd.f32 %v2366_v59, %v2339_v56 }
 0xe07   : > { %3564 = vmatpush.xpose.msk.msra.mxu2 %vm5548_vm12, %v2337_v18  ;;  %3572 = vmatpush.xpose.msk.msrb.mxu3 %vm5549_vm14, %v2337_v18  ;;  %vm5560_vm12 = vmmov %vm5551_vm0 }
 0xe08   : > { %v2574_v40 = vmul.f32 %v4170_v52, %v2367_v0  ;;  %v2477_v10 = vmul.f32 %v4174_v53, %v2367_v0  ;;  %v2895_v55 = vmul.f32 %v4198_v2, %v2367_v0  ;;  %v2753_v20 = vmul.f32 %v4216_v11, %v2367_v0  ;;  %vm5561_vm14 = vmmov %vm5551_vm0 }
 0xe0a   : > { %2599 = vmatpush.msra.mxu0 %v2574_v40  ;;  %2640 = vmatpush.msra.mxu1 %v2477_v10  ;;  %v2306_v54 = vpop.f32.mrf.mxu3 }
 0xe0b   : > { %3565 = vmatpush.xpose.msk.msra.mxu2 %vm5550_vm15, %v2334_v12  ;;  %3573 = vmatpush.xpose.msk.msrb.mxu3 %vm5551_vm0, %v2334_v12  ;;  %vm5562_vm15 = vmmov %vm5551_vm0  ;;  %v5025_v46 = vadd.f32 %v2306_v54, %v2267_v48 }
 0xe0c   : > { %2600 = vmatpush.msra.mxu0 %v2573_v8  ;;  %2641 = vmatpush.msra.mxu1 %v2476_v13 }
 0xe0d   : > { %v2372_v35 = vmul.f32 %v4174_v53, %v5025_v46  ;;  %v2481_v43 = vmul.f32 %v4170_v52, %v5025_v46  ;;  %v2659_v53 = vmul.f32 %v4216_v11, %v5016_v17  ;;  %v2660_v52 = vmul.f32 %v4216_v11, %v5025_v46 }
 0xe0e   : > { %2601 = vmatpush.msra.mxu0 %v2572_v15  ;;  %2642 = vmatpush.msra.mxu1 %v2475_v63 }
 0xe0f   : > { %3566 = vmatpush.xpose.msk.msra.mxu2 %vm5552_vm1, %v2331_v60  ;;  %3574 = vmatpush.xpose.msk.msrb.mxu3 %vm5553_vm4, %v2331_v60  ;;  %vm5563_vm1 = vmmov %vm5551_vm0 }
 0xe10   : > { %2602 = vmatpush.msra.mxu0 %v2571_v22  ;;  %2643 = vmatpush.msra.mxu1 %v2474_v19  ;;  %vm5564_vm4 = vmmov %vm5551_vm0 }
 0xe12   : > { %3600 = vmatpush.xpose.msk.msrb.mxu0 %vm5554_vm5, %v2337_v18  ;;  %2920 = vmatpush.msrb.mxu1 %v2895_v55  ;;  %vm5565_vm5 = vmmov %vm5551_vm0 }
 0xe13   : > { %3567 = vmatpush.xpose.msk.msra.mxu2 %vm5555_vm6, %v2328_v25  ;;  %3575 = vmatpush.xpose.msk.msrb.mxu3 %vm5556_vm9, %v2328_v25  ;;  %vm5566_vm6 = vmmov %vm5551_vm0 }
 0xe14   : > { %2921 = vmatpush.msrb.mxu1 %v2894_v30  ;;  %vm5567_vm9 = vmmov %vm5551_vm0 }
 0xe16   : > { %3601 = vmatpush.xpose.msk.msrb.mxu0 %vm5558_vm3, %v2334_v12  ;;  %2922 = vmatpush.msrb.mxu1 %v2893_v45  ;;  %vm5569_vm3 = vmmov %vm5551_vm0 }
 0xe17   : > { %3588 = vmatpush.xpose.msk.msrb.mxu2 %vm5557_vm8, %v2337_v18  ;;  %2778 = vmatpush.msra.mxu3 %v2753_v20  ;;  %vm5568_vm8 = vmmov %vm5551_vm0 }
 0xe18   : > { %3568 = vmatmul.msk.f32.vlgmr.msra.gmra.mxu2 %vm5559_vm10, %v2369_v31  ;;  %3576 = vmatmul.msk.f32.vlgmr.msrb.gmra.mxu3 %vm5560_vm12, %v2478_v6  ;;  %vm5570_vm10 = vmmov %vm5551_vm0 }
 0xe19   : > { %2779 = vmatpush.msra.mxu3 %v2752_v34  ;;  %2923 = vmatpush.msrb.mxu1 %v2892_v7  ;;  %vm5571_vm12 = vmmov %vm5551_vm0 }
 0xe1a   : > { %3602 = vmatpush.xpose.msk.msrb.mxu0 %vm5562_vm15, %v2331_v60  ;;  %vm5573_vm15 = vmmov %vm5551_vm0 }
 0xe1b   : > { %3589 = vmatpush.xpose.msk.msrb.mxu2 %vm5561_vm14, %v2334_v12  ;;  %2780 = vmatpush.msra.mxu3 %v2751_v39  ;;  %vm5572_vm14 = vmmov %vm5551_vm0 }
 0xe1d   : > { %2781 = vmatpush.msra.mxu3 %v2750_v42 }
 0xe1e   : > { %3603 = vmatpush.xpose.msk.msrb.mxu0 %vm5563_vm1, %v2328_v25  ;;  %vm5574_vm1 = vmmov %vm5551_vm0 }
 0xe1f   : > { %3590 = vmatpush.xpose.msk.msrb.mxu2 %vm5551_vm0, %v2331_v60 }
 0xe20   : > { %3569 = vmatmul.msk.f32.gmra.mxu2 %vm5564_vm4, %v2370_v21  ;;  %3577 = vmatmul.msk.f32.gmra.mxu3 %vm5565_vm5, %v2479_v26  ;;  %vm5575_vm4 = vmmov %vm5551_vm0 }
 0xe21   : > { %vm5576_vm5 = vmmov %vm5551_vm0 }
 0xe23   : > { %3591 = vmatpush.xpose.msk.msrb.mxu2 %vm5566_vm6, %v2328_v25  ;;  %vm5577_vm6 = vmmov %vm5551_vm0 }
 0xe28   : > { %3570 = vmatmul.msk.f32.gmra.mxu2 %vm5567_vm9, %v2371_v41  ;;  %3578 = vmatmul.msk.f32.gmra.mxu3 %vm5568_vm8, %v2480_v33  ;;  %vm5578_vm9 = vmmov %vm5551_vm0 }
 0xe29   : > { %vm5579_vm8 = vmmov %vm5551_vm0 }
 0xe30   : > { %3571 = vmatmul.msk.f32.gmra.mxu2 %vm5569_vm3, %v2372_v35  ;;  %3579 = vmatmul.msk.f32.gmra.mxu3 %vm5570_vm10, %v2481_v43  ;;  %vm5580_vm3 = vmmov %vm5551_vm0 }
 0xe31   : > { %vm5581_vm10 = vmmov %vm5551_vm0 }
 0xe38   : > { %3592 = vmatmul.msk.f32.vlgmr.msrb.gmra.mxu2 %vm5571_vm12, %v2657_v36  ;;  %vm5582_vm12 = vmmov %vm5551_vm0 }
 0xe40   : > { %3593 = vmatmul.msk.f32.gmra.mxu2 %vm5572_vm14, %v2658_v61  ;;  %vm5583_vm14 = vmmov %vm5551_vm0 }
 0xe48   : > { %3594 = vmatmul.msk.f32.gmra.mxu2 %vm5573_vm15, %v2659_v53  ;;  %vm5584_vm15 = vmmov %vm5551_vm0 }
 0xe50   : > { %3595 = vmatmul.msk.f32.gmra.mxu2 %vm5551_vm0, %v2660_v52 }
 0xe9b   : > { %v2511_v57 = vpop.f32.mrf.mxu3  ;;  %v2414_v58 = vpop.f32.mrf.mxu2 }
 0xe9c   : > { %v2523_v28 = vsel %vm5471_vm13, %v2511_v57, -1e+30  ;;  %v5061_v20 = vsel %vm5471_vm13, %v2414_v58, -1e+30 }
 0xe9d   : > { %v2527_v49 = vsel %vm5574_vm1, %v2523_v28, -inf  ;;  %v2430_v7 = vsel %vm5580_vm3, %v5061_v20, -inf  ;;  %vm5585_vm1 = vmmov %vm5551_vm0 }
 0xe9e   : > { %2528 = vmax.xlane.f32.xlu2 %v2527_v49  ;;  %vm5591_vm3 = vmmov %vm5551_vm0 }
 0xea3   : > { %v2514_v37 = vpop.f32.mrf.mxu3  ;;  %v2417_v1 = vpop.f32.mrf.mxu2 }
 0xea4   : > { %v2524_v29 = vsel %vm4579_vm7, %v2514_v37, -1e+30  ;;  %v5068_v42 = vsel %vm4579_vm7, %v2417_v1, -1e+30 }
 0xea5   : > { %v2530_v56 = vsel %vm5575_vm4, %v2524_v29, -inf  ;;  %v2433_v41 = vsel %vm5582_vm12, %v5068_v42, -inf  ;;  %vm5586_vm4 = vmmov %vm5551_vm0 }
 0xea6   : > { %2531 = vmax.xlane.f32.xlu0 %v2530_v56  ;;  %vm5593_vm12 = vmmov %vm5551_vm0 }
 0xeab   : > { %v2517_v24 = vpop.f32.mrf.mxu3  ;;  %v2420_v47 = vpop.f32.mrf.mxu2 }
 0xeac   : > { %v2525_v11 = vsel %vm4586_vm2, %v2517_v24, -1e+30  ;;  %v5081_v35 = vsel %vm4586_vm2, %v2420_v47, -1e+30  ;;  %v2801_v47 = vmul.f32 %v4198_v2, %v5016_v17 }
 0xead   : > { %v2533_v18 = vsel %vm5576_vm5, %v2525_v11, -inf  ;;  %v2436_v36 = vsel %vm5551_vm0, %v5081_v35, -inf  ;;  %vm5587_vm5 = vmmov %vm5551_vm0 }
 0xeae   : > { %2534 = vmax.xlane.f32.xlu1 %v2533_v18 }
 0xeb3   : > { %v2520_v59 = vpop.f32.mrf.mxu3  ;;  %v2423_v60 = vpop.f32.mrf.mxu2 }
 0xeb4   : > { %v2526_v62 = vsel %vm4593_vm11, %v2520_v59, -1e+30  ;;  %v5072_v3 = vsel %vm4593_vm11, %v2423_v60, -1e+30 }
 0xeb5   : > { %v2536_v0 = vsel %vm5577_vm6, %v2526_v62, -inf  ;;  %v2439_v33 = vsel %vm5584_vm15, %v5072_v3, -inf  ;;  %vm5588_vm6 = vmmov %vm5551_vm0 }
 0xeb6   : > { %2537 = vmax.xlane.f32.xlu2 %v2536_v0  ;;  %vm5595_vm15 = vmmov %vm5551_vm0 }
 0xebb   : > { %v2690_v45 = vpop.f32.mrf.mxu2 }
 0xebc   : > { %v5085_v43 = vsel %vm5471_vm13, %v2690_v45, -1e+30 }
 0xebd   : > { %v2706_v61 = vsel %vm5585_vm1, %v5085_v43, -inf  ;;  %vm5597_vm1 = vmmov %vm5551_vm0 }
 0xec3   : > { %v2693_v26 = vpop.f32.mrf.mxu2 }
 0xec4   : > { %v5093_v52 = vsel %vm4579_vm7, %v2693_v26, -1e+30 }
 0xecb   : > { %v2696_v53 = vpop.f32.mrf.mxu2 }
 0xecc   : > { %v5097_v57 = vsel %vm4586_vm2, %v2696_v53, -1e+30 }
 0xecd   : > { %v2712_v49 = vsel %vm5587_vm5, %v5097_v57, -inf  ;;  %vm5601_vm5 = vmmov %vm5551_vm0 }
 0xf11   : > { %v2529_v40 = vpop.xlane.xlu2 %2528 }
 0xf12   : > { %v2539_v10 = vsub.f32 %v2523_v28, %v2529_v40  ;;  %v2709_v28 = vsel %vm5586_vm4, %v5093_v52, -inf  ;;  %vm5599_vm4 = vmmov %vm5551_vm0 }
 0xf14   : > { %v2543_v12 = vmul.f32 1.442695, %v2539_v10  ;;  %v2799_v10 = vmul.f32 %v4198_v2, %v4984_v50 }
 0xf16   : > { %3849 = vpow2.f32 %v2543_v12  ;;  %v2800_v12 = vmul.f32 %v4198_v2, %v5002_v5 }
 0xf19   : > { %v2532_v8 = vpop.xlane.xlu0 %2531 }
 0xf1a   : > { %v2540_v13 = vsub.f32 %v2524_v29, %v2532_v8  ;;  %v2802_v8 = vmul.f32 %v4198_v2, %v5025_v46  ;;  %v2699_v46 = vpop.f32.mrf.mxu2 }
 0xf1c   : > { %v3850_v48 = vpop.eup %3849  ;;  %v2545_v15 = vmul.f32 1.442695, %v2540_v13 }
 0xf1d   : > { %v2551_v63 = vsel %vm5578_vm9, %v3850_v48, 0.0  ;;  %vm5589_vm9 = vmmov %vm5551_vm0 }
 0xf1e   : > { %3851 = vpow2.f32 %v2545_v15  ;;  %2552 = vadd.xlane.f32.xlu0 %v2551_v63 }
 0xf21   : > { %v2535_v22 = vpop.xlane.xlu1 %2534 }
 0xf22   : > { %v2541_v19 = vsub.f32 %v2525_v11, %v2535_v22 }
 0xf24   : > { %v3852_v55 = vpop.eup %3851  ;;  %v2547_v25 = vmul.f32 1.442695, %v2541_v19 }
 0xf25   : > { %v2554_v27 = vsel %vm5579_vm8, %v3852_v55, 0.0  ;;  %vm5590_vm8 = vmmov %vm5551_vm0 }
 0xf26   : > { %3853 = vpow2.f32 %v2547_v25  ;;  %2555 = vadd.xlane.f32.xlu1 %v2554_v27  ;;  %v5136_v25 = vsel %vm4593_vm11, %v2699_v46, -1e+30 }
 0xf27   : > { %v2715_v45 = vsel %vm5597_vm1, %v5136_v25, -inf  ;;  %vm5612_vm1 = vmmov %vm5551_vm0 }
 0xf29   : > { %v2538_v30 = vpop.xlane.xlu2 %2537 }
 0xf2a   : > { %v2542_v31 = vsub.f32 %v2526_v62, %v2538_v30 }
 0xf2c   : > { %v3854_v6 = vpop.eup %3853  ;;  %v2549_v34 = vmul.f32 1.442695, %v2542_v31 }
 0xf2d   : > { %v2557_v39 = vsel %vm5581_vm10, %v3854_v6, 0.0  ;;  %vm5592_vm10 = vmmov %vm5551_vm0 }
 0xf2e   : > { %3855 = vpow2.f32 %v2549_v34  ;;  %2431 = vmax.xlane.f32.xlu1 %v2430_v7  ;;  %2558 = vadd.xlane.f32.xlu2 %v2557_v39 }
 0xf34   : > { %v3856_v21 = vpop.eup %3855 }
 0xf35   : > { %v2560_v54 = vsel %vm5583_vm14, %v3856_v21, 0.0  ;;  %vm5594_vm14 = vmmov %vm5551_vm0 }
 0xf36   : > { %2434 = vmax.xlane.f32.xlu2 %v2433_v41  ;;  %2561 = vadd.xlane.f32.xlu0 %v2560_v54 }
 0xf37   : > { %2440 = vmax.xlane.f32.xlu1 %v2439_v33 }
 0xf3e   : > { %2437 = vmax.xlane.f32.xlu0 %v2436_v36  ;;  %2707 = vmax.xlane.f32.xlu2 %v2706_v61 }
 0xf46   : > { %2710 = vmax.xlane.f32.xlu0 %v2709_v28  ;;  %2713 = vmax.xlane.f32.xlu2 %v2712_v49 }
 0xf91   : > { %v2553_v37 = vpop.xlane.xlu0 %2552 }
 0xf92   : > { %3857 = vrcp.f32 %v2553_v37 }
 0xf98   : > { %v3858_v29 = vpop.eup %3857 }
 0xf99   : > { %v2567_v56 = vmul.f32 %v3858_v29, %v3850_v48  ;;  %v2556_v24 = vpop.xlane.xlu1 %2555 }
 0xf9a   : > { %3859 = vrcp.f32 %v2556_v24 }
 0xf9b   : > { %3580 = vmatmul.msk.f32.vlgmr.msra.gmra.mxu0 %vm5588_vm6, %v2567_v56  ;;  %vm5602_vm6 = vmmov %vm5551_vm0 }
 0xfa0   : > { %v3860_v11 = vpop.eup %3859 }
 0xfa1   : > { %v2559_v18 = vpop.xlane.xlu2 %2558  ;;  %v2568_v59 = vmul.f32 %v3860_v11, %v3852_v55  ;;  %v2432_v5 = vpop.xlane.xlu1 %2431 }
 0xfa2   : > { %3861 = vrcp.f32 %v2559_v18  ;;  %v2442_v60 = vsub.f32 %v5061_v20, %v2432_v5 }
 0xfa3   : > { %3581 = vmatmul.msk.f32.gmra.mxu0 %vm5589_vm9, %v2568_v59  ;;  %vm5604_vm9 = vmmov %vm5551_vm0 }
 0xfa4   : > { %v2446_v55 = vmul.f32 1.442695, %v2442_v60 }
 0xfa8   : > { %v3862_v62 = vpop.eup %3861 }
 0xfa9   : > { %v2562_v0 = vpop.xlane.xlu0 %2561  ;;  %v2569_v58 = vmul.f32 %v3862_v62, %v3854_v6  ;;  %v2435_v22 = vpop.xlane.xlu2 %2434 }
 0xfaa   : > { %3863 = vrcp.f32 %v2562_v0  ;;  %v2443_v27 = vsub.f32 %v5068_v42, %v2435_v22 }
 0xfab   : > { %3582 = vmatmul.msk.f32.gmra.mxu0 %vm5590_vm8, %v2569_v58  ;;  %3865 = vpow2.f32 %v2446_v55  ;;  %vm5605_vm8 = vmmov %vm5551_vm0 }
 0xfac   : > { %v2448_v6 = vmul.f32 1.442695, %v2443_v27 }
 0xfae   : > { %3867 = vpow2.f32 %v2448_v6 }
 0xfb0   : > { %v3864_v1 = vpop.eup %3863 }
 0xfb1   : > { %v2570_v40 = vmul.f32 %v3864_v1, %v3856_v21  ;;  %v2438_v19 = vpop.xlane.xlu0 %2437  ;;  %v2708_v34 = vpop.xlane.xlu2 %2707 }
 0xfb2   : > { %v2444_v38 = vsub.f32 %v5081_v35, %v2438_v19  ;;  %v5148_v42 = vpop.eup %3865  ;;  %v2441_v21 = vpop.xlane.xlu1 %2440  ;;  %v2718_v4 = vsub.f32 %v5085_v43, %v2708_v34 }
 0xfb3   : > { %3583 = vmatmul.msk.f32.gmra.mxu0 %vm5591_vm3, %v2570_v40  ;;  %v2445_v33 = vsub.f32 %v5072_v3, %v2441_v21  ;;  %vm5606_vm3 = vmmov %vm5551_vm0 }
 0xfb4   : > { %v2450_v7 = vmul.f32 1.442695, %v2444_v38  ;;  %v2722_v61 = vmul.f32 1.442695, %v2718_v4  ;;  %v5158_v28 = vpop.eup %3867 }
 0xfb5   : > { %v2452_v43 = vmul.f32 1.442695, %v2445_v33  ;;  %v2457_v56 = vsel %vm5601_vm5, %v5158_v28, 0.0  ;;  %vm5616_vm5 = vmmov %vm5551_vm0 }
 0xfb6   : > { %3869 = vpow2.f32 %v2450_v7 }
 0xfb7   : > { %3871 = vpow2.f32 %v2722_v61 }
 0xfb9   : > { %v2711_v39 = vpop.xlane.xlu0 %2710  ;;  %v2714_v49 = vpop.xlane.xlu2 %2713 }
 0xfba   : > { %v2719_v41 = vsub.f32 %v5093_v52, %v2711_v39  ;;  %v2720_v3 = vsub.f32 %v5097_v57, %v2714_v49 }
 0xfbb   : > { %3604 = vmatmul.msk.f32.vlgmr.msrb.gmra.mxu0 %vm5592_vm10, %v2799_v10  ;;  %vm5607_vm10 = vmmov %vm5551_vm0 }
 0xfbc   : > { %v2724_v53 = vmul.f32 1.442695, %v2719_v41  ;;  %v5160_v37 = vpop.eup %3869  ;;  %v2726_v11 = vmul.f32 1.442695, %v2720_v3 }
 0xfbd   : > { %v5170_v18 = vpop.eup %3871 }
 0xfbe   : > { %3873 = vpow2.f32 %v2724_v53  ;;  %v2730_v62 = vsel %vm5604_vm9, %v5170_v18, 0.0  ;;  %vm5619_vm9 = vmmov %vm5551_vm0 }
 0xfbf   : > { %3875 = vpow2.f32 %v2452_v43 }
 0xfc0   : > { %3877 = vpow2.f32 %v2726_v11 }
 0xfc3   : > { %3605 = vmatmul.msk.f32.gmra.mxu0 %vm5593_vm12, %v2800_v12  ;;  %vm5608_vm12 = vmmov %vm5551_vm0 }
 0xfc4   : > { %v5172_v59 = vpop.eup %3873 }
 0xfc5   : > { %v5174_v57 = vpop.eup %3875 }
 0xfc6   : > { %v2463_v0 = vsel %vm5605_vm8, %v5174_v57, 0.0  ;;  %v5182_v58 = vpop.eup %3877  ;;  %vm5620_vm8 = vmmov %vm5551_vm0 }
 0xfc7   : > { %v2736_v1 = vsel %vm5606_vm3, %v5182_v58, 0.0  ;;  %vm5621_vm3 = vmmov %vm5551_vm0 }
 0xfcb   : > { %3606 = vmatmul.msk.f32.gmra.mxu0 %vm5594_vm14, %v2801_v47  ;;  %vm5609_vm14 = vmmov %vm5551_vm0 }
 0xfd3   : > { %3607 = vmatmul.msk.f32.gmra.mxu0 %vm5595_vm15, %v2802_v8  ;;  %vm5610_vm15 = vmmov %vm5551_vm0 }
0x1018   : > { %v5119_v13 = vpop.f32.mrf.mxu0 }
0x1020   : > { %v5121_v50 = vpop.f32.mrf.mxu0 }
0x1028   : > { %v5123_v48 = vpop.f32.mrf.mxu0 }
0x1030   : > { %v5125_v15 = vpop.f32.mrf.mxu0 }
0x1038   : > { %v2832_v63 = vpop.f32.mrf.mxu0 }
0x1039   : > { %v5130_v17 = vsel %vm5471_vm13, %v2832_v63, -1e+30  ;;  %vm5596_vm13 = vmmov %vm5551_vm0 }
0x103a   : > { %v2848_v2 = vsel %vm5551_vm0, %v5130_v17, -inf }
0x103b   : > { %2849 = vmax.xlane.f32.xlu1 %v2848_v2 }
0x1040   : > { %v2835_v30 = vpop.f32.mrf.mxu0 }
0x1041   : > { %v5142_v20 = vsel %vm4579_vm7, %v2835_v30, -1e+30  ;;  %vm5598_vm7 = vmmov %vm5551_vm0 }
0x1042   : > { %v2851_v31 = vsel %vm5596_vm13, %v5142_v20, -inf  ;;  %v2454_v35 = vsel %vm5598_vm7, %v5148_v42, 0.0  ;;  %vm5611_vm13 = vmmov %vm5551_vm0 }
0x1043   : > { %2852 = vmax.xlane.f32.xlu0 %v2851_v31  ;;  %2716 = vmax.xlane.f32.xlu1 %v2715_v45  ;;  %vm5613_vm7 = vmmov %vm5551_vm0 }
0x1048   : > { %v2838_v26 = vpop.f32.mrf.mxu0 }
0x1049   : > { %v2846_v54 = vsel %vm4586_vm2, %v2838_v26, -1e+30  ;;  %vm5600_vm2 = vmmov %vm5551_vm0 }
0x104a   : > { %v2854_v36 = vsel %vm5599_vm4, %v2846_v54, -inf  ;;  %v2460_v29 = vsel %vm5600_vm2, %v5160_v37, 0.0  ;;  %vm5614_vm4 = vmmov %vm5551_vm0 }
0x104b   : > { %2455 = vadd.xlane.f32.xlu0 %v2454_v35  ;;  %2855 = vmax.xlane.f32.xlu2 %v2854_v36  ;;  %vm5615_vm2 = vmmov %vm5551_vm0 }
0x1050   : > { %v2841_v9 = vpop.f32.mrf.mxu0 }
0x1051   : > { %v2847_v52 = vsel %vm4593_vm11, %v2841_v9, -1e+30  ;;  %vm5603_vm11 = vmmov %vm5551_vm0 }
0x1052   : > { %v2857_v24 = vsel %vm5602_vm6, %v2847_v52, -inf  ;;  %v2733_v14 = vsel %vm5603_vm11, %v5172_v59, 0.0  ;;  %vm5617_vm6 = vmmov %vm5551_vm0 }
0x1053   : > { %2461 = vadd.xlane.f32.xlu0 %v2460_v29  ;;  %2458 = vadd.xlane.f32.xlu2 %v2457_v56  ;;  %vm5618_vm11 = vmmov %vm5551_vm0 }
0x1054   : > { %2858 = vmax.xlane.f32.xlu1 %v2857_v24 }
0x105b   : > { %2734 = vadd.xlane.f32.xlu0 %v2733_v14  ;;  %2731 = vadd.xlane.f32.xlu2 %v2730_v62 }
0x105c   : > { %2464 = vadd.xlane.f32.xlu1 %v2463_v0 }
0x1063   : > { %2737 = vadd.xlane.f32.xlu2 %v2736_v1 }
0x10ae   : > { %v2850_v40 = vpop.xlane.xlu1 %2849 }
0x10af   : > { %v2860_v10 = vsub.f32 %v5130_v17, %v2850_v40 }
0x10b1   : > { %v2864_v12 = vmul.f32 1.442695, %v2860_v10 }
0x10b3   : > { %3879 = vpow2.f32 %v2864_v12 }
0x10b6   : > { %v2853_v47 = vpop.xlane.xlu0 %2852  ;;  %v2717_v8 = vpop.xlane.xlu1 %2716 }
0x10b7   : > { %v2861_v5 = vsub.f32 %v5142_v20, %v2853_v47  ;;  %v2721_v63 = vsub.f32 %v5136_v25, %v2717_v8  ;;  %v2266_v8 = vld [vmem:[#allocation2 + $0x178] sm:$0xff] }
0x10b8   : > { %2966 = vmatpush.msra.mxu2 %v2266_v8 }
0x10b9   : > { %v5189_v60 = vpop.eup %3879  ;;  %v2866_v22 = vmul.f32 1.442695, %v2861_v5  ;;  %v2728_v2 = vmul.f32 1.442695, %v2721_v63  ;;  %v2265_v5 = vld [vmem:[#allocation2 + $0x170] sm:$0xff] }
0x10ba   : > { %v2872_v46 = vsel %vm5607_vm10, %v5189_v60, 0.0  ;;  %2967 = vmatpush.msra.mxu2 %v2265_v5  ;;  %vm5622_vm10 = vmmov %vm5551_vm0 }
0x10bb   : > { %3881 = vpow2.f32 %v2866_v22  ;;  %2873 = vadd.xlane.f32.xlu1 %v2872_v46  ;;  %v2263_v46 = vld [vmem:[#allocation2 + $0x160] sm:$0xff] }
0x10bc   : > { %3883 = vpow2.f32 %v2728_v2  ;;  %v2264_v2 = vld [vmem:[#allocation2 + $0x168] sm:$0xff] }
0x10bd   : > { %2968 = vmatpush.msra.mxu2 %v2264_v2  ;;  %v3619_v2 = vld [vmem:[%s5444_s3 + $0x38] sm:$0xff] }
0x10be   : > { %v2456_v19 = vpop.xlane.xlu0 %2455  ;;  %v2856_v17 = vpop.xlane.xlu2 %2855  ;;  %3115 = vmatpush.msrb.mxu3 %v3619_v2 }
0x10bf   : > { %3885 = vrcp.f32 %v2456_v19  ;;  %v2862_v55 = vsub.f32 %v2846_v54, %v2856_v17  ;;  %2969 = vmatpush.msra.mxu2 %v2263_v46  ;;  %v3618_v46 = vld [vmem:[%s5444_s3 + $0x30] sm:$0xff] }
0x10c0   : > { %3116 = vmatpush.msrb.mxu3 %v3618_v46 }
0x10c1   : > { %v5193_v27 = vpop.eup %3881  ;;  %v2868_v30 = vmul.f32 1.442695, %v2862_v55 }
0x10c2   : > { %v5195_v38 = vpop.eup %3883  ;;  %v2875_v25 = vsel %vm5608_vm12, %v5193_v27, 0.0  ;;  %vm5623_vm12 = vmmov %vm5551_vm0 }
0x10c3   : > { %3887 = vpow2.f32 %v2868_v30  ;;  %2876 = vadd.xlane.f32.xlu0 %v2875_v25  ;;  %v2739_v20 = vsel %vm5609_vm14, %v5195_v38, 0.0  ;;  %vm5624_vm14 = vmmov %vm5551_vm0 }
0x10c4   : > { %2740 = vadd.xlane.f32.xlu1 %v2739_v20 }
0x10c5   : > { %v3886_v31 = vpop.eup %3885 }
0x10c6   : > { %v2470_v45 = vmul.f32 %v3886_v31, %v5148_v42  ;;  %v2459_v6 = vpop.xlane.xlu2 %2458  ;;  %v2462_v7 = vpop.xlane.xlu0 %2461 }
0x10c7   : > { %v2859_v34 = vpop.xlane.xlu1 %2858  ;;  %3889 = vrcp.f32 %v2459_v6 }
0x10c8   : > { %v2863_v39 = vsub.f32 %v2847_v52, %v2859_v34  ;;  %3584 = vmatmul.msk.f32.vlgmr.msra.gmra.mxu1 %vm5610_vm15, %v2470_v45  ;;  %vm5625_vm15 = vmmov %vm5551_vm0 }
0x10c9   : > { %v3888_v21 = vpop.eup %3887 }
0x10ca   : > { %v2870_v4 = vmul.f32 1.442695, %v2863_v39  ;;  %v2878_v26 = vsel %vm5551_vm0, %v3888_v21, 0.0 }
0x10cb   : > { %2879 = vadd.xlane.f32.xlu2 %v2878_v26 }
0x10cc   : > { %3891 = vpow2.f32 %v2870_v4 }
0x10cd   : > { %v3890_v41 = vpop.eup %3889  ;;  %3893 = vrcp.f32 %v2462_v7 }
0x10ce   : > { %v2732_v54 = vpop.xlane.xlu2 %2731  ;;  %v2471_v33 = vmul.f32 %v3890_v41, %v5158_v28  ;;  %v2735_v35 = vpop.xlane.xlu0 %2734 }
0x10cf   : > { %3895 = vrcp.f32 %v2732_v54  ;;  %v2465_v36 = vpop.xlane.xlu1 %2464 }
0x10d0   : > { %3585 = vmatmul.msk.f32.gmra.mxu1 %vm5611_vm13, %v2471_v33  ;;  %3897 = vrcp.f32 %v2735_v35  ;;  %vm5626_vm13 = vmmov %vm5551_vm0 }
0x10d1   : > { %3899 = vrcp.f32 %v2465_v36 }
0x10d2   : > { %v3892_v42 = vpop.eup %3891 }
0x10d3   : > { %v2881_v61 = vsel %vm5612_vm1, %v3892_v42, 0.0  ;;  %v3894_v53 = vpop.eup %3893  ;;  %vm5627_vm1 = vmmov %vm5551_vm0 }
0x10d4   : > { %2882 = vadd.xlane.f32.xlu0 %v2881_v61  ;;  %v2472_v9 = vmul.f32 %v3894_v53, %v5160_v37 }
0x10d5   : > { %v3896_v43 = vpop.eup %3895 }
0x10d6   : > { %v2746_v49 = vmul.f32 %v3896_v43, %v5170_v18  ;;  %v3898_v28 = vpop.eup %3897  ;;  %v2738_v3 = vpop.xlane.xlu2 %2737 }
0x10d7   : > { %v3900_v52 = vpop.eup %3899  ;;  %3901 = vrcp.f32 %v2738_v3  ;;  %v2747_v56 = vmul.f32 %v3898_v28, %v5172_v59 }
0x10d8   : > { %3586 = vmatmul.msk.f32.gmra.mxu1 %vm5613_vm7, %v2472_v9  ;;  %3596 = vmatmul.msk.f32.vlgmr.msra.gmra.mxu3 %vm5614_vm4, %v2746_v49  ;;  %v2473_v29 = vmul.f32 %v3900_v52, %v5174_v57  ;;  %vm5628_vm7 = vmmov %vm5551_vm0 }
0x10d9   : > { %vm5629_vm4 = vmmov %vm5551_vm0 }
0x10dd   : > { %v3902_v24 = vpop.eup %3901 }
0x10de   : > { %v2748_v11 = vmul.f32 %v3902_v24, %v5182_v58 }
0x10e0   : > { %3587 = vmatmul.msk.f32.gmra.mxu1 %vm5615_vm2, %v2473_v29  ;;  %3597 = vmatmul.msk.f32.gmra.mxu3 %vm5616_vm5, %v2747_v56  ;;  %vm5630_vm2 = vmmov %vm5551_vm0 }
0x10e1   : > { %vm5631_vm5 = vmmov %vm5551_vm0 }
0x10e8   : > { %3598 = vmatmul.msk.f32.gmra.mxu3 %vm5617_vm6, %v2748_v11  ;;  %vm5632_vm6 = vmmov %vm5551_vm0 }
0x112e   : > { %v2874_v37 = vpop.xlane.xlu1 %2873 }
0x112f   : > { %3903 = vrcp.f32 %v2874_v37 }
0x1135   : > { %v3904_v18 = vpop.eup %3903 }
0x1136   : > { %v2888_v14 = vmul.f32 %v3904_v18, %v5189_v60  ;;  %v2877_v62 = vpop.xlane.xlu0 %2876 }
0x1137   : > { %3905 = vrcp.f32 %v2877_v62  ;;  %v2741_v0 = vpop.xlane.xlu1 %2740 }
0x1138   : > { %3907 = vrcp.f32 %v2741_v0  ;;  %3608 = vmatmul.msk.f32.vlgmr.msrb.gmra.mxu1 %vm5618_vm11, %v2888_v14  ;;  %vm5633_vm11 = vmmov %vm5551_vm0 }
0x113d   : > { %v3906_v59 = vpop.eup %3905 }
0x113e   : > { %v3908_v57 = vpop.eup %3907  ;;  %v2880_v1 = vpop.xlane.xlu2 %2879  ;;  %v2889_v40 = vmul.f32 %v3906_v59, %v5193_v27 }
0x113f   : > { %3909 = vrcp.f32 %v2880_v1  ;;  %v2749_v58 = vmul.f32 %v3908_v57, %v5195_v38 }
0x1140   : > { %3609 = vmatmul.msk.f32.gmra.mxu1 %vm5619_vm9, %v2889_v40 }
0x1141   : > { %3599 = vmatmul.msk.f32.gmra.mxu3 %vm5620_vm8, %v2749_v58 }
0x1145   : > { %v3910_v10 = vpop.eup %3909  ;;  %v2645_v22 = vpop.f32.mrf.mxu1 }
0x1146   : > { %v2890_v12 = vmul.f32 %v3910_v10, %v3888_v21  ;;  %v2646_v30 = vadd.f32 %v2645_v22, %v5119_v13 }
0x1147   : > { %v2883_v47 = vpop.xlane.xlu0 %2882 }
0x1148   : > { %3911 = vrcp.f32 %v2883_v47  ;;  %3610 = vmatmul.msk.f32.gmra.mxu1 %vm5621_vm3, %v2890_v12 }
0x114d   : > { %v2648_v19 = vpop.f32.mrf.mxu1 }
0x114e   : > { %v3912_v63 = vpop.eup %3911  ;;  %v2649_v45 = vadd.f32 %v2648_v19, %v5121_v50  ;;  %v5236_v50 = vld [vmem:[%s5442_s1 + $0x18] sm:$0xff]  ;;  %v3617_v19 = vld [vmem:[%s5444_s3 + $0x28] sm:$0xff] }
0x114f   : > { %v2891_v60 = vmul.f32 %v3912_v63, %v3892_v42  ;;  %3117 = vmatpush.msrb.mxu3 %v3617_v19  ;;  %v3628_v19 = vld [vmem:[%s5445_s4 + $0xa0] sm:$0xff] }
0x1151   : > { %3611 = vmatmul.msk.f32.gmra.mxu1 %vm5622_vm10, %v2891_v60 }
0x1155   : > { %v2651_v17 = vpop.f32.mrf.mxu1 }
0x1156   : > { %v2652_v21 = vadd.f32 %v2651_v17, %v5123_v48  ;;  %v2941_v48 = vperm.slane %v5236_v50, 6  ;;  %v3616_v17 = vld [vmem:[%s5444_s3 + $0x20] sm:$0xff] }
0x1157   : > { %3118 = vmatpush.msrb.mxu3 %v3616_v17 }
0x115b   : > { %v2783_v55 = vpop.f32.mrf.mxu3 }
0x115c   : > { %v2795_v38 = vadd.f32 %v2783_v55, %v2646_v30 }
0x115d   : > { %v2654_v27 = vpop.f32.mrf.mxu1 }
0x115e   : > { %v2655_v54 = vadd.f32 %v2654_v27, %v5125_v15 }
0x1163   : > { %v2786_v31 = vpop.f32.mrf.mxu3 }
0x1164   : > { %v2796_v6 = vadd.f32 %v2786_v31, %v2649_v45 }
0x116b   : > { %v2789_v39 = vpop.f32.mrf.mxu3 }
0x116c   : > { %v2797_v4 = vadd.f32 %v2789_v39, %v2652_v21 }
0x11b5   : > { %v2925_v25 = vpop.f32.mrf.mxu1 }
0x11b6   : > { %v2937_v20 = vadd.f32 %v2925_v25, %v2795_v38 }
0x11b8   : > { %3612 = vmatmul.msk.f32.vlgmr.msra.gmra.mxu2 %vm5623_vm12, %v2937_v20 }
0x11bd   : > { %v2928_v34 = vpop.f32.mrf.mxu1 }
0x11be   : > { %v2938_v7 = vadd.f32 %v2928_v34, %v2796_v6 }
0x11c0   : > { %3613 = vmatmul.msk.f32.gmra.mxu2 %vm5624_vm14, %v2938_v7 }
0x11c4   : > { %v2792_v13 = vpop.f32.mrf.mxu3 }
0x11c5   : > { %v2931_v26 = vpop.f32.mrf.mxu1  ;;  %v2798_v33 = vadd.f32 %v2792_v13, %v2655_v54 }
0x11c6   : > { %v2939_v41 = vadd.f32 %v2931_v26, %v2797_v4 }
0x11c8   : > { %3614 = vmatmul.msk.f32.gmra.mxu2 %vm5625_vm15, %v2939_v41  ;;  %v5285_v41 = vld [vmem:[%s5442_s1 + $0x20] sm:$0x7f]  ;;  %vm5634_vm15 = vmmov %vm5551_vm0 }
0x11ce   : > { %v2934_v42 = vpop.f32.mrf.mxu1 }
0x11cf   : > { %v2940_v35 = vadd.f32 %v2934_v42, %v2798_v33  ;;  %v5288_v33 = vperm.slane %v5236_v50, 7  ;;  %v3637_v50 = vld [vmem:[%s5445_s4 + $0xe8] sm:$0xff] }
0x11d1   : > { %3615 = vmatmul.msk.f32.gmra.mxu2 %vm5551_vm0, %v2940_v35 }
0x123b   : > { %v2971_v36 = vpop.f32.mrf.mxu2 }
0x123c   : > { %v2972_v61 = vadd.f32 %v2971_v36, %v2941_v48  ;;  %v3638_v36 = vld [vmem:[%s5445_s4 + $0xf0] sm:$0xff] }
0x123e   : > { %v2983_v53 = vadd.f32 %v2972_v61, %v4931_v23  ;;  %v5297_v61 = vperm.slane %v5285_v41, 0 }
0x1240   : > { %v2987_v43 = vsel %vm5626_vm13, %v2983_v53, 0.0 }
0x1241   : > { %2988 = vadd.xlane.f32.xlu1 %v2987_v43 }
0x1243   : > { %v2974_v15 = vpop.f32.mrf.mxu2 }
0x1244   : > { %v2975_v49 = vadd.f32 %v2974_v15, %v2941_v48 }
0x1246   : > { %v2984_v9 = vadd.f32 %v2975_v49, %v4940_v16 }
0x1248   : > { %v2990_v28 = vsel %vm5627_vm1, %v2984_v9, 0.0 }
0x1249   : > { %2991 = vadd.xlane.f32.xlu2 %v2990_v28 }
0x124b   : > { %v2977_v3 = vpop.f32.mrf.mxu2 }
0x124c   : > { %v2978_v52 = vadd.f32 %v2977_v3, %v2941_v48  ;;  %v3636_v3 = vld [vmem:[%s5445_s4 + $0xe0] sm:$0xff] }
0x124e   : > { %v2985_v29 = vadd.f32 %v2978_v52, %v4949_v51 }
0x1250   : > { %v2993_v56 = vsel %vm5628_vm7, %v2985_v29, 0.0  ;;  %vm5635_vm7 = vmmov %vm5630_vm2 }
0x1251   : > { %2994 = vadd.xlane.f32.xlu0 %v2993_v56 }
0x1254   : > { %v2980_v24 = vpop.f32.mrf.mxu2 }
0x1255   : > { %v2981_v11 = vadd.f32 %v2980_v24, %v2941_v48  ;;  %v3639_v48 = vld [vmem:[%s5445_s4 + $0xf8] sm:$0xff] }
0x1256   : > { %3154 = vmatpush.msra.mxu0 %v3639_v48 }
0x1257   : > { %v2986_v23 = vadd.f32 %v2981_v11, %v4958_v32 }
0x1258   : > { %3155 = vmatpush.msra.mxu0 %v3638_v36  ;;  %v3153_v36 = vperm.slane %v5285_v41, 2 }
0x1259   : > { %v2996_v37 = vsel %vm5629_vm4, %v2986_v23, 0.0 }
0x125a   : > { %2997 = vadd.xlane.f32.xlu1 %v2996_v37  ;;  %3156 = vmatpush.msra.mxu0 %v3637_v50 }
0x125c   : > { %3157 = vmatpush.msra.mxu0 %v3636_v3 }
0x12b4   : > { %v2989_v18 = vpop.xlane.xlu1 %2988 }
0x12b5   : > { %v2999_v16 = vmul.f32 %v2989_v18, %v4769_v44 }
0x12b7   : > { %v3003_v14 = vsub.f32 %v2983_v53, %v2999_v16  ;;  %v3634_v16 = vld [vmem:[%s5445_s4 + $0xd0] sm:$0xff] }
0x12b9   : > { %v3007_v62 = vmul.f32 %v3003_v14, %v3003_v14 }
0x12bb   : > { %v3011_v0 = vsel %vm5630_vm2, %v3007_v62, 0.0 }
0x12bc   : > { %v2992_v59 = vpop.xlane.xlu2 %2991  ;;  %3012 = vadd.xlane.f32.xlu2 %v3011_v0  ;;  %v3633_v0 = vld [vmem:[%s5445_s4 + $0xc8] sm:$0xff] }
0x12bd   : > { %v3000_v51 = vmul.f32 %v2992_v59, %v4769_v44 }
0x12bf   : > { %v5250_v57 = vsub.f32 %v2984_v9, %v3000_v51 }
0x12c1   : > { %v3008_v1 = vmul.f32 %v5250_v57, %v5250_v57 }
0x12c3   : > { %v3014_v32 = vsel %vm5631_vm5, %v3008_v1, 0.0  ;;  %v3632_v1 = vld [vmem:[%s5445_s4 + $0xc0] sm:$0xff] }
0x12c4   : > { %3015 = vadd.xlane.f32.xlu0 %v3014_v32  ;;  %v2995_v40 = vpop.xlane.xlu0 %2994 }
0x12c5   : > { %v3001_v58 = vmul.f32 %v2995_v40, %v4769_v44 }
0x12c7   : > { %v5256_v10 = vsub.f32 %v2985_v29, %v3001_v58  ;;  %v3631_v58 = vld [vmem:[%s5445_s4 + $0xb8] sm:$0xff] }
0x12c9   : > { %v3009_v12 = vmul.f32 %v5256_v10, %v5256_v10 }
0x12cb   : > { %v3017_v47 = vsel %vm5632_vm6, %v3009_v12, 0.0 }
0x12cc   : > { %3018 = vadd.xlane.f32.xlu1 %v3017_v47 }
0x12cd   : > { %v2998_v8 = vpop.xlane.xlu1 %2997 }
0x12ce   : > { %v3002_v5 = vmul.f32 %v2998_v8, %v4769_v44  ;;  %v3630_v8 = vld [vmem:[%s5445_s4 + $0xb0] sm:$0xff] }
0x12d0   : > { %v5262_v63 = vsub.f32 %v2986_v23, %v3002_v5  ;;  %v3635_v23 = vld [vmem:[%s5445_s4 + $0xd8] sm:$0xff] }
0x12d1   : > { %3158 = vmatpush.msra.mxu0 %v3635_v23 }
0x12d2   : > { %v3010_v60 = vmul.f32 %v5262_v63, %v5262_v63 }
0x12d3   : > { %3159 = vmatpush.msra.mxu0 %v3634_v16 }
0x12d4   : > { %v3020_v22 = vsel %vm5633_vm11, %v3010_v60, 0.0  ;;  %vm5636_vm11 = vmmov %vm5631_vm5 }
0x12d5   : > { %3021 = vadd.xlane.f32.xlu2 %v3020_v22  ;;  %3160 = vmatpush.msra.mxu0 %v3633_v0  ;;  %v3629_v22 = vld [vmem:[%s5445_s4 + $0xa8] sm:$0xff] }
0x12d7   : > { %3161 = vmatpush.msra.mxu0 %v3632_v1 }
0x12d9   : > { %3162 = vmatpush.msra.mxu0 %v3631_v58 }
0x12db   : > { %3163 = vmatpush.msra.mxu0 %v3630_v8 }
0x12dd   : > { %3164 = vmatpush.msra.mxu0 %v3629_v22 }
0x12df   : > { %3165 = vmatpush.msra.mxu0 %v3628_v19 }
0x132f   : > { %v3013_v55 = vpop.xlane.xlu2 %3012 }
0x1330   : > { %v3023_v27 = vmul.f32 %v3013_v55, %v4769_v44 }
0x1332   : > { %v3027_v30 = vadd.f32 1e-05, %v3023_v27 }
0x1334   : > { %3913 = vrsqrt.f32 %v3027_v30  ;;  %vm3037_vm8 = vweird.f32 %v3027_v30 }
0x1337   : > { %v3016_v38 = vpop.xlane.xlu0 %3015 }
0x1338   : > { %v3024_v25 = vmul.f32 %v3016_v38, %v4769_v44 }
0x133a   : > { %v3914_v20 = vpop.eup %3913  ;;  %v3028_v31 = vadd.f32 1e-05, %v3024_v25 }
0x133b   : > { %v3032_v45 = vmul.f32 %v3914_v20, %v3027_v30  ;;  %vm3038_vm9 = vweird.f32 %v3914_v20 }
0x133c   : > { %3915 = vrsqrt.f32 %v3028_v31  ;;  %vm3039_vm3 = vmor %vm3037_vm8, %vm3038_vm9  ;;  %vm3047_vm12 = vweird.f32 %v3028_v31 }
0x133d   : > { %v3033_v6 = vmul.f32 %v3914_v20, %v3032_v45  ;;  %v3625_v45 = vld [vmem:[%s5445_s4 + $0x88] sm:$0xff]  ;;  %vm5637_vm9 = vmmov %vm5631_vm5 }
0x133e   : > { %vm5638_vm8 = vmmov %vm5631_vm5 }
0x133f   : > { %v3034_v34 = vmul.f32 0.5, %v3033_v6  ;;  %v3019_v7 = vpop.xlane.xlu1 %3018  ;;  %v3624_v6 = vld [vmem:[%s5445_s4 + $0x80] sm:$0xff] }
0x1340   : > { %v3025_v39 = vmul.f32 %v3019_v7, %v4769_v44 }
0x1341   : > { %v3035_v21 = vsub.f32 1.5, %v3034_v34 }
0x1342   : > { %v3916_v4 = vpop.eup %3915  ;;  %v3029_v26 = vadd.f32 1e-05, %v3025_v39 }
0x1343   : > { %v3036_v13 = vmul.f32 %v3914_v20, %v3035_v21  ;;  %v3042_v54 = vmul.f32 %v3916_v4, %v3028_v31  ;;  %vm3048_vm10 = vweird.f32 %v3916_v4  ;;  %v3626_v31 = vld [vmem:[%s5445_s4 + $0x90] sm:$0xff] }
0x1344   : > { %3917 = vrsqrt.f32 %v3029_v26  ;;  %vm3049_vm14 = vmor %vm3047_vm12, %vm3048_vm10  ;;  %vm3057_vm13 = vweird.f32 %v3029_v26 }
0x1345   : > { %v3040_v42 = vsel %vm3039_vm3, %v3914_v20, %v3036_v13  ;;  %v3043_v35 = vmul.f32 %v3916_v4, %v3042_v54  ;;  %vm5639_vm3 = vmmov %vm5631_vm5 }
0x1346   : > { %v3071_v53 = vmul.f32 %v3040_v42, %v3003_v14  ;;  %vm5640_vm10 = vmmov %vm5639_vm3 }
0x1347   : > { %v3044_v43 = vmul.f32 0.5, %v3043_v35  ;;  %vm5641_vm12 = vmmov %vm5639_vm3 }
0x1348   : > { %v3076_v15 = vmul.f32 %v5288_v33, %v3071_v53  ;;  %v3022_v49 = vpop.xlane.xlu2 %3021 }
0x1349   : > { %v3045_v9 = vsub.f32 1.5, %v3044_v43  ;;  %v3026_v28 = vmul.f32 %v3022_v49, %v4769_v44 }
0x134a   : > { %v3918_v52 = vpop.eup %3917  ;;  %v5308_v29 = vadd.f32 %v5297_v61, %v3076_v15 }
0x134b   : > { %v3046_v56 = vmul.f32 %v3916_v4, %v3045_v9  ;;  %v3052_v24 = vmul.f32 %v3918_v52, %v3029_v26  ;;  %v3030_v11 = vadd.f32 1e-05, %v3026_v28  ;;  %vm3058_vm0 = vweird.f32 %v3918_v52 }
0x134c   : > { %3620 = vmatmul.msk.f32.vlgmr.msrb.gmra.mxu3 %vm5634_vm15, %v5308_v29  ;;  %vm3059_vm1 = vmor %vm3057_vm13, %vm3058_vm0 }
0x134d   : > { %v3050_v37 = vsel %vm3049_vm14, %v3916_v4, %v3046_v56  ;;  %v3053_v18 = vmul.f32 %v3918_v52, %v3052_v24  ;;  %3919 = vrsqrt.f32 %v3030_v11  ;;  %vm3067_vm2 = vweird.f32 %v3030_v11  ;;  %vm5642_vm14 = vmmov %vm5639_vm3 }
0x134e   : > { %v3072_v14 = vmul.f32 %v3050_v37, %v5250_v57  ;;  %vm5643_vm15 = vmmov %vm5639_vm3 }
0x134f   : > { %v3054_v62 = vmul.f32 0.5, %v3053_v18  ;;  %vm5644_vm0 = vmmov %vm5639_vm3 }
0x1350   : > { %v3077_v59 = vmul.f32 %v5288_v33, %v3072_v14 }
0x1351   : > { %v3055_v51 = vsub.f32 1.5, %v3054_v62 }
0x1352   : > { %v5327_v32 = vadd.f32 %v5297_v61, %v3077_v59 }
0x1353   : > { %v3920_v57 = vpop.eup %3919  ;;  %v3056_v40 = vmul.f32 %v3918_v52, %v3055_v51 }
0x1354   : > { %v3062_v12 = vmul.f32 %v3920_v57, %v3030_v11  ;;  %3621 = vmatmul.msk.f32.gmra.mxu3 %vm5635_vm7, %v5327_v32  ;;  %vm3068_vm4 = vweird.f32 %v3920_v57 }
0x1355   : > { %v3060_v47 = vsel %vm3059_vm1, %v3918_v52, %v3056_v40  ;;  %vm3069_vm6 = vmor %vm3067_vm2, %vm3068_vm4 }
0x1356   : > { %v3073_v5 = vmul.f32 %v3060_v47, %v5256_v10  ;;  %v3063_v60 = vmul.f32 %v3920_v57, %v3062_v12  ;;  %v3627_v10 = vld [vmem:[%s5445_s4 + $0x98] sm:$0xff] }
0x1357   : > { %3166 = vmatpush.msra.mxu0 %v3627_v10 }
0x1358   : > { %v3064_v2 = vmul.f32 0.5, %v3063_v60  ;;  %v3078_v46 = vmul.f32 %v5288_v33, %v3073_v5 }
0x1359   : > { %3167 = vmatpush.msra.mxu0 %v3626_v31 }
0x135a   : > { %v3065_v17 = vsub.f32 1.5, %v3064_v2  ;;  %v3083_v55 = vadd.f32 %v5297_v61, %v3078_v46 }
0x135b   : > { %3168 = vmatpush.msra.mxu0 %v3625_v45 }
0x135c   : > { %v3066_v27 = vmul.f32 %v3920_v57, %v3065_v17  ;;  %3622 = vmatmul.msk.f32.gmra.mxu3 %vm5631_vm5, %v3083_v55 }
0x135d   : > { %3169 = vmatpush.msra.mxu0 %v3624_v6 }
0x135e   : > { %v3070_v30 = vsel %vm3069_vm6, %v3920_v57, %v3066_v27 }
0x135f   : > { %v3074_v38 = vmul.f32 %v3070_v30, %v5262_v63  ;;  %v3090_v63 = vperm.slane %v5285_v41, 1 }
0x1361   : > { %v3079_v25 = vmul.f32 %v5288_v33, %v3074_v38 }
0x1363   : > { %v3084_v20 = vadd.f32 %v5297_v61, %v3079_v25 }
0x1365   : > { %3623 = vmatmul.msk.f32.gmra.mxu3 %vm5636_vm11, %v3084_v20 }
0x13cf   : > { %v3120_v34 = vpop.f32.mrf.mxu3 }
0x13d0   : > { %v3121_v7 = vadd.f32 %v3120_v34, %v3090_v63 }
0x13d2   : > { %v3132_v39 = vmax.f32 %v3121_v7, 0.0 }
0x13d4   : > { %3170 = vmatmul.f32.vlgmr.msra.gmra.mxu0 %v3132_v39 }
0x13d7   : > { %v3123_v21 = vpop.f32.mrf.mxu3 }
0x13d8   : > { %v3124_v4 = vadd.f32 %v3123_v21, %v3090_v63 }
0x13da   : > { %v3133_v26 = vmax.f32 %v3124_v4, 0.0 }
0x13dc   : > { %3173 = vmatmul.f32.gmra.mxu0 %v3133_v26 }
0x13df   : > { %v3126_v13 = vpop.f32.mrf.mxu3 }
0x13e0   : > { %v3127_v54 = vadd.f32 %v3126_v13, %v3090_v63 }
0x13e2   : > { %v3134_v33 = vmax.f32 %v3127_v54, 0.0 }
0x13e4   : > { %3176 = vmatmul.f32.gmra.mxu0 %v3134_v33 }
0x13e8   : > { %v3129_v42 = vpop.f32.mrf.mxu3 }
0x13e9   : > { %v3130_v35 = vadd.f32 %v3129_v42, %v3090_v63 }
0x13eb   : > { %v3135_v48 = vmax.f32 %v3130_v35, 0.0 }
0x13ed   : > { %3179 = vmatmul.f32.gmra.mxu0 %v3135_v48 }
0x1451   : > { %v3171_v61 = vpop.f32.mrf.mxu0 }
0x1452   : > { %v3172_v53 = vadd.f32 %v3171_v61, %v3153_v36 }
0x1454   : > { %v3183_v43 = vadd.f32 %v3172_v53, %v5308_v29 }
0x1456   : > { %v3187_v50 = vsel %vm5637_vm9, %v3183_v43, 0.0 }
0x1457   : > { %3188 = vadd.xlane.f32.xlu0 %v3187_v50 }
0x1459   : > { %v3174_v15 = vpop.f32.mrf.mxu0 }
0x145a   : > { %v3175_v49 = vadd.f32 %v3174_v15, %v3153_v36 }
0x145c   : > { %v3184_v9 = vadd.f32 %v3175_v49, %v5327_v32 }
0x145e   : > { %v3190_v28 = vsel %vm5638_vm8, %v3184_v9, 0.0 }
0x145f   : > { %3191 = vadd.xlane.f32.xlu1 %v3190_v28 }
0x1461   : > { %v3177_v3 = vpop.f32.mrf.mxu0 }
0x1462   : > { %v3178_v52 = vadd.f32 %v3177_v3, %v3153_v36 }
0x1464   : > { %v3185_v56 = vadd.f32 %v3178_v52, %v3083_v55 }
0x1466   : > { %v3193_v24 = vsel %vm5639_vm3, %v3185_v56, 0.0 }
0x1467   : > { %3194 = vadd.xlane.f32.xlu2 %v3193_v24  ;;  %v3275_v24 = vperm.slane %v5285_v41, 3 }
0x146a   : > { %v3180_v11 = vpop.f32.mrf.mxu0 }
0x146b   : > { %v3181_v23 = vadd.f32 %v3180_v11, %v3153_v36  ;;  %v4034_v36 = vmov 0  }
0x146c   : > { %3701 = vset.pattern.permute.xlu2 %v4034_v36  ;;  %3702 = vset.pattern.permute.xlu0 %v4034_v36 }
0x146d   : > { %v3186_v37 = vadd.f32 %v3181_v23, %v3084_v20 }
0x146f   : > { %v3196_v29 = vsel %vm5640_vm10, %v3186_v37, 0.0 }
0x1470   : > { %3197 = vadd.xlane.f32.xlu0 %v3196_v29 }
0x14ca   : > { %v3189_v18 = vpop.xlane.xlu0 %3188 }
0x14cb   : > { %v3199_v16 = vmul.f32 %v3189_v18, %v4769_v44 }
0x14cd   : > { %v5372_v14 = vsub.f32 %v3183_v43, %v3199_v16  ;;  %v3280_v16 = vperm.slane %v5285_v41, 4 }
0x14cf   : > { %v3207_v62 = vmul.f32 %v5372_v14, %v5372_v14 }
0x14d1   : > { %v3211_v0 = vsel %vm5641_vm12, %v3207_v62, 0.0  ;;  %vm5645_vm12 = vmmov %vm5644_vm0 }
0x14d2   : > { %3212 = vadd.xlane.f32.xlu1 %v3211_v0  ;;  %v3192_v59 = vpop.xlane.xlu1 %3191 }
0x14d3   : > { %v3200_v51 = vmul.f32 %v3192_v59, %v4769_v44 }
0x14d5   : > { %v5378_v1 = vsub.f32 %v3184_v9, %v3200_v51 }
0x14d7   : > { %v3208_v32 = vmul.f32 %v5378_v1, %v5378_v1 }
0x14d9   : > { %v3214_v57 = vsel %vm5642_vm14, %v3208_v32, 0.0  ;;  %vm5646_vm14 = vmmov %vm5644_vm0 }
0x14da   : > { %v3195_v40 = vpop.xlane.xlu2 %3194  ;;  %3215 = vadd.xlane.f32.xlu2 %v3214_v57 }
0x14db   : > { %v3201_v58 = vmul.f32 %v3195_v40, %v4769_v44 }
0x14dd   : > { %v5384_v12 = vsub.f32 %v3185_v56, %v3201_v58 }
0x14df   : > { %v3209_v47 = vmul.f32 %v5384_v12, %v5384_v12 }
0x14e1   : > { %v3217_v8 = vsel %vm5643_vm15, %v3209_v47, 0.0  ;;  %vm3321_vm15 = vcmask 57344  }
0x14e2   : > { %3218 = vadd.xlane.f32.xlu0 %v3217_v8 }
0x14e3   : > { %v3198_v5 = vpop.xlane.xlu0 %3197 }
0x14e4   : > { %v3202_v60 = vmul.f32 %v3198_v5, %v4769_v44 }
0x14e6   : > { %v5390_v22 = vsub.f32 %v3186_v37, %v3202_v60  ;;  %v3293_v60 = vrot.slane %v5285_v41, 5 }
0x14e8   : > { %v3210_v2 = vmul.f32 %v5390_v22, %v5390_v22 }
0x14ea   : > { %v3220_v46 = vsel %vm5644_vm0, %v3210_v2, 0.0 }
0x14eb   : > { %3221 = vadd.xlane.f32.xlu1 %v3220_v46 }
0x14f2   : > { %3291 = vperm.xlu2 %3701, %v5285_v41  }
0x1545   : > { %v3213_v19 = vpop.xlane.xlu1 %3212 }
0x1546   : > { %v3223_v17 = vmul.f32 %v3213_v19, %v4769_v44 }
0x1548   : > { %v3227_v55 = vadd.f32 1e-05, %v3223_v17 }
0x154a   : > { %3921 = vrsqrt.f32 %v3227_v55  ;;  %vm3237_vm5 = vweird.f32 %v3227_v55 }
0x154d   : > { %v3216_v10 = vpop.xlane.xlu2 %3215 }
0x154e   : > { %v3224_v27 = vmul.f32 %v3216_v10, %v4769_v44 }
0x1550   : > { %v3228_v30 = vadd.f32 1e-05, %v3224_v27  ;;  %v3922_v38 = vpop.eup %3921 }
0x1551   : > { %v3232_v20 = vmul.f32 %v3922_v38, %v3227_v55  ;;  %vm3238_vm1 = vweird.f32 %v3922_v38 }
0x1552   : > { %3923 = vrsqrt.f32 %v3228_v30  ;;  %vm3247_vm7 = vweird.f32 %v3228_v30  ;;  %vm3239_vm6 = vmor %vm3237_vm5, %vm3238_vm1 }
0x1553   : > { %v3233_v34 = vmul.f32 %v3922_v38, %v3232_v20 }
0x1555   : > { %v3219_v25 = vpop.xlane.xlu0 %3218  ;;  %v3234_v21 = vmul.f32 0.5, %v3233_v34  ;;  %v3292_v2 = vpop.permute.xlu2 %3291 }
0x1556   : > { %v3225_v31 = vmul.f32 %v3219_v25, %v4769_v44 }
0x1557   : > { %v3235_v35 = vsub.f32 1.5, %v3234_v21 }
0x1558   : > { %v3924_v45 = vpop.eup %3923  ;;  %v3229_v6 = vadd.f32 1e-05, %v3225_v31 }
0x1559   : > { %v3242_v63 = vmul.f32 %v3924_v45, %v3228_v30  ;;  %vm3248_vm13 = vweird.f32 %v3924_v45  ;;  %v3236_v43 = vmul.f32 %v3922_v38, %v3235_v35 }
0x155a   : > { %3925 = vrsqrt.f32 %v3229_v6  ;;  %vm3249_vm4 = vmor %vm3247_vm7, %vm3248_vm13  ;;  %vm3257_vm11 = vweird.f32 %v3229_v6 }
0x155b   : > { %v3243_v7 = vmul.f32 %v3924_v45, %v3242_v63  ;;  %v3240_v9 = vsel %vm3239_vm6, %v3922_v38, %v3236_v43 }
0x155c   : > { %v3271_v11 = vmul.f32 %v3240_v9, %v5372_v14 }
0x155d   : > { %v3244_v39 = vmul.f32 0.5, %v3243_v7 }
0x155e   : > { %v3222_v4 = vpop.xlane.xlu1 %3221  ;;  %v3276_v62 = vmul.f32 %v3275_v24, %v3271_v11 }
0x155f   : > { %v3226_v26 = vmul.f32 %v3222_v4, %v4769_v44  ;;  %v3245_v54 = vsub.f32 1.5, %v3244_v39 }
0x1560   : > { %v3926_v13 = vpop.eup %3925  ;;  %v3281_v32 = vadd.f32 %v3280_v16, %v3276_v62 }
0x1561   : > { %v3252_v33 = vmul.f32 %v3926_v13, %v3229_v6  ;;  %v3230_v42 = vadd.f32 1e-05, %v3226_v26  ;;  %v3246_v61 = vmul.f32 %v3924_v45, %v3245_v54  ;;  %vm3258_vm2 = vweird.f32 %v3926_v13 }
0x1562   : > { %vm3259_vm9 = vmor %vm3257_vm11, %vm3258_vm2 }
0x1563   : > { %v3253_v48 = vmul.f32 %v3926_v13, %v3252_v33  ;;  %3927 = vrsqrt.f32 %v3230_v42  ;;  %v3250_v50 = vsel %vm3249_vm4, %v3924_v45, %v3246_v61  ;;  %vm3267_vm3 = vweird.f32 %v3230_v42 }
0x1564   : > { %v3272_v3 = vmul.f32 %v3250_v50, %v5378_v1 }
0x1565   : > { %v3254_v53 = vmul.f32 0.5, %v3253_v48 }
0x1566   : > { %v3277_v29 = vmul.f32 %v3275_v24, %v3272_v3 }
0x1567   : > { %v3255_v44 = vsub.f32 1.5, %v3254_v53 }
0x1568   : > { %v3282_v51 = vadd.f32 %v3280_v16, %v3277_v29 }
0x1569   : > { %v3928_v15 = vpop.eup %3927  ;;  %v3256_v49 = vmul.f32 %v3926_v13, %v3255_v44 }
0x156a   : > { %v3262_v28 = vmul.f32 %v3928_v15, %v3230_v42  ;;  %vm3268_vm8 = vweird.f32 %v3928_v15  ;;  %v3285_v40 = vadd.f32 %v3282_v51, %v3281_v32 }
0x156b   : > { %v3260_v52 = vsel %vm3259_vm9, %v3926_v13, %v3256_v49  ;;  %vm3269_vm10 = vmor %vm3267_vm3, %vm3268_vm8 }
0x156c   : > { %v3263_v56 = vmul.f32 %v3928_v15, %v3262_v28  ;;  %v3273_v23 = vmul.f32 %v3260_v52, %v5384_v12 }
0x156e   : > { %v3264_v37 = vmul.f32 0.5, %v3263_v56  ;;  %v3278_v0 = vmul.f32 %v3275_v24, %v3273_v23 }
0x1570   : > { %v3265_v18 = vsub.f32 1.5, %v3264_v37  ;;  %v3283_v57 = vadd.f32 %v3280_v16, %v3278_v0 }
0x1572   : > { %v3266_v59 = vmul.f32 %v3928_v15, %v3265_v18  ;;  %v3286_v47 = vadd.f32 %v3285_v40, %v3283_v57 }
0x1574   : > { %v3270_v1 = vsel %vm3269_vm10, %v3928_v15, %v3266_v59 }
0x1575   : > { %v3274_v14 = vmul.f32 %v3270_v1, %v5390_v22  ;;  %v3294_v22 = vrot.slane %v3292_v2, 6 }
0x1577   : > { %v3279_v58 = vmul.f32 %v3275_v24, %v3274_v14 }
0x1579   : > { %v3284_v12 = vadd.f32 %v3280_v16, %v3279_v58 }
0x157b   : > { %v3287_v8 = vadd.f32 %v3286_v47, %v3284_v12 }
0x157d   : > { %v3288_v5 = vmul.f32 0.25, %v3287_v8 }
0x157f   : > { %3640 = vmatpush.xpose.msk.msra.mxu1 %vm5645_vm12, %v3288_v5 }
0x1582   : > { %3641 = vmatmul.msk.f32.vlgmr.msra.gmra.mxu1 %vm5646_vm14, %v3293_v60 }
0x15ff   : > { %v3318_v46 = vpop.f32.mrf.mxu1 }
0x1600   : > { %v3319_v19 = vadd.f32 %v3318_v46, %v3294_v22 }
0x1602   : > { %3322 = vst.msk [vmem:[%s233_s25] sm:$0x1] %vm3321_vm15, %v3319_v19 }
0x1603   : > { %3988 = shalt.err (!%p3985_p8)
}
0x1604   : > { %3650 = dma.vmem_to_hbm [thread:$0]  (%p4103_p5), %s3335_s26, 16, %s3337_s30, %s3324_s6  }
0x1605 PF: > { %p3662_p9 = scmp.ge.s32.totalorder %s4027_s21, 2  ;;  %s3348_s13 = sand.u32 1, %s4015_s18  }
0x1606   : > { %s3349_s14 = scalar_lea.sflag [#allocation4], %s3348_s13 }
0x1607   : > { %p3657_p10 = pnand %p3662_p9, %p4107_p6 }
0x1609   : > { %p3658_p11 = pneg %p3657_p10 }
0x160b   : > { %4010 = dma.done.wait (%p3658_p11), %s3349_s14, 16  }
0x160c   : > { %4012 = vsyncadd (%p3658_p11), %s3349_s14, 4294967280  ;;  %p16_p12 = scmp.ge.s32.totalorder %s4090_s24, 4   ;;  %s5647_s18 = smov %s4019_s19 }
0x160d   : > { %s5648_s19 = smov %s4023_s20  ;;  %s5649_s20 = smov %s4101_s27 }
0x160e   : > { %s5650_s21 = smov %s4090_s24  ;;  %18 = sbr.rel (!%p16_p12) target bundleno = 4 (0x4), region = 93 }
0x1613   :  { %3354 = vsyncpa [#allocation3], 1 }
0x1614   :  { %3356 = vsyncpa [#allocation3 + $0x1], 1 }
0x1615   :  { %3357 = vsyncpa [#allocation4], 1 }
0x1616   :  { %3359 = vsyncpa [#allocation4 + $0x1], 1 }

</bundles_post_ra>
